<compile_context>
chip_gen: v6e
topology: v6e:2x2x1
jax: 0.10.0
libtpu: 0.0.40
codegen_flags: <defaults>
</compile_context>

<pallas_src>
import functools

import jax
import jax.numpy as jnp
import numpy as np
from jax.experimental import pallas as pl
from jax.experimental.pallas import tpu as pltpu

BN_EPS = 1e-5          # torch.nn.BatchNorm2d default
LRELU_SLOPE = 0.01     # torch.nn.LeakyReLU default

# kernel sizes / "same" paddings of the 4 conv layers, in (Alt, Pos) order
# (matching the PyTorch module, which convolves over NCHW = (B, C, Alt, Pos)).
KERNELS = [(7, 9), (5, 7), (3, 5), (3, 3)]
PADS = [(3, 4), (2, 3), (1, 2), (1, 1)]

_VMEM_SPEC = pl.BlockSpec(memory_space=pltpu.MemorySpace.VMEM)


def _round_up(x, m):
    return ((x + m - 1) // m) * m


# ---------------------------------------------------------------------------
# Fused Pallas kernel: 4 convs, BN folded, LeakyReLU, head clamp+exp.
# ---------------------------------------------------------------------------
def _pnet_fused_kernel(x_ref, w1_ref, b1_ref, w2_ref, b2_ref, w3_ref, b3_ref,
                       w4_ref, b4_ref, out_ref,
                       p0, c0, p1, c1, p2, c2, p3, c3, *, out_channels):
    # Kernel frame: H = Pos, W = Alt, batch block = 1.
    _, H, W, _ = x_ref.shape

    def stage(y, pad_ref, cim_ref):
        """Stage activation y (1, H, W, C) for the next conv layer.

        pad_ref: (1, H, W + 2*pw, C)      -- column zero-padded copy (bf16).
        cim_ref: (1, H + 2*ph, W, KW*C)   -- per-column im2col: lane-axis concat
                 of the KW column-shifted slabs, with zero-padded border rows.
        Built ONCE per layer; the conv then only row-slices cim_ref per kh.
        """
        C = pad_ref.shape[-1]
        pw = (pad_ref.shape[2] - W) // 2
        ph = (cim_ref.shape[1] - H) // 2
        KW = cim_ref.shape[-1] // C

        pad_ref[...] = jnp.zeros(pad_ref.shape, pad_ref.dtype)
        pad_ref[:, :, pw:pw + W, :] = y.astype(pad_ref.dtype)

        cim = jnp.concatenate(
            [pad_ref[:, :, kw:kw + W, :] for kw in range(KW)], axis=-1)
        cim_ref[...] = jnp.zeros(cim_ref.shape, cim_ref.dtype)
        cim_ref[:, ph:ph + H, :, :] = cim

    def conv(cim_ref, w_ref, b_ref):
        """'Same' conv as KH deep-K matmuls (K = KW*C) on the MXU.
        cim_ref: (1, H+KH-1, W, KW*C) bf16; w_ref: (KH, KW*C, Cout) bf16.
        Returns f32 (H*W, Cout)."""
        KH, KWC, Cout = w_ref.shape
        acc = jnp.zeros((H * W, Cout), jnp.float32)
        for kh in range(KH):
            patch = cim_ref[:, kh:kh + H, :, :].reshape(H * W, KWC)
            acc = acc + jnp.dot(patch, w_ref[kh],
                                preferred_element_type=jnp.float32)
        return acc + b_ref[...]            # bias has BN folded in

    def hidden(cim_ref, w_ref, b_ref, pad_next, cim_next):
        acc = conv(cim_ref, w_ref, b_ref)
        y = jnp.where(acc >= 0, acc, LRELU_SLOPE * acc)   # LeakyReLU
        stage(y.reshape(1, H, W, pad_next.shape[-1]), pad_next, cim_next)

    # Stage the (bf16-cast) input, then run the three hidden layers.
    stage(x_ref[...], p0, c0)
    hidden(c0, w1_ref, b1_ref, p1, c1)
    hidden(c1, w2_ref, b2_ref, p2, c2)
    hidden(c2, w3_ref, b3_ref, p3, c3)

    # Head: lanes [0, C) = mu, lanes [C, 2C) = sigma = exp(clip(log_sigma)),
    # remaining lanes are padding (lane-dense 128-wide store; sliced in the
    # wrapper).
    acc = conv(c3, w4_ref, b4_ref)                        # (H*W, 128) f32
    lane = jax.lax.broadcasted_iota(jnp.int32, acc.shape, 1)
    sig = jnp.exp(jnp.clip(acc, -10.0, 10.0))
    out = jnp.where(lane < out_channels, acc, sig)
    out_ref[...] = out.reshape(out_ref.shape).astype(out_ref.dtype)


# ---------------------------------------------------------------------------
# Wrapper: one pallas_call for the whole forward pass.
# ---------------------------------------------------------------------------
def pnet2d_forward(x, prepped, *, out_channels):
    """x: (B, Pos, Alt, Cin) -> (mu, sigma), each (B, Pos, Alt, out_channels)."""
    B, P, A, Cin = x.shape
    chans = [Cin] + [prepped[i]["w"].shape[-1] for i in range(3)]
    head_pad = prepped[3]["w"].shape[-1]

    # Per layer, in the kernel frame (H = Pos, W = Alt):
    #   pPos = PADS[i][1], pAlt = PADS[i][0], kAlt = KERNELS[i][0]
    scratch = []
    for i in range(4):
        p_alt, p_pos = PADS[i]
        k_alt = KERNELS[i][0]
        scratch.append(pltpu.VMEM((1, P, A + 2 * p_alt, chans[i]),
                                  jnp.bfloat16))                       # pad_i
        scratch.append(pltpu.VMEM((1, P + 2 * p_pos, A, k_alt * chans[i]),
                                  jnp.bfloat16))                       # cim_i

    flat_params = []
    for p in prepped:
        flat_params += [p["w"], p["b"]]

    out = pl.pallas_call(
        functools.partial(_pnet_fused_kernel, out_channels=out_channels),
        grid=(B,),
        out_shape=jax.ShapeDtypeStruct((B, P, A, head_pad), jnp.float32),
        in_specs=[pl.BlockSpec((1, P, A, Cin), lambda b: (b, 0, 0, 0))]
                 + [_VMEM_SPEC] * 8,
        out_specs=pl.BlockSpec((1, P, A, head_pad), lambda b: (b, 0, 0, 0)),
        scratch_shapes=scratch,
        compiler_params=pltpu.CompilerParams(
            dimension_semantics=("parallel",)),
    )(x, *flat_params)

    mu = out[..., :out_channels]
    sigma = out[..., out_channels:2 * out_channels]
    return mu, sigma


# ---------------------------------------------------------------------------
# Parameter prep: fold BN, swap spatial axes to the (Pos, Alt) kernel frame,
# reshape to per-kh im2col layout, cast matmul operands to bf16, pad the head
# output channels to a lane-dense multiple of 128.
# ---------------------------------------------------------------------------
def prepare_params(params):
    prepped = []
    for i, p in enumerate(params):
        w = p["w"]                       # (kAlt, kPos, Cin, Cout) f32 (HWIO, H=Alt)
        b = p["b"][0]                    # (Cout,)
        if "gamma" in p:                 # fold BatchNorm (inference running stats)
            scale = p["gamma"][0] * jax.lax.rsqrt(p["var"][0] + BN_EPS)
            b = b * scale + p["beta"][0] - p["mean"][0] * scale
            w = w * scale
        # Kernel frame is H = Pos, W = Alt -> swap the weight's spatial axes
        # once (so no activation transposes are ever needed).
        w = jnp.transpose(w, (1, 0, 2, 3))            # (kPos, kAlt, Cin, Cout)
        kp, ka, cin, cout = w.shape
        if i == len(params) - 1:                      # lane-dense head output
            padded = _round_up(cout, 128)
            w = jnp.pad(w, ((0, 0), (0, 0), (0, 0), (0, padded - cout)))
            b = jnp.pad(b, (0, padded - cout))
            cout = padded
        prepped.append({
            "w": w.reshape(kp, ka * cin, cout).astype(jnp.bfloat16),
            "b": b.reshape(1, cout).astype(jnp.float32),
        })
    return prepped


# ---------------------------------------------------------------------------
# Deterministic parameter init (mirrors the PyTorch module's shapes & defaults)
# ---------------------------------------------------------------------------
def init_params(key, in_channels=6, out_channels=10, hidden_channels=(64, 64, 64)):
    chans = [in_channels, hidden_channels[0], hidden_channels[1],
             hidden_channels[2], out_channels * 2]
    params = []
    for i, (kh, kw) in enumerate(KERNELS):
        cin, cout = chans[i], chans[i + 1]
        key, k_w, k_b = jax.random.split(key, 3)
        bound = float(cin * kh * kw) ** -0.5          # ~ PyTorch kaiming-uniform bound
        w = jax.random.uniform(k_w, (kh, kw, cin, cout), jnp.float32, -bound, bound)
        b = jax.random.uniform(k_b, (1, cout), jnp.float32, -bound, bound)
        layer = {"w": w, "b": b}
        if i < 3:
            # BatchNorm2d default params / running stats, evaluated in inference form.
            # TODO(synk): training-mode batch statistics (mean/var over the batch)
            # are not reproduced; the freshly-initialized running stats are folded.
            layer.update(gamma=jnp.ones((1, cout), jnp.float32),
                         beta=jnp.zeros((1, cout), jnp.float32),
                         mean=jnp.zeros((1, cout), jnp.float32),
                         var=jnp.ones((1, cout), jnp.float32))
        params.append(layer)
    return params


# ---------------------------------------------------------------------------
# Pure-JAX reference (original PyTorch orientation).  matmul_dtype=bfloat16
# reproduces the kernel's bf16-input / f32-accumulate numerics; float32 gives
# the exact f32 PyTorch semantics.
# ---------------------------------------------------------------------------
def reference_forward(x, params, matmul_dtype=jnp.float32):
    h = jnp.transpose(x, (0, 2, 1, 3)).astype(jnp.float32)   # (B, Alt, Pos, Cin)

    def conv(h, w, b, pad):
        out = jax.lax.conv_general_dilated(
            h.astype(matmul_dtype), w.astype(matmul_dtype),
            window_strides=(1, 1),
            padding=[(pad[0], pad[0]), (pad[1], pad[1])],
            dimension_numbers=("NHWC", "HWIO", "NHWC"),
            preferred_element_type=jnp.float32)
        return out + b.reshape(1, 1, 1, -1)

    for i in range(3):
        p = params[i]
        h = conv(h, p["w"], p["b"], PADS[i])
        scale = p["gamma"].reshape(1, 1, 1, -1) * jax.lax.rsqrt(
            p["var"].reshape(1, 1, 1, -1) + BN_EPS)
        shift = p["beta"].reshape(1, 1, 1, -1) - p["mean"].reshape(1, 1, 1, -1) * scale
        h = h * scale + shift
        h = jnp.where(h >= 0, h, LRELU_SLOPE * h)
    out = conv(h, params[3]["w"], params[3]["b"], PADS[3])
    out = jnp.transpose(out, (0, 2, 1, 3))                    # (B, Pos, Alt, 2*C)
    C = out.shape[-1] // 2
    mu = out[..., :C]
    sigma = jnp.exp(jnp.clip(out[..., C:], -10.0, 10.0))
    return mu, sigma


# ---------------------------------------------------------------------------
if __name__ == "__main__":
    key = jax.random.PRNGKey(0)
    pkey, xkey = jax.random.split(key)

    in_channels, out_channels = 6, 10
    B, P, A = 2, 8, 8                                   # batch, Pos, Alt
    params = init_params(pkey, in_channels, out_channels)
    prepped = prepare_params(params)
    x = jax.random.normal(xkey, (B, P, A, in_channels), jnp.float32)

    fwd = jax.jit(functools.partial(pnet2d_forward, out_channels=out_channels))
    mu, sigma = fwd(x, prepped)
    jax.block_until_ready((mu, sigma))

    assert mu.shape == (B, P, A, out_channels)
    assert sigma.shape == (B, P, A, out_channels)

    # 1) Check vs a matched-precision reference (bf16 matmul inputs, f32
    #    accumulation) -- validates the fused kernel structure itself.
    mu_b, sg_b = reference_forward(x, params, jnp.bfloat16)
    np.testing.assert_allclose(np.asarray(mu), np.asarray(mu_b), rtol=1e-2, atol=1e-2)
    np.testing.assert_allclose(np.asarray(sigma), np.asarray(sg_b), rtol=1e-2, atol=1e-2)

    # 2) Looser check vs the pure-f32 (PyTorch-exact) reference -- bounds the
    #    bf16 precision loss of the fast path.
    mu_f, sg_f = reference_forward(x, params, jnp.float32)
    np.testing.assert_allclose(np.asarray(mu), np.asarray(mu_f), rtol=3e-2, atol=3e-2)
    np.testing.assert_allclose(np.asarray(sigma), np.asarray(sg_f), rtol=3e-2, atol=3e-2)

    print("KERNEL_OK")
</pallas_src>

<mosaic_0001>
module attributes {stable_mosaic.version = 11 : i64} {
  func.func @_pnet_fused_kernel(%arg0: i32, %arg1: memref<1x8x8x6xf32, #tpu.memory_space<vmem>>, %arg2: memref<9x42x64xbf16, #tpu.memory_space<vmem>>, %arg3: memref<1x64xf32, #tpu.memory_space<vmem>>, %arg4: memref<7x320x64xbf16, #tpu.memory_space<vmem>>, %arg5: memref<1x64xf32, #tpu.memory_space<vmem>>, %arg6: memref<5x192x64xbf16, #tpu.memory_space<vmem>>, %arg7: memref<1x64xf32, #tpu.memory_space<vmem>>, %arg8: memref<3x192x128xbf16, #tpu.memory_space<vmem>>, %arg9: memref<1x128xf32, #tpu.memory_space<vmem>>, %arg10: memref<1x8x8x128xf32, #tpu.memory_space<vmem>>, %arg11: memref<1x8x14x6xbf16, #tpu.memory_space<vmem>>, %arg12: memref<1x16x8x42xbf16, #tpu.memory_space<vmem>>, %arg13: memref<1x8x12x64xbf16, #tpu.memory_space<vmem>>, %arg14: memref<1x14x8x320xbf16, #tpu.memory_space<vmem>>, %arg15: memref<1x8x10x64xbf16, #tpu.memory_space<vmem>>, %arg16: memref<1x12x8x192xbf16, #tpu.memory_space<vmem>>, %arg17: memref<1x8x10x64xbf16, #tpu.memory_space<vmem>>, %arg18: memref<1x10x8x192xbf16, #tpu.memory_space<vmem>>) attributes {dimension_semantics = [#tpu.dimension_semantics<parallel>], iteration_bounds = array<i64: 2>, scalar_prefetch = 0 : i64, scratch_operands = 8 : i64, tpu.core_type = #tpu.core_type<tc>, window_params = [{transform_indices = @transform_0, window_bounds = array<i64: 1, 8, 8, 6>}, {pipeline_mode = #tpu.pipeline_mode<synchronous>, transform_indices = @transform_1, window_bounds = array<i64: 9, 42, 64>}, {pipeline_mode = #tpu.pipeline_mode<synchronous>, transform_indices = @transform_2, window_bounds = array<i64: 1, 64>}, {pipeline_mode = #tpu.pipeline_mode<synchronous>, transform_indices = @transform_3, window_bounds = array<i64: 7, 320, 64>}, {pipeline_mode = #tpu.pipeline_mode<synchronous>, transform_indices = @transform_4, window_bounds = array<i64: 1, 64>}, {pipeline_mode = #tpu.pipeline_mode<synchronous>, transform_indices = @transform_5, window_bounds = array<i64: 5, 192, 64>}, {pipeline_mode = #tpu.pipeline_mode<synchronous>, transform_indices = @transform_6, window_bounds = array<i64: 1, 64>}, {pipeline_mode = #tpu.pipeline_mode<synchronous>, transform_indices = @transform_7, window_bounds = array<i64: 3, 192, 128>}, {pipeline_mode = #tpu.pipeline_mode<synchronous>, transform_indices = @transform_8, window_bounds = array<i64: 1, 128>}, {transform_indices = @transform_9, window_bounds = array<i64: 1, 8, 8, 128>}]} {
    %c0 = arith.constant 0 : index
    %c0_0 = arith.constant 0 : index
    %c0_1 = arith.constant 0 : index
    %c0_2 = arith.constant 0 : index
    %0 = vector.load %arg1[%c0, %c0_0, %c0_1, %c0_2] : memref<1x8x8x6xf32, #tpu.memory_space<vmem>>, vector<1x8x8x6xf32>
    %cst = arith.constant 0.000000e+00 : bf16
    %1 = vector.broadcast %cst : bf16 to vector<1x8x14x6xbf16>
    %c0_3 = arith.constant 0 : index
    %c0_4 = arith.constant 0 : index
    %c0_5 = arith.constant 0 : index
    %c0_6 = arith.constant 0 : index
    %2 = vector.load %arg11[%c0_3, %c0_4, %c0_5, %c0_6] : memref<1x8x14x6xbf16, #tpu.memory_space<vmem>>, vector<1x8x14x6xbf16>
    tpu.vector_store %arg11[%c0_3, %c0_4, %c0_5, %c0_6], %1 {strides = array<i32>} : memref<1x8x14x6xbf16, #tpu.memory_space<vmem>>, vector<1x8x14x6xbf16>,
    %3 = arith.truncf %0 : vector<1x8x8x6xf32> to vector<1x8x8x6xbf16>
    %c0_7 = arith.constant 0 : index
    %c0_8 = arith.constant 0 : index
    %c3 = arith.constant 3 : index
    %c0_9 = arith.constant 0 : index
    %4 = vector.load %arg11[%c0_7, %c0_8, %c3, %c0_9] : memref<1x8x14x6xbf16, #tpu.memory_space<vmem>>, vector<1x8x8x6xbf16>
    tpu.vector_store %arg11[%c0_7, %c0_8, %c3, %c0_9], %3 {strides = array<i32>} : memref<1x8x14x6xbf16, #tpu.memory_space<vmem>>, vector<1x8x8x6xbf16>,
    %c0_10 = arith.constant 0 : index
    %c0_11 = arith.constant 0 : index
    %c0_12 = arith.constant 0 : index
    %c0_13 = arith.constant 0 : index
    %5 = vector.load %arg11[%c0_10, %c0_11, %c0_12, %c0_13] : memref<1x8x14x6xbf16, #tpu.memory_space<vmem>>, vector<1x8x8x6xbf16>
    %c0_14 = arith.constant 0 : index
    %c0_15 = arith.constant 0 : index
    %c1 = arith.constant 1 : index
    %c0_16 = arith.constant 0 : index
    %6 = vector.load %arg11[%c0_14, %c0_15, %c1, %c0_16] : memref<1x8x14x6xbf16, #tpu.memory_space<vmem>>, vector<1x8x8x6xbf16>
    %c0_17 = arith.constant 0 : index
    %c0_18 = arith.constant 0 : index
    %c2 = arith.constant 2 : index
    %c0_19 = arith.constant 0 : index
    %7 = vector.load %arg11[%c0_17, %c0_18, %c2, %c0_19] : memref<1x8x14x6xbf16, #tpu.memory_space<vmem>>, vector<1x8x8x6xbf16>
    %c0_20 = arith.constant 0 : index
    %c0_21 = arith.constant 0 : index
    %c3_22 = arith.constant 3 : index
    %c0_23 = arith.constant 0 : index
    %8 = vector.load %arg11[%c0_20, %c0_21, %c3_22, %c0_23] : memref<1x8x14x6xbf16, #tpu.memory_space<vmem>>, vector<1x8x8x6xbf16>
    %c0_24 = arith.constant 0 : index
    %c0_25 = arith.constant 0 : index
    %c4 = arith.constant 4 : index
    %c0_26 = arith.constant 0 : index
    %9 = vector.load %arg11[%c0_24, %c0_25, %c4, %c0_26] : memref<1x8x14x6xbf16, #tpu.memory_space<vmem>>, vector<1x8x8x6xbf16>
    %c0_27 = arith.constant 0 : index
    %c0_28 = arith.constant 0 : index
    %c5 = arith.constant 5 : index
    %c0_29 = arith.constant 0 : index
    %10 = vector.load %arg11[%c0_27, %c0_28, %c5, %c0_29] : memref<1x8x14x6xbf16, #tpu.memory_space<vmem>>, vector<1x8x8x6xbf16>
    %c0_30 = arith.constant 0 : index
    %c0_31 = arith.constant 0 : index
    %c6 = arith.constant 6 : index
    %c0_32 = arith.constant 0 : index
    %11 = vector.load %arg11[%c0_30, %c0_31, %c6, %c0_32] : memref<1x8x14x6xbf16, #tpu.memory_space<vmem>>, vector<1x8x8x6xbf16>
    %12 = tpu.concatenate %5, %6, %7, %8, %9, %10, %11 in 3 : vector<1x8x8x6xbf16>, vector<1x8x8x6xbf16>, vector<1x8x8x6xbf16>, vector<1x8x8x6xbf16>, vector<1x8x8x6xbf16>, vector<1x8x8x6xbf16>, vector<1x8x8x6xbf16> -> vector<1x8x8x42xbf16>
    %cst_33 = arith.constant 0.000000e+00 : bf16
    %13 = vector.broadcast %cst_33 : bf16 to vector<1x16x8x42xbf16>
    %c0_34 = arith.constant 0 : index
    %c0_35 = arith.constant 0 : index
    %c0_36 = arith.constant 0 : index
    %c0_37 = arith.constant 0 : index
    %14 = vector.load %arg12[%c0_34, %c0_35, %c0_36, %c0_37] : memref<1x16x8x42xbf16, #tpu.memory_space<vmem>>, vector<1x16x8x42xbf16>
    tpu.vector_store %arg12[%c0_34, %c0_35, %c0_36, %c0_37], %13 {strides = array<i32>} : memref<1x16x8x42xbf16, #tpu.memory_space<vmem>>, vector<1x16x8x42xbf16>,
    %c0_38 = arith.constant 0 : index
    %c4_39 = arith.constant 4 : index
    %c0_40 = arith.constant 0 : index
    %c0_41 = arith.constant 0 : index
    %15 = vector.load %arg12[%c0_38, %c4_39, %c0_40, %c0_41] : memref<1x16x8x42xbf16, #tpu.memory_space<vmem>>, vector<1x8x8x42xbf16>
    tpu.vector_store %arg12[%c0_38, %c4_39, %c0_40, %c0_41], %12 {strides = array<i32>} : memref<1x16x8x42xbf16, #tpu.memory_space<vmem>>, vector<1x8x8x42xbf16>,
    %cst_42 = arith.constant 0.000000e+00 : f32
    %16 = vector.broadcast %cst_42 : f32 to vector<64x64xf32>
    %c0_43 = arith.constant 0 : index
    %c0_44 = arith.constant 0 : index
    %c0_45 = arith.constant 0 : index
    %c0_46 = arith.constant 0 : index
    %17 = vector.load %arg12[%c0_43, %c0_44, %c0_45, %c0_46] : memref<1x16x8x42xbf16, #tpu.memory_space<vmem>>, vector<1x8x8x42xbf16>
    %18 = vector.shape_cast %17 : vector<1x8x8x42xbf16> to vector<64x42xbf16>
    %c0_47 = arith.constant 0 : index
    %c0_48 = arith.constant 0 : index
    %c0_49 = arith.constant 0 : index
    %19 = vector.load %arg2[%c0_47, %c0_48, %c0_49] : memref<9x42x64xbf16, #tpu.memory_space<vmem>>, vector<1x42x64xbf16>
    %20 = vector.shape_cast %19 : vector<1x42x64xbf16> to vector<42x64xbf16>
    %cst_50 = arith.constant dense<0.000000e+00> : vector<64x64xf32>
    %21 = tpu.matmul %18, %20, %cst_50 {dimension_numbers = #tpu.dot_dimension_numbers<[1], [0], [0], [1], [0, 0, 1, 1], [], []>} : vector<64x42xbf16>, vector<42x64xbf16>, vector<64x64xf32> -> vector<64x64xf32>
    %22 = arith.addf %16, %21 : vector<64x64xf32>
    %c0_51 = arith.constant 0 : index
    %c1_52 = arith.constant 1 : index
    %c0_53 = arith.constant 0 : index
    %c0_54 = arith.constant 0 : index
    %23 = vector.load %arg12[%c0_51, %c1_52, %c0_53, %c0_54] : memref<1x16x8x42xbf16, #tpu.memory_space<vmem>>, vector<1x8x8x42xbf16>
    %24 = vector.shape_cast %23 : vector<1x8x8x42xbf16> to vector<64x42xbf16>
    %c1_55 = arith.constant 1 : index
    %c0_56 = arith.constant 0 : index
    %c0_57 = arith.constant 0 : index
    %25 = vector.load %arg2[%c1_55, %c0_56, %c0_57] : memref<9x42x64xbf16, #tpu.memory_space<vmem>>, vector<1x42x64xbf16>
    %26 = vector.shape_cast %25 : vector<1x42x64xbf16> to vector<42x64xbf16>
    %cst_58 = arith.constant dense<0.000000e+00> : vector<64x64xf32>
    %27 = tpu.matmul %24, %26, %cst_58 {dimension_numbers = #tpu.dot_dimension_numbers<[1], [0], [0], [1], [0, 0, 1, 1], [], []>} : vector<64x42xbf16>, vector<42x64xbf16>, vector<64x64xf32> -> vector<64x64xf32>
    %28 = arith.addf %22, %27 : vector<64x64xf32>
    %c0_59 = arith.constant 0 : index
    %c2_60 = arith.constant 2 : index
    %c0_61 = arith.constant 0 : index
    %c0_62 = arith.constant 0 : index
    %29 = vector.load %arg12[%c0_59, %c2_60, %c0_61, %c0_62] : memref<1x16x8x42xbf16, #tpu.memory_space<vmem>>, vector<1x8x8x42xbf16>
    %30 = vector.shape_cast %29 : vector<1x8x8x42xbf16> to vector<64x42xbf16>
    %c2_63 = arith.constant 2 : index
    %c0_64 = arith.constant 0 : index
    %c0_65 = arith.constant 0 : index
    %31 = vector.load %arg2[%c2_63, %c0_64, %c0_65] : memref<9x42x64xbf16, #tpu.memory_space<vmem>>, vector<1x42x64xbf16>
    %32 = vector.shape_cast %31 : vector<1x42x64xbf16> to vector<42x64xbf16>
    %cst_66 = arith.constant dense<0.000000e+00> : vector<64x64xf32>
    %33 = tpu.matmul %30, %32, %cst_66 {dimension_numbers = #tpu.dot_dimension_numbers<[1], [0], [0], [1], [0, 0, 1, 1], [], []>} : vector<64x42xbf16>, vector<42x64xbf16>, vector<64x64xf32> -> vector<64x64xf32>
    %34 = arith.addf %28, %33 : vector<64x64xf32>
    %c0_67 = arith.constant 0 : index
    %c3_68 = arith.constant 3 : index
    %c0_69 = arith.constant 0 : index
    %c0_70 = arith.constant 0 : index
    %35 = vector.load %arg12[%c0_67, %c3_68, %c0_69, %c0_70] : memref<1x16x8x42xbf16, #tpu.memory_space<vmem>>, vector<1x8x8x42xbf16>
    %36 = vector.shape_cast %35 : vector<1x8x8x42xbf16> to vector<64x42xbf16>
    %c3_71 = arith.constant 3 : index
    %c0_72 = arith.constant 0 : index
    %c0_73 = arith.constant 0 : index
    %37 = vector.load %arg2[%c3_71, %c0_72, %c0_73] : memref<9x42x64xbf16, #tpu.memory_space<vmem>>, vector<1x42x64xbf16>
    %38 = vector.shape_cast %37 : vector<1x42x64xbf16> to vector<42x64xbf16>
    %cst_74 = arith.constant dense<0.000000e+00> : vector<64x64xf32>
    %39 = tpu.matmul %36, %38, %cst_74 {dimension_numbers = #tpu.dot_dimension_numbers<[1], [0], [0], [1], [0, 0, 1, 1], [], []>} : vector<64x42xbf16>, vector<42x64xbf16>, vector<64x64xf32> -> vector<64x64xf32>
    %40 = arith.addf %34, %39 : vector<64x64xf32>
    %c0_75 = arith.constant 0 : index
    %c4_76 = arith.constant 4 : index
    %c0_77 = arith.constant 0 : index
    %c0_78 = arith.constant 0 : index
    %41 = vector.load %arg12[%c0_75, %c4_76, %c0_77, %c0_78] : memref<1x16x8x42xbf16, #tpu.memory_space<vmem>>, vector<1x8x8x42xbf16>
    %42 = vector.shape_cast %41 : vector<1x8x8x42xbf16> to vector<64x42xbf16>
    %c4_79 = arith.constant 4 : index
    %c0_80 = arith.constant 0 : index
    %c0_81 = arith.constant 0 : index
    %43 = vector.load %arg2[%c4_79, %c0_80, %c0_81] : memref<9x42x64xbf16, #tpu.memory_space<vmem>>, vector<1x42x64xbf16>
    %44 = vector.shape_cast %43 : vector<1x42x64xbf16> to vector<42x64xbf16>
    %cst_82 = arith.constant dense<0.000000e+00> : vector<64x64xf32>
    %45 = tpu.matmul %42, %44, %cst_82 {dimension_numbers = #tpu.dot_dimension_numbers<[1], [0], [0], [1], [0, 0, 1, 1], [], []>} : vector<64x42xbf16>, vector<42x64xbf16>, vector<64x64xf32> -> vector<64x64xf32>
    %46 = arith.addf %40, %45 : vector<64x64xf32>
    %c0_83 = arith.constant 0 : index
    %c5_84 = arith.constant 5 : index
    %c0_85 = arith.constant 0 : index
    %c0_86 = arith.constant 0 : index
    %47 = vector.load %arg12[%c0_83, %c5_84, %c0_85, %c0_86] : memref<1x16x8x42xbf16, #tpu.memory_space<vmem>>, vector<1x8x8x42xbf16>
    %48 = vector.shape_cast %47 : vector<1x8x8x42xbf16> to vector<64x42xbf16>
    %c5_87 = arith.constant 5 : index
    %c0_88 = arith.constant 0 : index
    %c0_89 = arith.constant 0 : index
    %49 = vector.load %arg2[%c5_87, %c0_88, %c0_89] : memref<9x42x64xbf16, #tpu.memory_space<vmem>>, vector<1x42x64xbf16>
    %50 = vector.shape_cast %49 : vector<1x42x64xbf16> to vector<42x64xbf16>
    %cst_90 = arith.constant dense<0.000000e+00> : vector<64x64xf32>
    %51 = tpu.matmul %48, %50, %cst_90 {dimension_numbers = #tpu.dot_dimension_numbers<[1], [0], [0], [1], [0, 0, 1, 1], [], []>} : vector<64x42xbf16>, vector<42x64xbf16>, vector<64x64xf32> -> vector<64x64xf32>
    %52 = arith.addf %46, %51 : vector<64x64xf32>
    %c0_91 = arith.constant 0 : index
    %c6_92 = arith.constant 6 : index
    %c0_93 = arith.constant 0 : index
    %c0_94 = arith.constant 0 : index
    %53 = vector.load %arg12[%c0_91, %c6_92, %c0_93, %c0_94] : memref<1x16x8x42xbf16, #tpu.memory_space<vmem>>, vector<1x8x8x42xbf16>
    %54 = vector.shape_cast %53 : vector<1x8x8x42xbf16> to vector<64x42xbf16>
    %c6_95 = arith.constant 6 : index
    %c0_96 = arith.constant 0 : index
    %c0_97 = arith.constant 0 : index
    %55 = vector.load %arg2[%c6_95, %c0_96, %c0_97] : memref<9x42x64xbf16, #tpu.memory_space<vmem>>, vector<1x42x64xbf16>
    %56 = vector.shape_cast %55 : vector<1x42x64xbf16> to vector<42x64xbf16>
    %cst_98 = arith.constant dense<0.000000e+00> : vector<64x64xf32>
    %57 = tpu.matmul %54, %56, %cst_98 {dimension_numbers = #tpu.dot_dimension_numbers<[1], [0], [0], [1], [0, 0, 1, 1], [], []>} : vector<64x42xbf16>, vector<42x64xbf16>, vector<64x64xf32> -> vector<64x64xf32>
    %58 = arith.addf %52, %57 : vector<64x64xf32>
    %c0_99 = arith.constant 0 : index
    %c7 = arith.constant 7 : index
    %c0_100 = arith.constant 0 : index
    %c0_101 = arith.constant 0 : index
    %59 = vector.load %arg12[%c0_99, %c7, %c0_100, %c0_101] : memref<1x16x8x42xbf16, #tpu.memory_space<vmem>>, vector<1x8x8x42xbf16>
    %60 = vector.shape_cast %59 : vector<1x8x8x42xbf16> to vector<64x42xbf16>
    %c7_102 = arith.constant 7 : index
    %c0_103 = arith.constant 0 : index
    %c0_104 = arith.constant 0 : index
    %61 = vector.load %arg2[%c7_102, %c0_103, %c0_104] : memref<9x42x64xbf16, #tpu.memory_space<vmem>>, vector<1x42x64xbf16>
    %62 = vector.shape_cast %61 : vector<1x42x64xbf16> to vector<42x64xbf16>
    %cst_105 = arith.constant dense<0.000000e+00> : vector<64x64xf32>
    %63 = tpu.matmul %60, %62, %cst_105 {dimension_numbers = #tpu.dot_dimension_numbers<[1], [0], [0], [1], [0, 0, 1, 1], [], []>} : vector<64x42xbf16>, vector<42x64xbf16>, vector<64x64xf32> -> vector<64x64xf32>
    %64 = arith.addf %58, %63 : vector<64x64xf32>
    %c0_106 = arith.constant 0 : index
    %c8 = arith.constant 8 : index
    %c0_107 = arith.constant 0 : index
    %c0_108 = arith.constant 0 : index
    %65 = vector.load %arg12[%c0_106, %c8, %c0_107, %c0_108] : memref<1x16x8x42xbf16, #tpu.memory_space<vmem>>, vector<1x8x8x42xbf16>
    %66 = vector.shape_cast %65 : vector<1x8x8x42xbf16> to vector<64x42xbf16>
    %c8_109 = arith.constant 8 : index
    %c0_110 = arith.constant 0 : index
    %c0_111 = arith.constant 0 : index
    %67 = vector.load %arg2[%c8_109, %c0_110, %c0_111] : memref<9x42x64xbf16, #tpu.memory_space<vmem>>, vector<1x42x64xbf16>
    %68 = vector.shape_cast %67 : vector<1x42x64xbf16> to vector<42x64xbf16>
    %cst_112 = arith.constant dense<0.000000e+00> : vector<64x64xf32>
    %69 = tpu.matmul %66, %68, %cst_112 {dimension_numbers = #tpu.dot_dimension_numbers<[1], [0], [0], [1], [0, 0, 1, 1], [], []>} : vector<64x42xbf16>, vector<42x64xbf16>, vector<64x64xf32> -> vector<64x64xf32>
    %70 = arith.addf %64, %69 : vector<64x64xf32>
    %c0_113 = arith.constant 0 : index
    %c0_114 = arith.constant 0 : index
    %71 = vector.load %arg3[%c0_113, %c0_114] : memref<1x64xf32, #tpu.memory_space<vmem>>, vector<1x64xf32>
    %72 = vector.broadcast %71 : vector<1x64xf32> to vector<64x64xf32>
    %73 = arith.addf %70, %72 : vector<64x64xf32>
    %cst_115 = arith.constant 0.000000e+00 : f32
    %74 = vector.broadcast %cst_115 : f32 to vector<64x64xf32>
    %75 = arith.cmpf oge, %73, %74 : vector<64x64xf32>
    %cst_116 = arith.constant 0.00999999977 : f32
    %76 = vector.broadcast %cst_116 : f32 to vector<64x64xf32>
    %77 = arith.mulf %76, %73 : vector<64x64xf32>
    %78 = arith.select %75, %73, %77 : vector<64x64xi1>, vector<64x64xf32>
    %79 = vector.shape_cast %78 : vector<64x64xf32> to vector<1x8x8x64xf32>
    %cst_117 = arith.constant 0.000000e+00 : bf16
    %80 = vector.broadcast %cst_117 : bf16 to vector<1x8x12x64xbf16>
    %c0_118 = arith.constant 0 : index
    %c0_119 = arith.constant 0 : index
    %c0_120 = arith.constant 0 : index
    %c0_121 = arith.constant 0 : index
    %81 = vector.load %arg13[%c0_118, %c0_119, %c0_120, %c0_121] : memref<1x8x12x64xbf16, #tpu.memory_space<vmem>>, vector<1x8x12x64xbf16>
    tpu.vector_store %arg13[%c0_118, %c0_119, %c0_120, %c0_121], %80 {strides = array<i32>} : memref<1x8x12x64xbf16, #tpu.memory_space<vmem>>, vector<1x8x12x64xbf16>,
    %82 = arith.truncf %79 : vector<1x8x8x64xf32> to vector<1x8x8x64xbf16>
    %c0_122 = arith.constant 0 : index
    %c0_123 = arith.constant 0 : index
    %c2_124 = arith.constant 2 : index
    %c0_125 = arith.constant 0 : index
    %83 = vector.load %arg13[%c0_122, %c0_123, %c2_124, %c0_125] : memref<1x8x12x64xbf16, #tpu.memory_space<vmem>>, vector<1x8x8x64xbf16>
    tpu.vector_store %arg13[%c0_122, %c0_123, %c2_124, %c0_125], %82 {strides = array<i32>} : memref<1x8x12x64xbf16, #tpu.memory_space<vmem>>, vector<1x8x8x64xbf16>,
    %c0_126 = arith.constant 0 : index
    %c0_127 = arith.constant 0 : index
    %c0_128 = arith.constant 0 : index
    %c0_129 = arith.constant 0 : index
    %84 = vector.load %arg13[%c0_126, %c0_127, %c0_128, %c0_129] : memref<1x8x12x64xbf16, #tpu.memory_space<vmem>>, vector<1x8x8x64xbf16>
    %c0_130 = arith.constant 0 : index
    %c0_131 = arith.constant 0 : index
    %c1_132 = arith.constant 1 : index
    %c0_133 = arith.constant 0 : index
    %85 = vector.load %arg13[%c0_130, %c0_131, %c1_132, %c0_133] : memref<1x8x12x64xbf16, #tpu.memory_space<vmem>>, vector<1x8x8x64xbf16>
    %c0_134 = arith.constant 0 : index
    %c0_135 = arith.constant 0 : index
    %c2_136 = arith.constant 2 : index
    %c0_137 = arith.constant 0 : index
    %86 = vector.load %arg13[%c0_134, %c0_135, %c2_136, %c0_137] : memref<1x8x12x64xbf16, #tpu.memory_space<vmem>>, vector<1x8x8x64xbf16>
    %c0_138 = arith.constant 0 : index
    %c0_139 = arith.constant 0 : index
    %c3_140 = arith.constant 3 : index
    %c0_141 = arith.constant 0 : index
    %87 = vector.load %arg13[%c0_138, %c0_139, %c3_140, %c0_141] : memref<1x8x12x64xbf16, #tpu.memory_space<vmem>>, vector<1x8x8x64xbf16>
    %c0_142 = arith.constant 0 : index
    %c0_143 = arith.constant 0 : index
    %c4_144 = arith.constant 4 : index
    %c0_145 = arith.constant 0 : index
    %88 = vector.load %arg13[%c0_142, %c0_143, %c4_144, %c0_145] : memref<1x8x12x64xbf16, #tpu.memory_space<vmem>>, vector<1x8x8x64xbf16>
    %89 = tpu.concatenate %84, %85, %86, %87, %88 in 3 : vector<1x8x8x64xbf16>, vector<1x8x8x64xbf16>, vector<1x8x8x64xbf16>, vector<1x8x8x64xbf16>, vector<1x8x8x64xbf16> -> vector<1x8x8x320xbf16>
    %cst_146 = arith.constant 0.000000e+00 : bf16
    %90 = vector.broadcast %cst_146 : bf16 to vector<1x14x8x320xbf16>
    %c0_147 = arith.constant 0 : index
    %c0_148 = arith.constant 0 : index
    %c0_149 = arith.constant 0 : index
    %c0_150 = arith.constant 0 : index
    %91 = vector.load %arg14[%c0_147, %c0_148, %c0_149, %c0_150] : memref<1x14x8x320xbf16, #tpu.memory_space<vmem>>, vector<1x14x8x320xbf16>
    tpu.vector_store %arg14[%c0_147, %c0_148, %c0_149, %c0_150], %90 {strides = array<i32>} : memref<1x14x8x320xbf16, #tpu.memory_space<vmem>>, vector<1x14x8x320xbf16>,
    %c0_151 = arith.constant 0 : index
    %c3_152 = arith.constant 3 : index
    %c0_153 = arith.constant 0 : index
    %c0_154 = arith.constant 0 : index
    %92 = vector.load %arg14[%c0_151, %c3_152, %c0_153, %c0_154] : memref<1x14x8x320xbf16, #tpu.memory_space<vmem>>, vector<1x8x8x320xbf16>
    tpu.vector_store %arg14[%c0_151, %c3_152, %c0_153, %c0_154], %89 {strides = array<i32>} : memref<1x14x8x320xbf16, #tpu.memory_space<vmem>>, vector<1x8x8x320xbf16>,
    %cst_155 = arith.constant 0.000000e+00 : f32
    %93 = vector.broadcast %cst_155 : f32 to vector<64x64xf32>
    %c0_156 = arith.constant 0 : index
    %c0_157 = arith.constant 0 : index
    %c0_158 = arith.constant 0 : index
    %c0_159 = arith.constant 0 : index
    %94 = vector.load %arg14[%c0_156, %c0_157, %c0_158, %c0_159] : memref<1x14x8x320xbf16, #tpu.memory_space<vmem>>, vector<1x8x8x320xbf16>
    %95 = vector.shape_cast %94 : vector<1x8x8x320xbf16> to vector<64x320xbf16>
    %c0_160 = arith.constant 0 : index
    %c0_161 = arith.constant 0 : index
    %c0_162 = arith.constant 0 : index
    %96 = vector.load %arg4[%c0_160, %c0_161, %c0_162] : memref<7x320x64xbf16, #tpu.memory_space<vmem>>, vector<1x320x64xbf16>
    %97 = vector.shape_cast %96 : vector<1x320x64xbf16> to vector<320x64xbf16>
    %cst_163 = arith.constant dense<0.000000e+00> : vector<64x64xf32>
    %98 = tpu.matmul %95, %97, %cst_163 {dimension_numbers = #tpu.dot_dimension_numbers<[1], [0], [0], [1], [0, 0, 1, 1], [], []>} : vector<64x320xbf16>, vector<320x64xbf16>, vector<64x64xf32> -> vector<64x64xf32>
    %99 = arith.addf %93, %98 : vector<64x64xf32>
    %c0_164 = arith.constant 0 : index
    %c1_165 = arith.constant 1 : index
    %c0_166 = arith.constant 0 : index
    %c0_167 = arith.constant 0 : index
    %100 = vector.load %arg14[%c0_164, %c1_165, %c0_166, %c0_167] : memref<1x14x8x320xbf16, #tpu.memory_space<vmem>>, vector<1x8x8x320xbf16>
    %101 = vector.shape_cast %100 : vector<1x8x8x320xbf16> to vector<64x320xbf16>
    %c1_168 = arith.constant 1 : index
    %c0_169 = arith.constant 0 : index
    %c0_170 = arith.constant 0 : index
    %102 = vector.load %arg4[%c1_168, %c0_169, %c0_170] : memref<7x320x64xbf16, #tpu.memory_space<vmem>>, vector<1x320x64xbf16>
    %103 = vector.shape_cast %102 : vector<1x320x64xbf16> to vector<320x64xbf16>
    %cst_171 = arith.constant dense<0.000000e+00> : vector<64x64xf32>
    %104 = tpu.matmul %101, %103, %cst_171 {dimension_numbers = #tpu.dot_dimension_numbers<[1], [0], [0], [1], [0, 0, 1, 1], [], []>} : vector<64x320xbf16>, vector<320x64xbf16>, vector<64x64xf32> -> vector<64x64xf32>
    %105 = arith.addf %99, %104 : vector<64x64xf32>
    %c0_172 = arith.constant 0 : index
    %c2_173 = arith.constant 2 : index
    %c0_174 = arith.constant 0 : index
    %c0_175 = arith.constant 0 : index
    %106 = vector.load %arg14[%c0_172, %c2_173, %c0_174, %c0_175] : memref<1x14x8x320xbf16, #tpu.memory_space<vmem>>, vector<1x8x8x320xbf16>
    %107 = vector.shape_cast %106 : vector<1x8x8x320xbf16> to vector<64x320xbf16>
    %c2_176 = arith.constant 2 : index
    %c0_177 = arith.constant 0 : index
    %c0_178 = arith.constant 0 : index
    %108 = vector.load %arg4[%c2_176, %c0_177, %c0_178] : memref<7x320x64xbf16, #tpu.memory_space<vmem>>, vector<1x320x64xbf16>
    %109 = vector.shape_cast %108 : vector<1x320x64xbf16> to vector<320x64xbf16>
    %cst_179 = arith.constant dense<0.000000e+00> : vector<64x64xf32>
    %110 = tpu.matmul %107, %109, %cst_179 {dimension_numbers = #tpu.dot_dimension_numbers<[1], [0], [0], [1], [0, 0, 1, 1], [], []>} : vector<64x320xbf16>, vector<320x64xbf16>, vector<64x64xf32> -> vector<64x64xf32>
    %111 = arith.addf %105, %110 : vector<64x64xf32>
    %c0_180 = arith.constant 0 : index
    %c3_181 = arith.constant 3 : index
    %c0_182 = arith.constant 0 : index
    %c0_183 = arith.constant 0 : index
    %112 = vector.load %arg14[%c0_180, %c3_181, %c0_182, %c0_183] : memref<1x14x8x320xbf16, #tpu.memory_space<vmem>>, vector<1x8x8x320xbf16>
    %113 = vector.shape_cast %112 : vector<1x8x8x320xbf16> to vector<64x320xbf16>
    %c3_184 = arith.constant 3 : index
    %c0_185 = arith.constant 0 : index
    %c0_186 = arith.constant 0 : index
    %114 = vector.load %arg4[%c3_184, %c0_185, %c0_186] : memref<7x320x64xbf16, #tpu.memory_space<vmem>>, vector<1x320x64xbf16>
    %115 = vector.shape_cast %114 : vector<1x320x64xbf16> to vector<320x64xbf16>
    %cst_187 = arith.constant dense<0.000000e+00> : vector<64x64xf32>
    %116 = tpu.matmul %113, %115, %cst_187 {dimension_numbers = #tpu.dot_dimension_numbers<[1], [0], [0], [1], [0, 0, 1, 1], [], []>} : vector<64x320xbf16>, vector<320x64xbf16>, vector<64x64xf32> -> vector<64x64xf32>
    %117 = arith.addf %111, %116 : vector<64x64xf32>
    %c0_188 = arith.constant 0 : index
    %c4_189 = arith.constant 4 : index
    %c0_190 = arith.constant 0 : index
    %c0_191 = arith.constant 0 : index
    %118 = vector.load %arg14[%c0_188, %c4_189, %c0_190, %c0_191] : memref<1x14x8x320xbf16, #tpu.memory_space<vmem>>, vector<1x8x8x320xbf16>
    %119 = vector.shape_cast %118 : vector<1x8x8x320xbf16> to vector<64x320xbf16>
    %c4_192 = arith.constant 4 : index
    %c0_193 = arith.constant 0 : index
    %c0_194 = arith.constant 0 : index
    %120 = vector.load %arg4[%c4_192, %c0_193, %c0_194] : memref<7x320x64xbf16, #tpu.memory_space<vmem>>, vector<1x320x64xbf16>
    %121 = vector.shape_cast %120 : vector<1x320x64xbf16> to vector<320x64xbf16>
    %cst_195 = arith.constant dense<0.000000e+00> : vector<64x64xf32>
    %122 = tpu.matmul %119, %121, %cst_195 {dimension_numbers = #tpu.dot_dimension_numbers<[1], [0], [0], [1], [0, 0, 1, 1], [], []>} : vector<64x320xbf16>, vector<320x64xbf16>, vector<64x64xf32> -> vector<64x64xf32>
    %123 = arith.addf %117, %122 : vector<64x64xf32>
    %c0_196 = arith.constant 0 : index
    %c5_197 = arith.constant 5 : index
    %c0_198 = arith.constant 0 : index
    %c0_199 = arith.constant 0 : index
    %124 = vector.load %arg14[%c0_196, %c5_197, %c0_198, %c0_199] : memref<1x14x8x320xbf16, #tpu.memory_space<vmem>>, vector<1x8x8x320xbf16>
    %125 = vector.shape_cast %124 : vector<1x8x8x320xbf16> to vector<64x320xbf16>
    %c5_200 = arith.constant 5 : index
    %c0_201 = arith.constant 0 : index
    %c0_202 = arith.constant 0 : index
    %126 = vector.load %arg4[%c5_200, %c0_201, %c0_202] : memref<7x320x64xbf16, #tpu.memory_space<vmem>>, vector<1x320x64xbf16>
    %127 = vector.shape_cast %126 : vector<1x320x64xbf16> to vector<320x64xbf16>
    %cst_203 = arith.constant dense<0.000000e+00> : vector<64x64xf32>
    %128 = tpu.matmul %125, %127, %cst_203 {dimension_numbers = #tpu.dot_dimension_numbers<[1], [0], [0], [1], [0, 0, 1, 1], [], []>} : vector<64x320xbf16>, vector<320x64xbf16>, vector<64x64xf32> -> vector<64x64xf32>
    %129 = arith.addf %123, %128 : vector<64x64xf32>
    %c0_204 = arith.constant 0 : index
    %c6_205 = arith.constant 6 : index
    %c0_206 = arith.constant 0 : index
    %c0_207 = arith.constant 0 : index
    %130 = vector.load %arg14[%c0_204, %c6_205, %c0_206, %c0_207] : memref<1x14x8x320xbf16, #tpu.memory_space<vmem>>, vector<1x8x8x320xbf16>
    %131 = vector.shape_cast %130 : vector<1x8x8x320xbf16> to vector<64x320xbf16>
    %c6_208 = arith.constant 6 : index
    %c0_209 = arith.constant 0 : index
    %c0_210 = arith.constant 0 : index
    %132 = vector.load %arg4[%c6_208, %c0_209, %c0_210] : memref<7x320x64xbf16, #tpu.memory_space<vmem>>, vector<1x320x64xbf16>
    %133 = vector.shape_cast %132 : vector<1x320x64xbf16> to vector<320x64xbf16>
    %cst_211 = arith.constant dense<0.000000e+00> : vector<64x64xf32>
    %134 = tpu.matmul %131, %133, %cst_211 {dimension_numbers = #tpu.dot_dimension_numbers<[1], [0], [0], [1], [0, 0, 1, 1], [], []>} : vector<64x320xbf16>, vector<320x64xbf16>, vector<64x64xf32> -> vector<64x64xf32>
    %135 = arith.addf %129, %134 : vector<64x64xf32>
    %c0_212 = arith.constant 0 : index
    %c0_213 = arith.constant 0 : index
    %136 = vector.load %arg5[%c0_212, %c0_213] : memref<1x64xf32, #tpu.memory_space<vmem>>, vector<1x64xf32>
    %137 = vector.broadcast %136 : vector<1x64xf32> to vector<64x64xf32>
    %138 = arith.addf %135, %137 : vector<64x64xf32>
    %cst_214 = arith.constant 0.000000e+00 : f32
    %139 = vector.broadcast %cst_214 : f32 to vector<64x64xf32>
    %140 = arith.cmpf oge, %138, %139 : vector<64x64xf32>
    %cst_215 = arith.constant 0.00999999977 : f32
    %141 = vector.broadcast %cst_215 : f32 to vector<64x64xf32>
    %142 = arith.mulf %141, %138 : vector<64x64xf32>
    %143 = arith.select %140, %138, %142 : vector<64x64xi1>, vector<64x64xf32>
    %144 = vector.shape_cast %143 : vector<64x64xf32> to vector<1x8x8x64xf32>
    %cst_216 = arith.constant 0.000000e+00 : bf16
    %145 = vector.broadcast %cst_216 : bf16 to vector<1x8x10x64xbf16>
    %c0_217 = arith.constant 0 : index
    %c0_218 = arith.constant 0 : index
    %c0_219 = arith.constant 0 : index
    %c0_220 = arith.constant 0 : index
    %146 = vector.load %arg15[%c0_217, %c0_218, %c0_219, %c0_220] : memref<1x8x10x64xbf16, #tpu.memory_space<vmem>>, vector<1x8x10x64xbf16>
    tpu.vector_store %arg15[%c0_217, %c0_218, %c0_219, %c0_220], %145 {strides = array<i32>} : memref<1x8x10x64xbf16, #tpu.memory_space<vmem>>, vector<1x8x10x64xbf16>,
    %147 = arith.truncf %144 : vector<1x8x8x64xf32> to vector<1x8x8x64xbf16>
    %c0_221 = arith.constant 0 : index
    %c0_222 = arith.constant 0 : index
    %c1_223 = arith.constant 1 : index
    %c0_224 = arith.constant 0 : index
    %148 = vector.load %arg15[%c0_221, %c0_222, %c1_223, %c0_224] : memref<1x8x10x64xbf16, #tpu.memory_space<vmem>>, vector<1x8x8x64xbf16>
    tpu.vector_store %arg15[%c0_221, %c0_222, %c1_223, %c0_224], %147 {strides = array<i32>} : memref<1x8x10x64xbf16, #tpu.memory_space<vmem>>, vector<1x8x8x64xbf16>,
    %c0_225 = arith.constant 0 : index
    %c0_226 = arith.constant 0 : index
    %c0_227 = arith.constant 0 : index
    %c0_228 = arith.constant 0 : index
    %149 = vector.load %arg15[%c0_225, %c0_226, %c0_227, %c0_228] : memref<1x8x10x64xbf16, #tpu.memory_space<vmem>>, vector<1x8x8x64xbf16>
    %c0_229 = arith.constant 0 : index
    %c0_230 = arith.constant 0 : index
    %c1_231 = arith.constant 1 : index
    %c0_232 = arith.constant 0 : index
    %150 = vector.load %arg15[%c0_229, %c0_230, %c1_231, %c0_232] : memref<1x8x10x64xbf16, #tpu.memory_space<vmem>>, vector<1x8x8x64xbf16>
    %c0_233 = arith.constant 0 : index
    %c0_234 = arith.constant 0 : index
    %c2_235 = arith.constant 2 : index
    %c0_236 = arith.constant 0 : index
    %151 = vector.load %arg15[%c0_233, %c0_234, %c2_235, %c0_236] : memref<1x8x10x64xbf16, #tpu.memory_space<vmem>>, vector<1x8x8x64xbf16>
    %152 = tpu.concatenate %149, %150, %151 in 3 : vector<1x8x8x64xbf16>, vector<1x8x8x64xbf16>, vector<1x8x8x64xbf16> -> vector<1x8x8x192xbf16>
    %cst_237 = arith.constant 0.000000e+00 : bf16
    %153 = vector.broadcast %cst_237 : bf16 to vector<1x12x8x192xbf16>
    %c0_238 = arith.constant 0 : index
    %c0_239 = arith.constant 0 : index
    %c0_240 = arith.constant 0 : index
    %c0_241 = arith.constant 0 : index
    %154 = vector.load %arg16[%c0_238, %c0_239, %c0_240, %c0_241] : memref<1x12x8x192xbf16, #tpu.memory_space<vmem>>, vector<1x12x8x192xbf16>
    tpu.vector_store %arg16[%c0_238, %c0_239, %c0_240, %c0_241], %153 {strides = array<i32>} : memref<1x12x8x192xbf16, #tpu.memory_space<vmem>>, vector<1x12x8x192xbf16>,
    %c0_242 = arith.constant 0 : index
    %c2_243 = arith.constant 2 : index
    %c0_244 = arith.constant 0 : index
    %c0_245 = arith.constant 0 : index
    %155 = vector.load %arg16[%c0_242, %c2_243, %c0_244, %c0_245] : memref<1x12x8x192xbf16, #tpu.memory_space<vmem>>, vector<1x8x8x192xbf16>
    tpu.vector_store %arg16[%c0_242, %c2_243, %c0_244, %c0_245], %152 {strides = array<i32>} : memref<1x12x8x192xbf16, #tpu.memory_space<vmem>>, vector<1x8x8x192xbf16>,
    %cst_246 = arith.constant 0.000000e+00 : f32
    %156 = vector.broadcast %cst_246 : f32 to vector<64x64xf32>
    %c0_247 = arith.constant 0 : index
    %c0_248 = arith.constant 0 : index
    %c0_249 = arith.constant 0 : index
    %c0_250 = arith.constant 0 : index
    %157 = vector.load %arg16[%c0_247, %c0_248, %c0_249, %c0_250] : memref<1x12x8x192xbf16, #tpu.memory_space<vmem>>, vector<1x8x8x192xbf16>
    %158 = vector.shape_cast %157 : vector<1x8x8x192xbf16> to vector<64x192xbf16>
    %c0_251 = arith.constant 0 : index
    %c0_252 = arith.constant 0 : index
    %c0_253 = arith.constant 0 : index
    %159 = vector.load %arg6[%c0_251, %c0_252, %c0_253] : memref<5x192x64xbf16, #tpu.memory_space<vmem>>, vector<1x192x64xbf16>
    %160 = vector.shape_cast %159 : vector<1x192x64xbf16> to vector<192x64xbf16>
    %cst_254 = arith.constant dense<0.000000e+00> : vector<64x64xf32>
    %161 = tpu.matmul %158, %160, %cst_254 {dimension_numbers = #tpu.dot_dimension_numbers<[1], [0], [0], [1], [0, 0, 1, 1], [], []>} : vector<64x192xbf16>, vector<192x64xbf16>, vector<64x64xf32> -> vector<64x64xf32>
    %162 = arith.addf %156, %161 : vector<64x64xf32>
    %c0_255 = arith.constant 0 : index
    %c1_256 = arith.constant 1 : index
    %c0_257 = arith.constant 0 : index
    %c0_258 = arith.constant 0 : index
    %163 = vector.load %arg16[%c0_255, %c1_256, %c0_257, %c0_258] : memref<1x12x8x192xbf16, #tpu.memory_space<vmem>>, vector<1x8x8x192xbf16>
    %164 = vector.shape_cast %163 : vector<1x8x8x192xbf16> to vector<64x192xbf16>
    %c1_259 = arith.constant 1 : index
    %c0_260 = arith.constant 0 : index
    %c0_261 = arith.constant 0 : index
    %165 = vector.load %arg6[%c1_259, %c0_260, %c0_261] : memref<5x192x64xbf16, #tpu.memory_space<vmem>>, vector<1x192x64xbf16>
    %166 = vector.shape_cast %165 : vector<1x192x64xbf16> to vector<192x64xbf16>
    %cst_262 = arith.constant dense<0.000000e+00> : vector<64x64xf32>
    %167 = tpu.matmul %164, %166, %cst_262 {dimension_numbers = #tpu.dot_dimension_numbers<[1], [0], [0], [1], [0, 0, 1, 1], [], []>} : vector<64x192xbf16>, vector<192x64xbf16>, vector<64x64xf32> -> vector<64x64xf32>
    %168 = arith.addf %162, %167 : vector<64x64xf32>
    %c0_263 = arith.constant 0 : index
    %c2_264 = arith.constant 2 : index
    %c0_265 = arith.constant 0 : index
    %c0_266 = arith.constant 0 : index
    %169 = vector.load %arg16[%c0_263, %c2_264, %c0_265, %c0_266] : memref<1x12x8x192xbf16, #tpu.memory_space<vmem>>, vector<1x8x8x192xbf16>
    %170 = vector.shape_cast %169 : vector<1x8x8x192xbf16> to vector<64x192xbf16>
    %c2_267 = arith.constant 2 : index
    %c0_268 = arith.constant 0 : index
    %c0_269 = arith.constant 0 : index
    %171 = vector.load %arg6[%c2_267, %c0_268, %c0_269] : memref<5x192x64xbf16, #tpu.memory_space<vmem>>, vector<1x192x64xbf16>
    %172 = vector.shape_cast %171 : vector<1x192x64xbf16> to vector<192x64xbf16>
    %cst_270 = arith.constant dense<0.000000e+00> : vector<64x64xf32>
    %173 = tpu.matmul %170, %172, %cst_270 {dimension_numbers = #tpu.dot_dimension_numbers<[1], [0], [0], [1], [0, 0, 1, 1], [], []>} : vector<64x192xbf16>, vector<192x64xbf16>, vector<64x64xf32> -> vector<64x64xf32>
    %174 = arith.addf %168, %173 : vector<64x64xf32>
    %c0_271 = arith.constant 0 : index
    %c3_272 = arith.constant 3 : index
    %c0_273 = arith.constant 0 : index
    %c0_274 = arith.constant 0 : index
    %175 = vector.load %arg16[%c0_271, %c3_272, %c0_273, %c0_274] : memref<1x12x8x192xbf16, #tpu.memory_space<vmem>>, vector<1x8x8x192xbf16>
    %176 = vector.shape_cast %175 : vector<1x8x8x192xbf16> to vector<64x192xbf16>
    %c3_275 = arith.constant 3 : index
    %c0_276 = arith.constant 0 : index
    %c0_277 = arith.constant 0 : index
    %177 = vector.load %arg6[%c3_275, %c0_276, %c0_277] : memref<5x192x64xbf16, #tpu.memory_space<vmem>>, vector<1x192x64xbf16>
    %178 = vector.shape_cast %177 : vector<1x192x64xbf16> to vector<192x64xbf16>
    %cst_278 = arith.constant dense<0.000000e+00> : vector<64x64xf32>
    %179 = tpu.matmul %176, %178, %cst_278 {dimension_numbers = #tpu.dot_dimension_numbers<[1], [0], [0], [1], [0, 0, 1, 1], [], []>} : vector<64x192xbf16>, vector<192x64xbf16>, vector<64x64xf32> -> vector<64x64xf32>
    %180 = arith.addf %174, %179 : vector<64x64xf32>
    %c0_279 = arith.constant 0 : index
    %c4_280 = arith.constant 4 : index
    %c0_281 = arith.constant 0 : index
    %c0_282 = arith.constant 0 : index
    %181 = vector.load %arg16[%c0_279, %c4_280, %c0_281, %c0_282] : memref<1x12x8x192xbf16, #tpu.memory_space<vmem>>, vector<1x8x8x192xbf16>
    %182 = vector.shape_cast %181 : vector<1x8x8x192xbf16> to vector<64x192xbf16>
    %c4_283 = arith.constant 4 : index
    %c0_284 = arith.constant 0 : index
    %c0_285 = arith.constant 0 : index
    %183 = vector.load %arg6[%c4_283, %c0_284, %c0_285] : memref<5x192x64xbf16, #tpu.memory_space<vmem>>, vector<1x192x64xbf16>
    %184 = vector.shape_cast %183 : vector<1x192x64xbf16> to vector<192x64xbf16>
    %cst_286 = arith.constant dense<0.000000e+00> : vector<64x64xf32>
    %185 = tpu.matmul %182, %184, %cst_286 {dimension_numbers = #tpu.dot_dimension_numbers<[1], [0], [0], [1], [0, 0, 1, 1], [], []>} : vector<64x192xbf16>, vector<192x64xbf16>, vector<64x64xf32> -> vector<64x64xf32>
    %186 = arith.addf %180, %185 : vector<64x64xf32>
    %c0_287 = arith.constant 0 : index
    %c0_288 = arith.constant 0 : index
    %187 = vector.load %arg7[%c0_287, %c0_288] : memref<1x64xf32, #tpu.memory_space<vmem>>, vector<1x64xf32>
    %188 = vector.broadcast %187 : vector<1x64xf32> to vector<64x64xf32>
    %189 = arith.addf %186, %188 : vector<64x64xf32>
    %cst_289 = arith.constant 0.000000e+00 : f32
    %190 = vector.broadcast %cst_289 : f32 to vector<64x64xf32>
    %191 = arith.cmpf oge, %189, %190 : vector<64x64xf32>
    %cst_290 = arith.constant 0.00999999977 : f32
    %192 = vector.broadcast %cst_290 : f32 to vector<64x64xf32>
    %193 = arith.mulf %192, %189 : vector<64x64xf32>
    %194 = arith.select %191, %189, %193 : vector<64x64xi1>, vector<64x64xf32>
    %195 = vector.shape_cast %194 : vector<64x64xf32> to vector<1x8x8x64xf32>
    %cst_291 = arith.constant 0.000000e+00 : bf16
    %196 = vector.broadcast %cst_291 : bf16 to vector<1x8x10x64xbf16>
    %c0_292 = arith.constant 0 : index
    %c0_293 = arith.constant 0 : index
    %c0_294 = arith.constant 0 : index
    %c0_295 = arith.constant 0 : index
    %197 = vector.load %arg17[%c0_292, %c0_293, %c0_294, %c0_295] : memref<1x8x10x64xbf16, #tpu.memory_space<vmem>>, vector<1x8x10x64xbf16>
    tpu.vector_store %arg17[%c0_292, %c0_293, %c0_294, %c0_295], %196 {strides = array<i32>} : memref<1x8x10x64xbf16, #tpu.memory_space<vmem>>, vector<1x8x10x64xbf16>,
    %198 = arith.truncf %195 : vector<1x8x8x64xf32> to vector<1x8x8x64xbf16>
    %c0_296 = arith.constant 0 : index
    %c0_297 = arith.constant 0 : index
    %c1_298 = arith.constant 1 : index
    %c0_299 = arith.constant 0 : index
    %199 = vector.load %arg17[%c0_296, %c0_297, %c1_298, %c0_299] : memref<1x8x10x64xbf16, #tpu.memory_space<vmem>>, vector<1x8x8x64xbf16>
    tpu.vector_store %arg17[%c0_296, %c0_297, %c1_298, %c0_299], %198 {strides = array<i32>} : memref<1x8x10x64xbf16, #tpu.memory_space<vmem>>, vector<1x8x8x64xbf16>,
    %c0_300 = arith.constant 0 : index
    %c0_301 = arith.constant 0 : index
    %c0_302 = arith.constant 0 : index
    %c0_303 = arith.constant 0 : index
    %200 = vector.load %arg17[%c0_300, %c0_301, %c0_302, %c0_303] : memref<1x8x10x64xbf16, #tpu.memory_space<vmem>>, vector<1x8x8x64xbf16>
    %c0_304 = arith.constant 0 : index
    %c0_305 = arith.constant 0 : index
    %c1_306 = arith.constant 1 : index
    %c0_307 = arith.constant 0 : index
    %201 = vector.load %arg17[%c0_304, %c0_305, %c1_306, %c0_307] : memref<1x8x10x64xbf16, #tpu.memory_space<vmem>>, vector<1x8x8x64xbf16>
    %c0_308 = arith.constant 0 : index
    %c0_309 = arith.constant 0 : index
    %c2_310 = arith.constant 2 : index
    %c0_311 = arith.constant 0 : index
    %202 = vector.load %arg17[%c0_308, %c0_309, %c2_310, %c0_311] : memref<1x8x10x64xbf16, #tpu.memory_space<vmem>>, vector<1x8x8x64xbf16>
    %203 = tpu.concatenate %200, %201, %202 in 3 : vector<1x8x8x64xbf16>, vector<1x8x8x64xbf16>, vector<1x8x8x64xbf16> -> vector<1x8x8x192xbf16>
    %cst_312 = arith.constant 0.000000e+00 : bf16
    %204 = vector.broadcast %cst_312 : bf16 to vector<1x10x8x192xbf16>
    %c0_313 = arith.constant 0 : index
    %c0_314 = arith.constant 0 : index
    %c0_315 = arith.constant 0 : index
    %c0_316 = arith.constant 0 : index
    %205 = vector.load %arg18[%c0_313, %c0_314, %c0_315, %c0_316] : memref<1x10x8x192xbf16, #tpu.memory_space<vmem>>, vector<1x10x8x192xbf16>
    tpu.vector_store %arg18[%c0_313, %c0_314, %c0_315, %c0_316], %204 {strides = array<i32>} : memref<1x10x8x192xbf16, #tpu.memory_space<vmem>>, vector<1x10x8x192xbf16>,
    %c0_317 = arith.constant 0 : index
    %c1_318 = arith.constant 1 : index
    %c0_319 = arith.constant 0 : index
    %c0_320 = arith.constant 0 : index
    %206 = vector.load %arg18[%c0_317, %c1_318, %c0_319, %c0_320] : memref<1x10x8x192xbf16, #tpu.memory_space<vmem>>, vector<1x8x8x192xbf16>
    tpu.vector_store %arg18[%c0_317, %c1_318, %c0_319, %c0_320], %203 {strides = array<i32>} : memref<1x10x8x192xbf16, #tpu.memory_space<vmem>>, vector<1x8x8x192xbf16>,
    %cst_321 = arith.constant 0.000000e+00 : f32
    %207 = vector.broadcast %cst_321 : f32 to vector<64x128xf32>
    %c0_322 = arith.constant 0 : index
    %c0_323 = arith.constant 0 : index
    %c0_324 = arith.constant 0 : index
    %c0_325 = arith.constant 0 : index
    %208 = vector.load %arg18[%c0_322, %c0_323, %c0_324, %c0_325] : memref<1x10x8x192xbf16, #tpu.memory_space<vmem>>, vector<1x8x8x192xbf16>
    %209 = vector.shape_cast %208 : vector<1x8x8x192xbf16> to vector<64x192xbf16>
    %c0_326 = arith.constant 0 : index
    %c0_327 = arith.constant 0 : index
    %c0_328 = arith.constant 0 : index
    %210 = vector.load %arg8[%c0_326, %c0_327, %c0_328] : memref<3x192x128xbf16, #tpu.memory_space<vmem>>, vector<1x192x128xbf16>
    %211 = vector.shape_cast %210 : vector<1x192x128xbf16> to vector<192x128xbf16>
    %cst_329 = arith.constant dense<0.000000e+00> : vector<64x128xf32>
    %212 = tpu.matmul %209, %211, %cst_329 {dimension_numbers = #tpu.dot_dimension_numbers<[1], [0], [0], [1], [0, 0, 1, 1], [], []>} : vector<64x192xbf16>, vector<192x128xbf16>, vector<64x128xf32> -> vector<64x128xf32>
    %213 = arith.addf %207, %212 : vector<64x128xf32>
    %c0_330 = arith.constant 0 : index
    %c1_331 = arith.constant 1 : index
    %c0_332 = arith.constant 0 : index
    %c0_333 = arith.constant 0 : index
    %214 = vector.load %arg18[%c0_330, %c1_331, %c0_332, %c0_333] : memref<1x10x8x192xbf16, #tpu.memory_space<vmem>>, vector<1x8x8x192xbf16>
    %215 = vector.shape_cast %214 : vector<1x8x8x192xbf16> to vector<64x192xbf16>
    %c1_334 = arith.constant 1 : index
    %c0_335 = arith.constant 0 : index
    %c0_336 = arith.constant 0 : index
    %216 = vector.load %arg8[%c1_334, %c0_335, %c0_336] : memref<3x192x128xbf16, #tpu.memory_space<vmem>>, vector<1x192x128xbf16>
    %217 = vector.shape_cast %216 : vector<1x192x128xbf16> to vector<192x128xbf16>
    %cst_337 = arith.constant dense<0.000000e+00> : vector<64x128xf32>
    %218 = tpu.matmul %215, %217, %cst_337 {dimension_numbers = #tpu.dot_dimension_numbers<[1], [0], [0], [1], [0, 0, 1, 1], [], []>} : vector<64x192xbf16>, vector<192x128xbf16>, vector<64x128xf32> -> vector<64x128xf32>
    %219 = arith.addf %213, %218 : vector<64x128xf32>
    %c0_338 = arith.constant 0 : index
    %c2_339 = arith.constant 2 : index
    %c0_340 = arith.constant 0 : index
    %c0_341 = arith.constant 0 : index
    %220 = vector.load %arg18[%c0_338, %c2_339, %c0_340, %c0_341] : memref<1x10x8x192xbf16, #tpu.memory_space<vmem>>, vector<1x8x8x192xbf16>
    %221 = vector.shape_cast %220 : vector<1x8x8x192xbf16> to vector<64x192xbf16>
    %c2_342 = arith.constant 2 : index
    %c0_343 = arith.constant 0 : index
    %c0_344 = arith.constant 0 : index
    %222 = vector.load %arg8[%c2_342, %c0_343, %c0_344] : memref<3x192x128xbf16, #tpu.memory_space<vmem>>, vector<1x192x128xbf16>
    %223 = vector.shape_cast %222 : vector<1x192x128xbf16> to vector<192x128xbf16>
    %cst_345 = arith.constant dense<0.000000e+00> : vector<64x128xf32>
    %224 = tpu.matmul %221, %223, %cst_345 {dimension_numbers = #tpu.dot_dimension_numbers<[1], [0], [0], [1], [0, 0, 1, 1], [], []>} : vector<64x192xbf16>, vector<192x128xbf16>, vector<64x128xf32> -> vector<64x128xf32>
    %225 = arith.addf %219, %224 : vector<64x128xf32>
    %c0_346 = arith.constant 0 : index
    %c0_347 = arith.constant 0 : index
    %226 = vector.load %arg9[%c0_346, %c0_347] : memref<1x128xf32, #tpu.memory_space<vmem>>, vector<1x128xf32>
    %227 = vector.broadcast %226 : vector<1x128xf32> to vector<64x128xf32>
    %228 = arith.addf %225, %227 : vector<64x128xf32>
    %229 = tpu.iota {dimensions = array<i32: 1>} : vector<64x128xi32>
    %cst_348 = arith.constant -1.000000e+01 : f32
    %cst_349 = arith.constant 1.000000e+01 : f32
    %230 = vector.broadcast %cst_348 : f32 to vector<64x128xf32>
    %231 = arith.maximumf %230, %228 : vector<64x128xf32>
    %232 = vector.broadcast %cst_349 : f32 to vector<64x128xf32>
    %233 = arith.minimumf %232, %231 : vector<64x128xf32>
    %234 = math.exp %233 : vector<64x128xf32>
    %c10_i32 = arith.constant 10 : i32
    %235 = vector.broadcast %c10_i32 : i32 to vector<64x128xi32>
    %236 = arith.cmpi slt, %229, %235 : vector<64x128xi32>
    %237 = arith.select %236, %228, %234 : vector<64x128xi1>, vector<64x128xf32>
    %238 = vector.shape_cast %237 : vector<64x128xf32> to vector<1x8x8x128xf32>
    %c0_350 = arith.constant 0 : index
    %c0_351 = arith.constant 0 : index
    %c0_352 = arith.constant 0 : index
    %c0_353 = arith.constant 0 : index
    %239 = vector.load %arg10[%c0_350, %c0_351, %c0_352, %c0_353] : memref<1x8x8x128xf32, #tpu.memory_space<vmem>>, vector<1x8x8x128xf32>
    tpu.vector_store %arg10[%c0_350, %c0_351, %c0_352, %c0_353], %238 {strides = array<i32>} : memref<1x8x8x128xf32, #tpu.memory_space<vmem>>, vector<1x8x8x128xf32>,
    return
  }
  func.func @transform_0(%arg0: i32) -> (i32, i32, i32, i32) {
    %c0_i32 = arith.constant 0 : i32
    %c0_i32_0 = arith.constant 0 : i32
    %c0_i32_1 = arith.constant 0 : i32
    %c0_i32_2 = arith.constant 0 : i32
    return %arg0, %c0_i32, %c0_i32_0, %c0_i32_1 : i32, i32, i32, i32
  }
  func.func @transform_1(%arg0: i32) -> (i32, i32, i32) {
    %c0_i32 = arith.constant 0 : i32
    %c0_i32_0 = arith.constant 0 : i32
    %c0_i32_1 = arith.constant 0 : i32
    %c0_i32_2 = arith.constant 0 : i32
    return %c0_i32, %c0_i32_0, %c0_i32_1 : i32, i32, i32
  }
  func.func @transform_2(%arg0: i32) -> (i32, i32) {
    %c0_i32 = arith.constant 0 : i32
    %c0_i32_0 = arith.constant 0 : i32
    %c0_i32_1 = arith.constant 0 : i32
    return %c0_i32, %c0_i32_0 : i32, i32
  }
  func.func @transform_3(%arg0: i32) -> (i32, i32, i32) {
    %c0_i32 = arith.constant 0 : i32
    %c0_i32_0 = arith.constant 0 : i32
    %c0_i32_1 = arith.constant 0 : i32
    %c0_i32_2 = arith.constant 0 : i32
    return %c0_i32, %c0_i32_0, %c0_i32_1 : i32, i32, i32
  }
  func.func @transform_4(%arg0: i32) -> (i32, i32) {
    %c0_i32 = arith.constant 0 : i32
    %c0_i32_0 = arith.constant 0 : i32
    %c0_i32_1 = arith.constant 0 : i32
    return %c0_i32, %c0_i32_0 : i32, i32
  }
  func.func @transform_5(%arg0: i32) -> (i32, i32, i32) {
    %c0_i32 = arith.constant 0 : i32
    %c0_i32_0 = arith.constant 0 : i32
    %c0_i32_1 = arith.constant 0 : i32
    %c0_i32_2 = arith.constant 0 : i32
    return %c0_i32, %c0_i32_0, %c0_i32_1 : i32, i32, i32
  }
  func.func @transform_6(%arg0: i32) -> (i32, i32) {
    %c0_i32 = arith.constant 0 : i32
    %c0_i32_0 = arith.constant 0 : i32
    %c0_i32_1 = arith.constant 0 : i32
    return %c0_i32, %c0_i32_0 : i32, i32
  }
  func.func @transform_7(%arg0: i32) -> (i32, i32, i32) {
    %c0_i32 = arith.constant 0 : i32
    %c0_i32_0 = arith.constant 0 : i32
    %c0_i32_1 = arith.constant 0 : i32
    %c0_i32_2 = arith.constant 0 : i32
    return %c0_i32, %c0_i32_0, %c0_i32_1 : i32, i32, i32
  }
  func.func @transform_8(%arg0: i32) -> (i32, i32) {
    %c0_i32 = arith.constant 0 : i32
    %c0_i32_0 = arith.constant 0 : i32
    %c0_i32_1 = arith.constant 0 : i32
    return %c0_i32, %c0_i32_0 : i32, i32
  }
  func.func @transform_9(%arg0: i32) -> (i32, i32, i32, i32) {
    %c0_i32 = arith.constant 0 : i32
    %c0_i32_0 = arith.constant 0 : i32
    %c0_i32_1 = arith.constant 0 : i32
    %c0_i32_2 = arith.constant 0 : i32
    return %arg0, %c0_i32, %c0_i32_0, %c0_i32_1 : i32, i32, i32, i32
  }
}

</mosaic_0001>

<bundles_post_ra>
// kernel: pnet2d_forward.1
= control target key start
LH: loop header
LB: loop body
LE: loop exit
PB: predicated region body
PF: predicated region fallthrough
CT: control target
= control target key end

     0   :  { %s11042_s30 = smov 0   ;;  %s13570_s0 = inlined_call_operand.vmem [shape: f32[2,8,8,6], index: 0, kind: input, shape index: {}]   ;;  %s13571_s1 = inlined_call_operand.vmem [shape: bf16[9,42,64], index: 1, kind: input, shape index: {}]   ;;  %s13572_s2 = inlined_call_operand.vmem [shape: f32[1,64], index: 2, kind: input, shape index: {}]   ;;  %s13573_s3 = inlined_call_operand.vmem [shape: bf16[7,320,64], index: 3, kind: input, shape index: {}]   ;;  %s13574_s4 = inlined_call_operand.vmem [shape: f32[1,64], index: 4, kind: input, shape index: {}]   ;;  %s13575_s5 = inlined_call_operand.vmem [shape: bf16[5,192,64], index: 5, kind: input, shape index: {}]   ;;  %s13576_s6 = inlined_call_operand.vmem [shape: f32[1,64], index: 6, kind: input, shape index: {}]   ;;  %s13577_s7 = inlined_call_operand.vmem [shape: bf16[3,192,128], index: 7, kind: input, shape index: {}]   ;;  %s13578_s8 = inlined_call_operand.vmem [shape: f32[1,128], index: 8, kind: input, shape index: {}]   ;;  %s13579_s9 = inlined_call_operand.vmem [shape: f32[2,8,8,128], index: 9, kind: output, shape index: {}]  }
   0x1 LB: > { %s8614_s10 = sadd.s32 4294967295, %s10982_s30   ;;  %p8618_p0 = scmp.ge.s32.totalorder %s10982_s30, 1  ;;  %s10982_s30 = sphi %s11042_s30, %s19_s30  }
   0x2   : > { %p287_p1 = scmp.lt.s32.totalorder %s10982_s30, 3 }
   0x4   : > { %p288_p2 = pnand %p8618_p0, %p287_p1 }
   0x6   : > { %291 = sbr.rel (%p288_p2) target bundleno = 1900 (0x76c), region = 56 }
   0xb   : > { %p11050_p3 = scmp.lt.s32.totalorder %s8614_s10, 1  ;;  %vm342_vm0 = vcmask 44032   ;;  %vm344_vm1 = vcmask 43008   ;;  %v10984_v0 = vmov 0   ;;  %vm480_vm2 = vcmask 44033   ;;  %s10985_s16 = smov 24  }
   0xc   : > { %343 = vst.msk [vmem:[#allocation2] sm:$0xf] %vm342_vm0, %v10984_v0  ;;  %346 = vst.msk [vmem:[#allocation2 + $0x8] sm:$0xf] %vm342_vm0, %v10984_v0  ;;  %vm481_vm3 = vsmask.f32 7942 }
   0xd   : > { %345 = vst.msk [vmem:[#allocation2 + $0x4] sm:$0x7] %vm344_vm1, %v10984_v0  ;;  %347 = vst.msk [vmem:[#allocation2 + $0xc] sm:$0x7] %vm344_vm1, %v10984_v0  ;;  %s13600_s10 = smov (!%p11050_p3, %s8614_s10), 1  ;;  %vm486_vm4 = vcmask 41984  }
   0xe   : > { %348 = vst.msk [vmem:[#allocation2 + $0x10] sm:$0xf] %vm342_vm0, %v10984_v0  ;;  %350 = vst.msk [vmem:[#allocation2 + $0x18] sm:$0xf] %vm342_vm0, %v10984_v0  ;;  %s9788_s12 = sshll.u32 %s13600_s10, 6  ;;  %s10986_s17 = smov 12  }
   0xf   : > { %349 = vst.msk [vmem:[#allocation2 + $0x14] sm:$0x7] %vm344_vm1, %v10984_v0  ;;  %351 = vst.msk [vmem:[#allocation2 + $0x1c] sm:$0x7] %vm344_vm1, %v10984_v0  ;;  %s11097_s15 = scalar_lea.vmem %s13570_s0, %s9788_s12  ;;  %vm487_vm5 = vsmask.f32 1280  ;;  %s13545_s11 = scalar_lea.vmem %s13579_s9, %s9788_s12 }
  0x10   : > { %352 = vst.msk [vmem:[#allocation2 + $0x20] sm:$0xf] %vm342_vm0, %v10984_v0  ;;  %354 = vst.msk [vmem:[#allocation2 + $0x28] sm:$0xf] %vm342_vm0, %v10984_v0  ;;  %v334_v1 = vld [vmem:[%s11097_s15] sm:$0xff]  ;;  %v335_v2 = vld [vmem:[%s11097_s15 + $0x8] sm:$0xff] }
  0x11   : > { %353 = vst.msk [vmem:[#allocation2 + $0x24] sm:$0x7] %vm344_vm1, %v10984_v0  ;;  %355 = vst.msk [vmem:[#allocation2 + $0x2c] sm:$0x7] %vm344_vm1, %v10984_v0  ;;  %v336_v3 = vld [vmem:[%s11097_s15 + $0x10] sm:$0xff]  ;;  %v9790_v4 = vpack.c.bf16 %v334_v1, %v334_v1  ;;  %v9791_v5 = vpack.c.bf16 %v335_v2, %v335_v2  ;;  %v337_v7 = vld [vmem:[%s11097_s15 + $0x18] sm:$0xff] }
  0x12   : > { %356 = vst.msk [vmem:[#allocation2 + $0x30] sm:$0xf] %vm342_vm0, %v10984_v0  ;;  %358 = vst.msk [vmem:[#allocation2 + $0x38] sm:$0xf] %vm342_vm0, %v10984_v0  ;;  %v9792_v6 = vpack.c.bf16 %v336_v3, %v336_v3  ;;  %v338_v8 = vld [vmem:[%s11097_s15 + $0x20] sm:$0xff]  ;;  %v339_v9 = vld [vmem:[%s11097_s15 + $0x28] sm:$0xff]  ;;  %v9793_v10 = vpack.c.bf16 %v337_v7, %v337_v7 }
  0x13   : > { %357 = vst.msk [vmem:[#allocation2 + $0x34] sm:$0x7] %vm344_vm1, %v10984_v0  ;;  %359 = vst.msk [vmem:[#allocation2 + $0x3c] sm:$0x7] %vm344_vm1, %v10984_v0  ;;  %v9794_v11 = vpack.c.bf16 %v338_v8, %v338_v8  ;;  %v393_v12 = vshrl.u32 %v9790_v4, 16  ;;  %v396_v13 = vshll.u32 %v9790_v4, 16  ;;  %v9795_v18 = vpack.c.bf16 %v339_v9, %v339_v9 }
  0x14   : > { %2958 = vst [vmem:[#allocation5] sm:$0xff] %v10984_v0  ;;  %v402_v14 = vshrl.u32 %v9791_v5, 16  ;;  %v405_v15 = vshll.u32 %v9791_v5, 16  ;;  %v411_v16 = vshrl.u32 %v9792_v6, 16  ;;  %v414_v17 = vshll.u32 %v9792_v6, 16  ;;  %vm11107_vm6 = vmand %vm480_vm2, %vm481_vm3  ;;  %s10987_s18 = smov 36  }
  0x15   : > { %v395_v19 = vrot.slane %v393_v12, 6  ;;  %v398_v20 = vrot.slane %v396_v13, 7  ;;  %v483_v21 = vld [vmem:[#allocation2] sm:$0xe]  ;;  %v492_v25 = vld [vmem:[#allocation2 + $0x8] sm:$0xe]  ;;  %vm11113_vm7 = vmand %vm486_vm4, %vm487_vm5 }
  0x16   : > { %v404_v22 = vrot.slane %v402_v14, 6  ;;  %v407_v23 = vrot.slane %v405_v15, 7  ;;  %v413_v26 = vrot.slane %v411_v16, 6  ;;  %v416_v27 = vrot.slane %v414_v17, 7  ;;  %v489_v31 = vld [vmem:[#allocation2 + $0x4] sm:$0x3] }
  0x17   : > { %v420_v28 = vshrl.u32 %v9793_v10, 16  ;;  %v423_v29 = vshll.u32 %v9793_v10, 16  ;;  %v399_v30 = vor.u32 %v398_v20, %v395_v19  ;;  %v498_v33 = vld [vmem:[#allocation2 + $0x10] sm:$0xe]  ;;  %v429_v34 = vshrl.u32 %v9794_v11, 16  ;;  %s10988_s19 = smov 6  }
  0x18   : > { %v408_v32 = vor.u32 %v407_v23, %v404_v22  ;;  %v432_v35 = vshll.u32 %v9794_v11, 16  ;;  %v495_v37 = vld [vmem:[#allocation2 + $0xc] sm:$0x3]  ;;  %v417_v38 = vor.u32 %v416_v27, %v413_v26  ;;  %v438_v41 = vshrl.u32 %v9795_v18, 16  ;;  %v501_v46 = vld [vmem:[#allocation2 + $0x14] sm:$0x3] }
  0x19   : > { %v422_v39 = vrot.slane %v420_v28, 6  ;;  %v425_v40 = vrot.slane %v423_v29, 7  ;;  %v400_v42 = vrot.slane %v399_v30, 4  ;;  %v484_v43 = vsel %vm11107_vm6, %v399_v30, %v483_v21  ;;  %v504_v47 = vld [vmem:[#allocation2 + $0x18] sm:$0xe]  ;;  %s10989_s20 = smov 18  }
  0x1a   : > { %v409_v44 = vrot.slane %v408_v32, 4  ;;  %v493_v45 = vsel %vm11107_vm6, %v408_v32, %v492_v25  ;;  %485 = vst [vmem:[#allocation2] sm:$0xe] %v484_v43  ;;  %v418_v48 = vrot.slane %v417_v38, 4  ;;  %v499_v49 = vsel %vm11107_vm6, %v417_v38, %v498_v33  ;;  %v507_v54 = vld [vmem:[#allocation2 + $0x1c] sm:$0x3] }
  0x1b   : > { %494 = vst [vmem:[#allocation2 + $0x8] sm:$0xe] %v493_v45  ;;  %v426_v50 = vor.u32 %v425_v40, %v422_v39  ;;  %v431_v51 = vrot.slane %v429_v34, 6  ;;  %v490_v52 = vsel %vm11113_vm7, %v400_v42, %v489_v31  ;;  %500 = vst [vmem:[#allocation2 + $0x10] sm:$0xe] %v499_v49  ;;  %v434_v55 = vrot.slane %v432_v35, 7 }
  0x1c   : > { %v496_v53 = vsel %vm11113_vm7, %v409_v44, %v495_v37  ;;  %v510_v56 = vld [vmem:[#allocation2 + $0x20] sm:$0xe]  ;;  %v440_v57 = vrot.slane %v438_v41, 6  ;;  %491 = vst [vmem:[#allocation2 + $0x4] sm:$0x3] %v490_v52  ;;  %v502_v58 = vsel %vm11113_vm7, %v418_v48, %v501_v46  ;;  %v441_v62 = vshll.u32 %v9795_v18, 16 }
  0x1d   : > { %497 = vst [vmem:[#allocation2 + $0xc] sm:$0x3] %v496_v53  ;;  %v427_v59 = vrot.slane %v426_v50, 4  ;;  %v505_v60 = vsel %vm11107_vm6, %v426_v50, %v504_v47  ;;  %v513_v61 = vld [vmem:[#allocation2 + $0x24] sm:$0x3]  ;;  %v435_v63 = vor.u32 %v434_v55, %v431_v51  ;;  %s10990_s21 = smov 30  }
  0x1e   : > { %503 = vst [vmem:[#allocation2 + $0x14] sm:$0x3] %v502_v58  ;;  %506 = vst [vmem:[#allocation2 + $0x18] sm:$0xe] %v505_v60  ;;  %v443_v2 = vrot.slane %v441_v62, 7  ;;  %v340_v58 = vld [vmem:[%s11097_s15 + $0x30] sm:$0xff] }
  0x1f   : > { %v508_v1 = vsel %vm11113_vm7, %v427_v59, %v507_v54  ;;  %v436_v3 = vrot.slane %v435_v63, 4  ;;  %v511_v4 = vsel %vm11107_vm6, %v435_v63, %v510_v56  ;;  %v516_v5 = vld [vmem:[#allocation2 + $0x28] sm:$0xe]  ;;  %v341_v59 = vld [vmem:[%s11097_s15 + $0x38] sm:$0xff]  ;;  %vm1172_vm8 = vcmask 338944  }
  0x20   : > { %509 = vst [vmem:[#allocation2 + $0x1c] sm:$0x3] %v508_v1  ;;  %512 = vst [vmem:[#allocation2 + $0x20] sm:$0xe] %v511_v4  ;;  %v11135_v6 = vor.u32 %v443_v2, %v440_v57  ;;  %vm1278_vm9 = vcmask 1044480   ;;  %vm1265_vm10 = vcmask 343040  }
  0x21   : > { %v566_v7 = vld [vmem:[#allocation2] sm:$0xc]  ;;  %v514_v9 = vsel %vm11113_vm7, %v436_v3, %v513_v61  ;;  %1177 = vst.msk [vmem:[#allocation3 + $0x10] sm:$0xf] %vm1172_vm8, %v10984_v0  ;;  %1173 = vst.msk [vmem:[#allocation3] sm:$0xf] %vm1172_vm8, %v10984_v0 }
  0x22   : > { %v550_v8 = vld [vmem:[#allocation2] sm:$0xe]  ;;  %v11139_v12 = vld [vmem:[#allocation2 + $0x8] sm:$0xe]  ;;  %515 = vst [vmem:[#allocation2 + $0x24] sm:$0x3] %v514_v9  ;;  %v517_v13 = vsel %vm11107_vm6, %v11135_v6, %v516_v5 }
  0x23   : > { %v534_v10 = vld [vmem:[#allocation2] sm:$0xf]  ;;  %v558_v14 = vld [vmem:[#allocation2 + $0x4] sm:$0x3]  ;;  %518 = vst [vmem:[#allocation2 + $0x28] sm:$0xe] %v517_v13 }
  0x24   : > { %v582_v11 = vld [vmem:[#allocation2] sm:$0x8]  ;;  %v574_v15 = vld [vmem:[#allocation2 + $0x4] sm:$0x7]  ;;  %v8655_v17 = vcombine.low %v566_v7, %v558_v14  ;;  %v543_v19 = vld [vmem:[#allocation2 + $0xc] sm:$0x1]  ;;  %v8647_v29 = vcombine.low %v550_v8, %v558_v14 }
  0x25   : > { %v542_v16 = vld [vmem:[#allocation2 + $0x4] sm:$0x1]  ;;  %v8671_v21 = vcombine.low %v582_v11, %v574_v15  ;;  %v8640_v22 = vcombine.low %v11139_v12, %v543_v19  ;;  %v544_v23 = vld [vmem:[#allocation2 + $0x14] sm:$0x1]  ;;  %v552_v25 = vld [vmem:[#allocation2 + $0x10] sm:$0xe]  ;;  %v8663_v27 = vcombine.low %v566_v7, %v574_v15  ;;  %v11164_v7 = vpack.c.bf16 %v340_v58, %v340_v58 }
  0x26   : > { %v8639_v18 = vcombine.low %v550_v8, %v542_v16  ;;  %v8631_v20 = vcombine.low %v534_v10, %v542_v16  ;;  %v878_v26 = vrot.slane %v8655_v17, 2  ;;  %v535_v30 = vld [vmem:[#allocation2 + $0x8] sm:$0xf]  ;;  %v536_v31 = vld [vmem:[#allocation2 + $0x10] sm:$0xf]  ;;  %v8641_v37 = vcombine.low %v552_v25, %v544_v23 }
  0x27   : > { %v545_v32 = vld [vmem:[#allocation2 + $0x1c] sm:$0x1]  ;;  %v1030_v34 = vrot.slane %v8671_v21, 3  ;;  %v727_v35 = vrot.slane %v8640_v22, 1  ;;  %v553_v38 = vld [vmem:[#allocation2 + $0x18] sm:$0xe]  ;;  %v11147_v44 = vcombine.low %v535_v30, %v543_v19  ;;  %v8633_v47 = vcombine.low %v536_v31, %v544_v23 }
  0x28   : > { %v726_v28 = vrot.slane %v8639_v18, 1  ;;  %886 = vrot.lane.b32.xlu1 %v878_v26, %s10985_s16  ;;  %v633_v33 = vshll.u32 %v8631_v20, 16  ;;  %v8642_v39 = vcombine.low %v553_v38, %v545_v32  ;;  %v554_v41 = vld [vmem:[#allocation2 + $0x20] sm:$0xe]  ;;  %v927_v42 = vshrl.u32 %v8663_v27, 16 }
  0x29   : > { %v546_v40 = vld [vmem:[#allocation2 + $0x24] sm:$0x1]  ;;  %v930_v43 = vshll.u32 %v8663_v27, 16  ;;  %v775_v45 = vshrl.u32 %v8647_v29, 16  ;;  %v778_v46 = vshll.u32 %v8647_v29, 16  ;;  %v728_v51 = vrot.slane %v8641_v37, 1 }
  0x2a   : > { %734 = vrot.lane.b32.xlu0 %v726_v28, %s10986_s17  ;;  %v537_v48 = vld [vmem:[#allocation2 + $0x18] sm:$0xf]  ;;  %v538_v49 = vld [vmem:[#allocation2 + $0x20] sm:$0xf]  ;;  %v8643_v50 = vcombine.low %v554_v41, %v546_v40  ;;  %v729_v52 = vrot.slane %v8642_v39, 1  ;;  %v631_v53 = vshrl.u32 %v8631_v20, 16  ;;  %v11171_v11 = vpack.c.bf16 %v341_v59, %v341_v59 }
  0x2b   : > { %v635_v54 = vrot.slane %v633_v33, 1  ;;  %v11151_v55 = vld [vmem:[#allocation2 + $0xc] sm:$0x3]  ;;  %v11153_v56 = vcombine.low %v537_v48, %v545_v32  ;;  %v11155_v57 = vcombine.low %v538_v49, %v546_v40  ;;  %v11159_v60 = vld [vmem:[#allocation2 + $0x14] sm:$0x3]  ;;  %v777_v62 = vrot.slane %v775_v45, 1 }
  0x2c   : > { %1038 = vrot.lane.b32.xlu1 %v1030_v34, %s10987_s18  ;;  %v730_v61 = vrot.slane %v8643_v50, 1  ;;  %v780_v63 = vrot.slane %v778_v46, 2  ;;  %v929_v1 = vrot.slane %v927_v42, 2  ;;  %v932_v3 = vrot.slane %v930_v43, 3  ;;  %v11169_v10 = vld [vmem:[#allocation2 + $0x24] sm:$0x3] }
  0x2d   : > { %v636_v2 = vor.u32 %v635_v54, %v631_v53  ;;  %v647_v4 = vshll.u32 %v8633_v47, 16  ;;  %v640_v5 = vshll.u32 %v11147_v44, 16  ;;  %v8648_v8 = vcombine.low %v11139_v12, %v11151_v55  ;;  %v11173_v13 = vld [vmem:[#allocation2 + $0x1c] sm:$0x3]  ;;  %v568_v33 = vld [vmem:[#allocation2 + $0x10] sm:$0xc] }
  0x2e   : > { %736 = vrot.lane.b32.xlu0 %v727_v35, %s10986_s17  ;;  %v8649_v9 = vcombine.low %v552_v25, %v11159_v60  ;;  %v781_v14 = vor.u32 %v780_v63, %v777_v62  ;;  %v645_v15 = vshrl.u32 %v8633_v47, 16  ;;  %v638_v16 = vshrl.u32 %v11147_v44, 16  ;;  %v11189_v44 = vld [vmem:[#allocation2 + $0x14] sm:$0x7]  ;;  %v570_v45 = vld [vmem:[#allocation2 + $0x20] sm:$0xc] }
  0x2f   : > { %v661_v17 = vshll.u32 %v11155_v57, 16  ;;  %v933_v12 = vor.u32 %v932_v3, %v929_v1  ;;  %v649_v18 = vrot.slane %v647_v4, 1  ;;  %v642_v19 = vrot.slane %v640_v5, 1  ;;  %v11191_v49 = vld [vmem:[#allocation2 + $0xc] sm:$0x7] }
  0x30   : > { %738 = vrot.lane.b32.xlu1 %v728_v51, %s10986_s17  ;;  %v654_v20 = vshll.u32 %v11153_v56, 16  ;;  %v8651_v21 = vcombine.low %v554_v41, %v11169_v10  ;;  %v447_v22 = vshrl.u32 %v11164_v7, 16  ;;  %v450_v23 = vshll.u32 %v11164_v7, 16  ;;  %v567_v41 = vld [vmem:[#allocation2 + $0x8] sm:$0xc] }
  0x31   : > { %v8650_v25 = vcombine.low %v553_v38, %v11173_v13  ;;  %v659_v26 = vshrl.u32 %v11155_v57, 16  ;;  %v652_v27 = vshrl.u32 %v11153_v56, 16  ;;  %v456_v28 = vshrl.u32 %v11171_v11, 16  ;;  %v11197_v56 = vld [vmem:[#allocation2 + $0x24] sm:$0x7] }
  0x32   : > { %740 = vrot.lane.b32.xlu0 %v729_v52, %s10986_s17  ;;  %v663_v29 = vrot.slane %v661_v17, 1  ;;  %v791_v30 = vshrl.u32 %v8649_v9, 16  ;;  %v794_v31 = vshll.u32 %v8649_v9, 16  ;;  %v783_v32 = vshrl.u32 %v8648_v8, 16  ;;  %v519_v57 = vld [vmem:[#allocation2 + $0x2c] sm:$0x3] }
  0x33   : > { %v650_v34 = vor.u32 %v649_v18, %v645_v15  ;;  %v643_v35 = vor.u32 %v642_v19, %v638_v16  ;;  %v656_v37 = vrot.slane %v654_v20, 1  ;;  %v786_v38 = vshll.u32 %v8648_v8, 16  ;;  %v11208_v1 = vld [vmem:[#allocation2 + $0x1c] sm:$0x7]  ;;  %v522_v9 = vld [vmem:[#allocation2 + $0x30] sm:$0xe] }
  0x34   : > { %742 = vrot.lane.b32.xlu1 %v730_v61, %s10986_s17  ;;  %v807_v39 = vshrl.u32 %v8651_v21, 16  ;;  %v810_v40 = vshll.u32 %v8651_v21, 16  ;;  %v799_v42 = vshrl.u32 %v8650_v25, 16  ;;  %v802_v43 = vshll.u32 %v8650_v25, 16  ;;  %v528_v16 = vld [vmem:[#allocation2 + $0x38] sm:$0xe] }
  0x35   : > { %v793_v46 = vrot.slane %v791_v30, 1  ;;  %v796_v47 = vrot.slane %v794_v31, 2  ;;  %v785_v48 = vrot.slane %v783_v32, 1  ;;  %v459_v50 = vshll.u32 %v11171_v11, 16  ;;  %v10530_v11 = vld [vmem:[%s13571_s1 + $0x28] sm:$0x1f]  }
  0x36   : > { %686 = vrot.lane.b32.xlu0 %v636_v2, %s10988_s19  ;;  %v664_v51 = vor.u32 %v663_v29, %v659_v26  ;;  %v657_v52 = vor.u32 %v656_v37, %v652_v27  ;;  %v788_v53 = vrot.slane %v786_v38, 2  ;;  %v8657_v54 = vcombine.low %v568_v33, %v11159_v60  ;;  %v10531_v17 = vld [vmem:[%s13571_s1 + $0x10] sm:$0x1f]   ;;  %v11239_v20 = vld [vmem:[#allocation2 + $0x18] sm:$0xc]  ;;  %v10532_v29 = vld [vmem:[%s13571_s1 + $0x20] sm:$0xff]   ;;  %10459 = vmatprep.subr.msk.bf16.mxu0 %vm1278_vm9, %v10530_v11 }
  0x37   : > { %v11199_v58 = vrot.slane %v807_v39, 1  ;;  %v11201_v59 = vrot.slane %v810_v40, 2  ;;  %v11203_v61 = vrot.slane %v799_v42, 1  ;;  %v11205_v62 = vrot.slane %v802_v43, 2  ;;  %v525_v21 = vld [vmem:[#allocation2 + $0x34] sm:$0x3]  ;;  %10460 = vmatprep.subr.msk.bf16.mxu1 %vm1278_vm9, %v10531_v17 }
  0x38   : > { %838 = vrot.lane.b32.xlu1 %v781_v14, %s10989_s20  ;;  %v8656_v63 = vcombine.low %v567_v41, %v11151_v55  ;;  %v797_v2 = vor.u32 %v796_v47, %v793_v46  ;;  %v11211_v3 = vcombine.low %v568_v33, %v11189_v44  ;;  %v8659_v60 = vcombine.low %v570_v45, %v11169_v10  ;;  %v10533_v30 = vld [vmem:[%s13571_s1 + $0x8] sm:$0xff]   ;;  %v10534_v38 = vld [vmem:[%s13571_s1 + $0x18] sm:$0xff]  }
  0x39   : > { %v445_v4 = vrot.slane %v11135_v6, 4  ;;  %v789_v5 = vor.u32 %v788_v53, %v785_v48  ;;  %v11217_v7 = vrot.slane %v8657_v54, 2  ;;  %v11220_v8 = vcombine.low %v567_v41, %v11191_v49  ;;  %1174 = vst.msk [vmem:[#allocation3 + $0x4] sm:$0xf] %vm1172_vm8, %v10984_v0  ;;  %1175 = vst.msk [vmem:[#allocation3 + $0x8] sm:$0xf] %vm1172_vm8, %v10984_v0 }
  0x3a   : > { %990 = vrot.lane.b32.xlu0 %v933_v12, %s10990_s21  ;;  %v449_v55 = vrot.slane %v447_v22, 6  ;;  %v11226_v10 = vcombine.low %v570_v45, %v11197_v56  ;;  %v452_v14 = vrot.slane %v450_v23, 7  ;;  %v458_v15 = vrot.slane %v456_v28, 6  ;;  %v531_v28 = vld [vmem:[#allocation2 + $0x3c] sm:$0x3] }
  0x3b   : > { %v520_v6 = vsel %vm11113_vm7, %v445_v4, %v519_v57  ;;  %v813_v12 = vor.u32 %v11201_v59, %v11199_v58  ;;  %v805_v18 = vor.u32 %v11205_v62, %v11203_v61  ;;  %v11237_v19 = vrot.slane %v8656_v63, 2  ;;  %1176 = vst.msk [vmem:[#allocation3 + $0xc] sm:$0xf] %vm1172_vm8, %v10984_v0  ;;  %1178 = vst.msk [vmem:[#allocation3 + $0x14] sm:$0xf] %vm1172_vm8, %v10984_v0 }
  0x3c   : > { %690 = vrot.lane.b32.xlu1 %v650_v34, %s10988_s19  ;;  %521 = vst [vmem:[#allocation2 + $0x2c] sm:$0x3] %v520_v6  ;;  %v461_v22 = vrot.slane %v459_v50, 7  ;;  %v11241_v23 = vrot.slane %v8659_v60, 2  ;;  %v11245_v25 = vcombine.low %v11239_v20, %v11208_v1  ;;  %v943_v26 = vshrl.u32 %v11211_v3, 16 }
  0x3d   : > { %v453_v27 = vor.u32 %v452_v14, %v449_v55  ;;  %v946_v31 = vshll.u32 %v11211_v3, 16  ;;  %1179 = vst.msk [vmem:[#allocation3 + $0x18] sm:$0xf] %vm1172_vm8, %v10984_v0  ;;  %1180 = vst.msk [vmem:[#allocation3 + $0x1c] sm:$0xf] %vm1172_vm8, %v10984_v0  ;;  %v1397_v37 = vsel %vm1278_vm9, %v10531_v17, 0  ;;  %v8658_v42 = vcombine.low %v11239_v20, %v11173_v13 }
  0x3e   : > { %688 = vrot.lane.b32.xlu0 %v643_v35, %s10988_s19  ;;  %v462_v32 = vor.u32 %v461_v22, %v458_v15  ;;  %1181 = vst.msk [vmem:[#allocation3 + $0x20] sm:$0xf] %vm1172_vm8, %v10984_v0  ;;  %1182 = vst.msk [vmem:[#allocation3 + $0x24] sm:$0xf] %vm1172_vm8, %v10984_v0  ;;  %v1280_v35 = vsel %vm1278_vm9, %v10530_v11, 0  ;;  %v935_v39 = vshrl.u32 %v11220_v8, 16  ;;  %10236 = vmatpush3.bf16.msra.mxu1 %v1397_v37 }
  0x3f   : > { %v454_v33 = vrot.slane %v453_v27, 4  ;;  %v523_v34 = vsel %vm11107_vm6, %v453_v27, %v522_v9  ;;  %1183 = vst.msk [vmem:[#allocation3 + $0x28] sm:$0xf] %vm1172_vm8, %v10984_v0  ;;  %1184 = vst.msk [vmem:[#allocation3 + $0x2c] sm:$0xf] %vm1172_vm8, %v10984_v0  ;;  %10222 = vmatpush3.bf16.msra.mxu0 %v1280_v35  ;;  %10237 = vmatprep.subr.bf16.mxu1 %v10533_v30  ;;  %v938_v43 = vshll.u32 %v11220_v8, 16 }
  0x40   : > { %694 = vrot.lane.b32.xlu1 %v664_v51, %s10988_s19  ;;  %1185 = vst.msk [vmem:[#allocation3 + $0x30] sm:$0xf] %vm1172_vm8, %v10984_v0  ;;  %1186 = vst.msk [vmem:[#allocation3 + $0x34] sm:$0xf] %vm1172_vm8, %v10984_v0  ;;  %v463_v40 = vrot.slane %v462_v32, 4  ;;  %v529_v41 = vsel %vm11107_vm6, %v462_v32, %v528_v16  ;;  %10223 = vmatprep.subr.bf16.mxu0 %v10532_v29  ;;  %v959_v24 = vshrl.u32 %v11226_v10, 16 }
  0x41   : > { %1187 = vst.msk [vmem:[#allocation3 + $0x38] sm:$0xf] %vm1172_vm8, %v10984_v0  ;;  %1188 = vst.msk [vmem:[#allocation3 + $0x3c] sm:$0xf] %vm1172_vm8, %v10984_v0  ;;  %v526_v0 = vsel %vm11113_vm7, %v454_v33, %v525_v21  ;;  %v945_v46 = vrot.slane %v943_v26, 2  ;;  %v948_v47 = vrot.slane %v946_v31, 3 }
  0x42   : > { %692 = vrot.lane.b32.xlu0 %v657_v52, %s10988_s19  ;;  %524 = vst [vmem:[#allocation2 + $0x30] sm:$0xe] %v523_v34  ;;  %530 = vst [vmem:[#allocation2 + $0x38] sm:$0xe] %v529_v41  ;;  %v532_v45 = vsel %vm11113_vm7, %v463_v40, %v531_v28  ;;  %v962_v48 = vshll.u32 %v11226_v10, 16  ;;  %v951_v50 = vshrl.u32 %v11245_v25, 16  ;;  %10238 = vmatpush3.bf16.msra.mxu1 %v10533_v30 }
  0x43   : > { %527 = vst [vmem:[#allocation2 + $0x34] sm:$0x3] %v526_v0  ;;  %533 = vst [vmem:[#allocation2 + $0x3c] sm:$0x3] %v532_v45  ;;  %v10535_v51 = vld [vmem:[%s13571_s1] sm:$0xff]   ;;  %10224 = vmatpush3.bf16.msra.mxu0 %v10532_v29  ;;  %v881_v36 = vrot.slane %v8658_v42, 2 }
  0x44   : > { %842 = vrot.lane.b32.xlu1 %v797_v2, %s10989_s20  ;;  %v584_v13 = vld [vmem:[#allocation2 + $0x10] sm:$0x8]  ;;  %v583_v52 = vld [vmem:[#allocation2 + $0x8] sm:$0x8]  ;;  %10225 = vmatprep.subr.bf16.mxu0 %v10534_v38  ;;  %v937_v53 = vrot.slane %v935_v39, 2  ;;  %v940_v54 = vrot.slane %v938_v43, 3  ;;  %v949_v2 = vor.u32 %v948_v47, %v945_v46 }
  0x45   : > { %v954_v57 = vshll.u32 %v11245_v25, 16  ;;  %v586_v58 = vld [vmem:[#allocation2 + $0x20] sm:$0x8]  ;;  %v585_v59 = vld [vmem:[#allocation2 + $0x18] sm:$0x8]  ;;  %10239 = vmatprep.subr.bf16.mxu1 %v10535_v51  ;;  %v961_v3 = vrot.slane %v959_v24, 2  ;;  %v8673_v9 = vcombine.low %v584_v13, %v11189_v44  ;;  %v8672_v11 = vcombine.low %v583_v52, %v11191_v49 }
  0x46   : > { %840 = vrot.lane.b32.xlu0 %v789_v5, %s10989_s20  ;;  %v539_v61 = vld [vmem:[#allocation2 + $0x28] sm:$0xf]  ;;  %v547_v62 = vld [vmem:[#allocation2 + $0x2c] sm:$0x1]  ;;  %v964_v60 = vrot.slane %v962_v48, 3  ;;  %v953_v4 = vrot.slane %v951_v50, 2  ;;  %10240 = vmatpush3.bf16.msra.mxu1 %v10535_v51  ;;  %v941_v8 = vor.u32 %v940_v54, %v937_v53  ;;  %v8675_v15 = vcombine.low %v586_v58, %v11197_v56 }
  0x47   : > { %v555_v63 = vld [vmem:[#allocation2 + $0x28] sm:$0xe]  ;;  %10226 = vmatpush3.bf16.msra.mxu0 %v10534_v38  ;;  %v563_v5 = vld [vmem:[#allocation2 + $0x2c] sm:$0x3]  ;;  %v956_v55 = vrot.slane %v954_v57, 3  ;;  %v10537_v14 = vld [vmem:[#allocation3] sm:$0xff]   ;;  %v8674_v16 = vcombine.low %v585_v59, %v11208_v1  ;;  %v8636_v17 = vcombine.low %v539_v61, %v547_v62 }
  0x48   : > { %846 = vrot.lane.b32.xlu1 %v813_v12, %s10989_s20  ;;  %v571_v10 = vld [vmem:[#allocation2 + $0x28] sm:$0xc]  ;;  %v579_v6 = vld [vmem:[#allocation2 + $0x2c] sm:$0x7]  ;;  %v8652_v12 = vcombine.low %v555_v63, %v563_v5  ;;  %10241 = vmatprep.mubr.msk.bf16.mxu1 %vm1265_vm10, %v10537_v14  ;;  %v965_v44 = vor.u32 %v964_v60, %v961_v3  ;;  %v1032_v21 = vrot.slane %v8673_v9, 3  ;;  %v1031_v22 = vrot.slane %v8672_v11, 3 }
  0x49   : > { %v8668_v20 = vcombine.low %v571_v10, %v579_v6  ;;  %v957_v49 = vor.u32 %v956_v55, %v953_v4  ;;  %v1034_v56 = vrot.slane %v8675_v15, 3  ;;  %v8644_v1 = vcombine.low %v555_v63, %v547_v62  ;;  %v556_v30 = vld [vmem:[#allocation2 + $0x30] sm:$0xe]  ;;  %v11338_v38 = vld [vmem:[%s13571_s1 + $0x40] sm:$0x1f]   ;;  %v10549_v62 = vld [vmem:[%s13571_s1 + $0x48] sm:$0xff]  }
  0x4a   : > { %844 = vrot.lane.b32.xlu0 %v805_v18, %s10989_s20  ;;  %v10539_v18 = vld [vmem:[#allocation3 + $0x8] sm:$0xff]   ;;  %v668_v25 = vshll.u32 %v8636_v17, 16  ;;  %v8660_v26 = vcombine.low %v571_v10, %v563_v5  ;;  %v815_v27 = vshrl.u32 %v8652_v12, 16  ;;  %v818_v28 = vshll.u32 %v8652_v12, 16  ;;  %v540_v33 = vld [vmem:[#allocation2 + $0x30] sm:$0xf]  ;;  %10461 = vmatprep.subr.msk.bf16.mxu0 %vm1278_vm9, %v11338_v38 }
  0x4b   : > { %10242 = vmatmul.mubr.msk.bf16.vlgmr.msra.gmra.mxu1 %vm1265_vm10, %v10539_v18  ;;  %v967_v31 = vshrl.u32 %v8668_v20, 16  ;;  %v970_v32 = vshll.u32 %v8668_v20, 16  ;;  %v548_v34 = vld [vmem:[#allocation2 + $0x34] sm:$0x1]  ;;  %v731_v39 = vrot.slane %v8644_v1, 1  ;;  %v666_v40 = vshrl.u32 %v8636_v17, 16 }
  0x4c   : > { %890 = vrot.lane.b32.xlu1 %v11217_v7, %s10985_s16  ;;  %v10536_v7 = vld [vmem:[#allocation3 + $0x4] sm:$0xff]   ;;  %v564_v35 = vld [vmem:[#allocation2 + $0x34] sm:$0x3]  ;;  %v8645_v37 = vcombine.low %v556_v30, %v548_v34  ;;  %v883_v41 = vrot.slane %v8660_v26, 2  ;;  %v10541_v42 = vld [vmem:[%s13571_s1 + $0x58] sm:$0x1f]   ;;  %v8637_v50 = vcombine.low %v540_v33, %v548_v34 }
  0x4d   : > { %10227 = vmatprep.mubr.msk.bf16.mxu0 %vm1265_vm10, %v10536_v7  ;;  %v670_v43 = vrot.slane %v668_v25, 1  ;;  %v817_v24 = vrot.slane %v815_v27, 1  ;;  %v820_v45 = vrot.slane %v818_v28, 2  ;;  %v541_v46 = vld [vmem:[#allocation2 + $0x38] sm:$0xf]  ;;  %v10544_v47 = vld [vmem:[%s13571_s1 + $0x50] sm:$0xff]   ;;  %v8653_v51 = vcombine.low %v556_v30, %v564_v35  ;;  %10462 = vmatprep.subr.msk.bf16.mxu1 %vm1278_vm9, %v10541_v42 }
  0x4e   : > { %888 = vrot.lane.b32.xlu0 %v11237_v19, %s10985_s16  ;;  %v587_v19 = vld [vmem:[#allocation2 + $0x28] sm:$0x8]  ;;  %v969_v48 = vrot.slane %v967_v31, 2  ;;  %v549_v13 = vld [vmem:[#allocation2 + $0x3c] sm:$0x1]  ;;  %v1671_v52 = vsel %vm1278_vm9, %v10541_v42, 0 }
  0x4f   : > { %v8676_v29 = vcombine.low %v587_v19, %v579_v6  ;;  %v732_v53 = vrot.slane %v8645_v37, 1  ;;  %10264 = vmatpush3.bf16.msra.mxu1 %v1671_v52  ;;  %v671_v54 = vor.u32 %v670_v43, %v666_v40  ;;  %v673_v57 = vshrl.u32 %v8637_v50, 16  ;;  %v572_v63 = vld [vmem:[#allocation2 + $0x30] sm:$0xc]  ;;  %v580_v60 = vld [vmem:[#allocation2 + $0x34] sm:$0x7] }
  0x50   : > { %894 = vrot.lane.b32.xlu1 %v11241_v23, %s10985_s16  ;;  %v1033_v23 = vrot.slane %v8674_v16, 3  ;;  %10265 = vmatprep.subr.bf16.mxu1 %v10544_v47  ;;  %v675_v58 = vshll.u32 %v8637_v50, 16  ;;  %v823_v59 = vshrl.u32 %v8653_v51, 16  ;;  %v8638_v61 = vcombine.low %v541_v46, %v549_v13  ;;  %v557_v4 = vld [vmem:[#allocation2 + $0x38] sm:$0xe] }
  0x51   : > { %v1035_v0 = vrot.slane %v8676_v29, 3  ;;  %v821_v5 = vor.u32 %v820_v45, %v817_v24  ;;  %v565_v55 = vld [vmem:[#allocation2 + $0x3c] sm:$0x3]  ;;  %v8661_v9 = vcombine.low %v572_v63, %v564_v35  ;;  %v8669_v14 = vcombine.low %v572_v63, %v580_v60  ;;  %v588_v26 = vld [vmem:[#allocation2 + $0x30] sm:$0x8] }
  0x52   : > { %892 = vrot.lane.b32.xlu0 %v881_v36, %s10985_s16  ;;  %v972_v36 = vrot.slane %v970_v32, 3  ;;  %v680_v3 = vshrl.u32 %v8638_v61, 16  ;;  %v677_v7 = vrot.slane %v675_v58, 1  ;;  %v825_v10 = vrot.slane %v823_v59, 1  ;;  %v11372_v40 = vld [vmem:[%s13571_s1 + $0x88] sm:$0x1f]  }
  0x53   : > { %10266 = vmatpush3.bf16.msra.mxu1 %v10544_v47  ;;  %v8646_v15 = vcombine.low %v557_v4, %v549_v13  ;;  %v884_v17 = vrot.slane %v8661_v9, 2  ;;  %v8654_v12 = vcombine.low %v557_v4, %v565_v55  ;;  %v975_v20 = vshrl.u32 %v8669_v14, 16 }
  0x54   : > { %994 = vrot.lane.b32.xlu1 %v949_v2, %s10990_s21  ;;  %v826_v2 = vshll.u32 %v8653_v51, 16  ;;  %10267 = vmatprep.subr.bf16.mxu1 %v10549_v62  ;;  %v973_v11 = vor.u32 %v972_v36, %v969_v48  ;;  %v678_v18 = vor.u32 %v677_v7, %v673_v57  ;;  %v8677_v31 = vcombine.low %v588_v26, %v580_v60  ;;  %v10950_v26 = vld [vmem:[#allocation2 + $0x20] sm:$0xf] }
  0x55   : > { %v733_v19 = vrot.slane %v8646_v15, 1  ;;  %v977_v1 = vrot.slane %v975_v20, 2  ;;  %v834_v25 = vshll.u32 %v8654_v12, 16  ;;  %vm1054_vm11 = vcmask 48128  }
  0x56   : > { %992 = vrot.lane.b32.xlu0 %v941_v8, %s10990_s21  ;;  %v682_v8 = vshll.u32 %v8638_v61, 16  ;;  %v828_v6 = vrot.slane %v826_v2, 2  ;;  %vm1079_vm12 = vcmask 97280   ;;  %vm1096_vm13 = vcmask 146432  }
  0x57   : > { %10268 = vmatpush3.bf16.msra.mxu1 %v10549_v62  ;;  %v836_v29 = vrot.slane %v834_v25, 2  ;;  %vm1113_vm14 = vcmask 195584   ;;  %vm1130_vm15 = vcmask 244736   ;;  %vm1147_vm0 = vcmask 293888  }
  0x58   : > { %998 = vrot.lane.b32.xlu1 %v965_v44, %s10990_s21  ;;  %v684_v16 = vrot.slane %v682_v8, 1  ;;  %v978_v44 = vshll.u32 %v8669_v14, 16  ;;  %10464 = vmatprep.subr.msk.bf16.mxu1 %vm1278_vm9, %v11372_v40  ;;  %v10547_v8 = vld [vmem:[%s13571_s1 + $0x38] sm:$0xff]   ;;  %vm2489_vm1 = vcmask 519168   ;;  %vm2491_vm2 = vcmask 517120  }
  0x59   : > { %vm2573_vm3 = vcmask 516096   ;;  %vm2909_vm4 = vcmask 523264   ;;  %vm2571_vm5 = vcmask 519169  }
  0x5a   : > { %996 = vrot.lane.b32.xlu0 %v957_v49, %s10990_s21  ;;  %v831_v49 = vshrl.u32 %v8654_v12, 16  ;;  %v980_v27 = vrot.slane %v978_v44, 3  ;;  %v10948_v44 = vld [vmem:[#allocation2 + $0x10] sm:$0xf] }
  0x5c   : > { %1042 = vrot.lane.b32.xlu1 %v1032_v21, %s10987_s18  ;;  %v573_v21 = vld [vmem:[#allocation2 + $0x38] sm:$0xc]  ;;  %v833_v28 = vrot.slane %v831_v49, 1  ;;  %v981_v33 = vor.u32 %v980_v27, %v977_v1 }
  0x5d   : > { %v8662_v32 = vcombine.low %v573_v21, %v565_v55 }
  0x5e   : > { %1040 = vrot.lane.b32.xlu0 %v1031_v22, %s10987_s18  ;;  %v581_v22 = vld [vmem:[#allocation2 + $0x3c] sm:$0x7]  ;;  %v837_v34 = vor.u32 %v836_v29, %v833_v28  ;;  %v10951_v28 = vld [vmem:[#allocation2 + $0x18] sm:$0xf] }
  0x5f   : > { %v8670_v30 = vcombine.low %v573_v21, %v581_v22  ;;  %v10949_v21 = vld [vmem:[#allocation2 + $0x8] sm:$0xf] }
  0x60   : > { %1046 = vrot.lane.b32.xlu1 %v1034_v56, %s10987_s18  ;;  %v829_v56 = vor.u32 %v828_v6, %v825_v10  ;;  %v1530_v10 = vsel %vm1278_vm9, %v11338_v38, 0  ;;  %v10550_v6 = vld [vmem:[%s13571_s1 + $0x30] sm:$0xff]  }
  0x61   : > { %v983_v35 = vshrl.u32 %v8670_v30, 16  ;;  %v986_v37 = vshll.u32 %v8670_v30, 16 }
  0x62   : > { %1044 = vrot.lane.b32.xlu0 %v1033_v23, %s10987_s18  ;;  %v685_v23 = vor.u32 %v684_v16, %v680_v3  ;;  %v11403_v16 = vld [vmem:[%s13571_s1 + $0x70] sm:$0x1f]  }
  0x63   : > { %v985_v42 = vrot.slane %v983_v35, 2  ;;  %v988_v43 = vrot.slane %v986_v37, 3 }
  0x64   : > { %744 = vrot.lane.b32.xlu1 %v731_v39, %s10986_s17  ;;  %v589_v39 = vld [vmem:[#allocation2 + $0x38] sm:$0x8] }
  0x65   : > { %v8678_v24 = vcombine.low %v589_v39, %v581_v22  ;;  %v989_v45 = vor.u32 %v988_v43, %v985_v42 }
  0x66   : > { %696 = vrot.lane.b32.xlu0 %v671_v54, %s10988_s19  ;;  %v10947_v54 = vld [vmem:[#allocation2] sm:$0xf] }
  0x67   : > { %v1037_v46 = vrot.slane %v8678_v24, 3 }
  0x68   : > { %896 = vrot.lane.b32.xlu1 %v883_v41, %s10985_s16  ;;  %v1036_v41 = vrot.slane %v8677_v31, 3 }
  0x6a   : > { %848 = vrot.lane.b32.xlu0 %v821_v5, %s10989_s20 }
  0x6c   : > { %1048 = vrot.lane.b32.xlu1 %v1035_v0, %s10987_s18  ;;  %v885_v0 = vrot.slane %v8662_v32, 2 }
  0x6e   : > { %1000 = vrot.lane.b32.xlu0 %v973_v11, %s10990_s21 }
  0x70   : > { %746 = vrot.lane.b32.xlu1 %v732_v53, %s10986_s17 }
  0x72   : > { %698 = vrot.lane.b32.xlu0 %v678_v18, %s10988_s19 }
  0x74   : > { %850 = vrot.lane.b32.xlu1 %v829_v56, %s10989_s20 }
  0x76   : > { %700 = vrot.lane.b32.xlu0 %v685_v23, %s10988_s19 }
  0x78   : > { %898 = vrot.lane.b32.xlu1 %v884_v17, %s10985_s16 }
  0x7a   : > { %748 = vrot.lane.b32.xlu0 %v733_v19, %s10986_s17 }
  0x7c   : > { %1002 = vrot.lane.b32.xlu1 %v981_v33, %s10990_s21 }
  0x7e   : > { %852 = vrot.lane.b32.xlu0 %v837_v34, %s10989_s20  ;;  %s10991_s20 = smov 64  }
  0x80   : > { %1050 = vrot.lane.b32.xlu1 %v1036_v41, %s10987_s18 }
  0x82   : > { %900 = vrot.lane.b32.xlu0 %v885_v0, %s10985_s16 }
  0x84   : > { %1052 = vrot.lane.b32.xlu1 %v1037_v46, %s10987_s18 }
  0x86   : > { %1004 = vrot.lane.b32.xlu0 %v989_v45, %s10990_s21 }
  0x9a   : > { %v887_v47 = vpop.permute.xlu1 %886 }
  0x9c   : > { %v735_v48 = vpop.permute.xlu0 %734 }
  0x9e   : > { %v1039_v50 = vpop.permute.xlu1 %1038 }
  0xa0   : > { %v737_v51 = vpop.permute.xlu0 %736 }
  0xa2   : > { %v739_v13 = vpop.permute.xlu1 %738 }
  0xa4   : > { %v11382_v52 = vpop.permute.xlu0 %740 }
  0xa6   : > { %v743_v36 = vpop.permute.xlu1 %742 }
  0xa8   : > { %v687_v53 = vpop.permute.xlu0 %686 }
  0xa9   : > { %v1057_v57 = vsel %vm1054_vm11, %v10947_v54, %v687_v53 }
  0xaa   : > { %v839_v58 = vpop.permute.xlu1 %838  ;;  %v1081_v59 = vsel %vm1079_vm12, %v1057_v57, %v735_v48  ;;  %v10952_v57 = vld [vmem:[#allocation2 + $0x28] sm:$0xf] }
  0xab   : > { %v1098_v62 = vsel %vm1096_vm13, %v1081_v59, %v839_v58 }
  0xac   : > { %v991_v61 = vpop.permute.xlu0 %990  ;;  %v1115_v63 = vsel %vm1113_vm14, %v1098_v62, %v887_v47 }
  0xad   : > { %v1132_v2 = vsel %vm1130_vm15, %v1115_v63, %v991_v61 }
  0xae   : > { %v1149_v3 = vsel %vm1147_vm0, %v1132_v2, %v1039_v50  ;;  %v691_v60 = vpop.permute.xlu1 %690 }
  0xaf   : > { %1190 = vst.msk [vmem:[#allocation3 + $0x10] sm:$0xf] %vm1172_vm8, %v1149_v3  ;;  %v1063_v49 = vsel %vm1054_vm11, %v10948_v44, %v691_v60  ;;  %v10551_v3 = vld [vmem:[#allocation3 + $0x8] sm:$0xff]   ;;  %v1952_v44 = vsel %vm1278_vm9, %v11372_v40, 0  ;;  %v10560_v40 = vld [vmem:[%s13571_s1 + $0x60] sm:$0xff]  }
  0xb0   : > { %v689_v4 = vpop.permute.xlu0 %688  ;;  %v1085_v1 = vsel %vm1079_vm12, %v1063_v49, %v739_v13  ;;  %v10564_v49 = vld [vmem:[%s13571_s1 + $0xa0] sm:$0x1f]  }
  0xb1   : > { %v1060_v22 = vsel %vm1054_vm11, %v10949_v21, %v689_v4 }
  0xb2   : > { %v695_v5 = vpop.permute.xlu1 %694  ;;  %v1083_v25 = vsel %vm1079_vm12, %v1060_v22, %v737_v51 }
  0xb3   : > { %v1069_v27 = vsel %vm1054_vm11, %v10950_v26, %v695_v5  ;;  %v2093_v26 = vsel %vm1278_vm9, %v10564_v49, 0 }
  0xb4   : > { %v693_v7 = vpop.permute.xlu0 %692  ;;  %v1089_v41 = vsel %vm1079_vm12, %v1069_v27, %v743_v36  ;;  %v10575_v27 = vld [vmem:[%s13571_s1 + $0xb8] sm:$0x1f]  }
  0xb5   : > { %v1066_v29 = vsel %vm1054_vm11, %v10951_v28, %v693_v7  ;;  %v10953_v28 = vld [vmem:[#allocation2 + $0x30] sm:$0xf] }
  0xb6   : > { %v843_v55 = vpop.permute.xlu1 %842  ;;  %v10538_v11 = vld [vmem:[#allocation3 + $0xc] sm:$0xff]   ;;  %v1087_v0 = vsel %vm1079_vm12, %v1066_v29, %v11382_v52 }
  0xb7   : > { %10228 = vmatmul.mubr.msk.bf16.vlgmr.msra.gmra.mxu0 %vm1265_vm10, %v10538_v11  ;;  %v1102_v30 = vsel %vm1096_vm13, %v1085_v1, %v843_v55  ;;  %v10548_v7 = vld [vmem:[#allocation3 + $0xc] sm:$0xff]  }
  0xb8   : > { %v841_v9 = vpop.permute.xlu0 %840  ;;  %10250 = vmatpush3.bf16.msra.mxu0 %v1530_v10 }
  0xb9   : > { %10251 = vmatprep.subr.bf16.mxu0 %v10547_v8  ;;  %v1100_v31 = vsel %vm1096_vm13, %v1083_v25, %v841_v9 }
  0xba   : > { %v847_v14 = vpop.permute.xlu1 %846 }
  0xbb   : > { %v1106_v24 = vsel %vm1096_vm13, %v1089_v41, %v847_v14 }
  0xbc   : > { %v845_v15 = vpop.permute.xlu0 %844  ;;  %10252 = vmatpush3.bf16.msra.mxu0 %v10547_v8 }
  0xbd   : > { %10253 = vmatprep.subr.bf16.mxu0 %v10550_v6  ;;  %v1104_v45 = vsel %vm1096_vm13, %v1087_v0, %v845_v15 }
  0xbe   : > { %v891_v17 = vpop.permute.xlu1 %890 }
  0xbf   : > { %v1119_v32 = vsel %vm1113_vm14, %v1102_v30, %v891_v17 }
  0xc0   : > { %v889_v12 = vpop.permute.xlu0 %888  ;;  %10254 = vmatpush3.bf16.msra.mxu0 %v10550_v6 }
  0xc1   : > { %10463 = vmatprep.subr.msk.bf16.mxu0 %vm1278_vm9, %v11403_v16  ;;  %v1117_v33 = vsel %vm1113_vm14, %v1100_v31, %v889_v12  ;;  %v10558_v12 = vld [vmem:[%s13571_s1 + $0x68] sm:$0xff]  }
  0xc2   : > { %v895_v38 = vpop.permute.xlu1 %894 }
  0xc3   : > { %v1123_v46 = vsel %vm1113_vm14, %v1106_v24, %v895_v38 }
  0xc4   : > { %v893_v18 = vpop.permute.xlu0 %892 }
  0xc5   : > { %v1121_v47 = vsel %vm1113_vm14, %v1104_v45, %v893_v18  ;;  %v1811_v18 = vsel %vm1278_vm9, %v11403_v16, 0  ;;  %v10569_v16 = vld [vmem:[%s13571_s1 + $0x78] sm:$0xff]  }
  0xc6   : > { %v995_v19 = vpop.permute.xlu1 %994 }
  0xc7   : > { %v1136_v34 = vsel %vm1130_vm15, %v1119_v32, %v995_v19  ;;  %v10566_v19 = vld [vmem:[%s13571_s1 + $0x80] sm:$0xff]  }
  0xc8   : > { %v993_v20 = vpop.permute.xlu0 %992 }
  0xc9   : > { %v1134_v35 = vsel %vm1130_vm15, %v1117_v33, %v993_v20 }
  0xca   : > { %v999_v56 = vpop.permute.xlu1 %998 }
  0xcb   : > { %v1140_v48 = vsel %vm1130_vm15, %v1123_v46, %v999_v56 }
  0xcc   : > { %v997_v23 = vpop.permute.xlu0 %996 }
  0xcd   : > { %v1138_v50 = vsel %vm1130_vm15, %v1121_v47, %v997_v23 }
  0xce   : > { %v1043_v37 = vpop.permute.xlu1 %1042 }
  0xcf   : > { %v1155_v42 = vsel %vm1147_vm0, %v1136_v34, %v1043_v37  ;;  %v10568_v37 = vld [vmem:[%s13571_s1 + $0x98] sm:$0xff]  }
  0xd0   : > { %v1041_v39 = vpop.permute.xlu0 %1040  ;;  %1192 = vst.msk [vmem:[#allocation3 + $0x18] sm:$0xf] %vm1172_vm8, %v1155_v42 }
  0xd1   : > { %v1152_v43 = vsel %vm1147_vm0, %v1134_v35, %v1041_v39 }
  0xd2   : > { %1191 = vst.msk [vmem:[#allocation3 + $0x14] sm:$0xf] %vm1172_vm8, %v1152_v43  ;;  %v1047_v51 = vpop.permute.xlu1 %1046  ;;  %v10954_v43 = vld [vmem:[#allocation2 + $0x38] sm:$0xf] }
  0xd3   : > { %v1161_v52 = vsel %vm1147_vm0, %v1140_v48, %v1047_v51  ;;  %v10573_v48 = vld [vmem:[%s13571_s1 + $0x90] sm:$0xff]  }
  0xd4   : > { %v1045_v13 = vpop.permute.xlu0 %1044  ;;  %1194 = vst.msk [vmem:[#allocation3 + $0x20] sm:$0xf] %vm1172_vm8, %v1161_v52 }
  0xd5   : > { %v1158_v36 = vsel %vm1147_vm0, %v1138_v50, %v1045_v13 }
  0xd6   : > { %1193 = vst.msk [vmem:[#allocation3 + $0x1c] sm:$0xf] %vm1172_vm8, %v1158_v36  ;;  %v745_v53 = vpop.permute.xlu1 %744 }
  0xd8   : > { %v697_v54 = vpop.permute.xlu0 %696 }
  0xd9   : > { %v1072_v58 = vsel %vm1054_vm11, %v10952_v57, %v697_v54  ;;  %v10542_v59 = vld [vmem:[#allocation3 + $0x14] sm:$0xff]  }
  0xda   : > { %v10543_v61 = vld [vmem:[#allocation3 + $0x10] sm:$0xff]   ;;  %10231 = vmatprep.mubr.msk.bf16.mxu0 %vm1265_vm10, %v10542_v59  ;;  %v897_v62 = vpop.permute.xlu1 %896  ;;  %v1091_v63 = vsel %vm1079_vm12, %v1072_v58, %v745_v53 }
  0xdb   : > { %10245 = vmatprep.mubr.msk.bf16.mxu1 %vm1265_vm10, %v10543_v61  ;;  %v10552_v6 = vld [vmem:[#allocation3 + $0x10] sm:$0xff]  }
  0xdc   : > { %v849_v2 = vpop.permute.xlu0 %848  ;;  %v10553_v17 = vld [vmem:[#allocation3 + $0x14] sm:$0xff]  }
  0xdd   : > { %v1108_v60 = vsel %vm1096_vm13, %v1091_v63, %v849_v2  ;;  %v10545_v4 = vld [vmem:[#allocation3 + $0x1c] sm:$0xff]   ;;  %v10559_v1 = vld [vmem:[#allocation3 + $0x10] sm:$0xff]   ;;  %v2234_v63 = vsel %vm1278_vm9, %v10575_v27, 0 }
  0xde   : > { %v10546_v5 = vld [vmem:[#allocation3 + $0x18] sm:$0xff]   ;;  %10232 = vmatmul.mubr.msk.bf16.gmra.mxu0 %vm1265_vm10, %v10545_v4  ;;  %v1049_v8 = vpop.permute.xlu1 %1048  ;;  %v1125_v55 = vsel %vm1113_vm14, %v1108_v60, %v897_v62  ;;  %v10577_v53 = vld [vmem:[%s13571_s1 + $0xd0] sm:$0x1f]   ;;  %v10582_v4 = vld [vmem:[%s13571_s1 + $0xc8] sm:$0xff]  }
  0xdf   : > { %10246 = vmatmul.mubr.msk.bf16.gmra.mxu1 %vm1265_vm10, %v10546_v5  ;;  %10255 = vmatprep.mubr.msk.bf16.mxu0 %vm1265_vm10, %v10551_v3  ;;  %v10554_v38 = vld [vmem:[#allocation3 + $0x18] sm:$0xff]   ;;  %v10580_v61 = vld [vmem:[%s13571_s1 + $0xb0] sm:$0xff]   ;;  %v2375_v3 = vsel %vm1278_vm9, %v10577_v53, 0  ;;  %v10583_v5 = vld [vmem:[%s13571_s1 + $0xa8] sm:$0xff]  }
  0xe0   : > { %v1001_v9 = vpop.permute.xlu0 %1000  ;;  %10269 = vmatprep.mubr.msk.bf16.mxu1 %vm1265_vm10, %v10548_v7  ;;  %v10555_v20 = vld [vmem:[#allocation3 + $0x1c] sm:$0xff]   ;;  %v10567_v57 = vld [vmem:[#allocation3 + $0x14] sm:$0xff]  }
  0xe1   : > { %v1142_v11 = vsel %vm1130_vm15, %v1125_v55, %v1001_v9  ;;  %v10561_v35 = vld [vmem:[#allocation3 + $0x18] sm:$0xff]   ;;  %v10587_v9 = vld [vmem:[%s13571_s1 + $0xc0] sm:$0xff]  }
  0xe2   : > { %v1164_v10 = vsel %vm1147_vm0, %v1142_v11, %v1049_v8  ;;  %v747_v14 = vpop.permute.xlu1 %746  ;;  %v10571_v59 = vld [vmem:[#allocation3 + $0x18] sm:$0xff]   ;;  %v10584_v11 = vld [vmem:[#allocation3 + $0x30] sm:$0xff]  }
  0xe3   : > { %1195 = vst.msk [vmem:[#allocation3 + $0x24] sm:$0xf] %vm1172_vm8, %v1164_v10  ;;  %v10572_v62 = vld [vmem:[#allocation3 + $0x1c] sm:$0xff]  }
  0xe4   : > { %v699_v15 = vpop.permute.xlu0 %698  ;;  %v10581_v55 = vld [vmem:[#allocation3 + $0x1c] sm:$0xff]  }
  0xe5   : > { %v1075_v29 = vsel %vm1054_vm11, %v10953_v28, %v699_v15  ;;  %v10591_v15 = vld [vmem:[#allocation3 + $0x30] sm:$0xff]   ;;  %v10609_v28 = vld [vmem:[%s13573_s3 + $0xe8] sm:$0xff]  }
  0xe6   : > { %10256 = vmatmul.mubr.msk.bf16.vlgmr.msra.gmra.mxu0 %vm1265_vm10, %v10552_v6  ;;  %v851_v21 = vpop.permute.xlu1 %850  ;;  %v1093_v32 = vsel %vm1079_vm12, %v1075_v29, %v747_v14  ;;  %v10611_v29 = vld [vmem:[%s13573_s3 + $0x128] sm:$0xff]  }
  0xe7   : > { %10270 = vmatmul.mubr.msk.bf16.vlgmr.msra.gmra.mxu1 %vm1265_vm10, %v10553_v17  ;;  %10259 = vmatprep.mubr.msk.bf16.mxu0 %vm1265_vm10, %v10554_v38  ;;  %v1110_v33 = vsel %vm1096_vm13, %v1093_v32, %v851_v21  ;;  %v10592_v38 = vld [vmem:[#allocation3 + $0x38] sm:$0xff]   ;;  %v10598_v21 = vld [vmem:[%s13573_s3 + $0x108] sm:$0xff]   ;;  %v10617_v32 = vld [vmem:[%s13573_s3 + $0x120] sm:$0xff]  }
  0xe8   : > { %v701_v22 = vpop.permute.xlu0 %700  ;;  %10273 = vmatprep.mubr.msk.bf16.mxu1 %vm1265_vm10, %v10555_v20  ;;  %10278 = vmatpush3.bf16.msra.mxu0 %v1811_v18  ;;  %v11538_v18 = vld [vmem:[#allocation5] sm:$0xff]  ;;  %v10595_v20 = vld [vmem:[%s13573_s3 + $0xd8] sm:$0xff]  }
  0xe9   : > { %10279 = vmatprep.subr.bf16.mxu0 %v10558_v12  ;;  %10292 = vmatpush3.bf16.msra.mxu1 %v1952_v44  ;;  %v1078_v24 = vsel %vm1054_vm11, %v10954_v43, %v701_v22  ;;  %2495 = vst.msk [vmem:[#allocation4 + $0x10] sm:$0xf] %vm2489_vm1, %v11538_v18  ;;  %2490 = vst.msk [vmem:[#allocation4] sm:$0xf] %vm2489_vm1, %v11538_v18  ;;  %v10596_v44 = vld [vmem:[%s13573_s3 + $0x110] sm:$0xff]   ;;  %v10599_v22 = vld [vmem:[%s13573_s3 + $0xc8] sm:$0xff]  }
  0xea   : > { %10293 = vmatprep.subr.bf16.mxu1 %v10566_v19  ;;  %v899_v56 = vpop.permute.xlu1 %898  ;;  %v10557_v25 = vld [vmem:[#allocation3 + $0x20] sm:$0xff]   ;;  %2496 = vst.msk [vmem:[#allocation4 + $0x14] sm:$0x3] %vm2491_vm2, %v11538_v18  ;;  %2492 = vst.msk [vmem:[#allocation4 + $0x4] sm:$0x3] %vm2491_vm2, %v11538_v18 }
  0xeb   : > { %v1127_v34 = vsel %vm1113_vm14, %v1110_v33, %v899_v56  ;;  %v10562_v42 = vld [vmem:[#allocation3 + $0x20] sm:$0xff]   ;;  %2493 = vst.msk [vmem:[#allocation4 + $0x8] sm:$0xf] %vm2489_vm1, %v11538_v18  ;;  %2497 = vst.msk [vmem:[#allocation4 + $0x18] sm:$0xf] %vm2489_vm1, %v11538_v18  ;;  %v10602_v56 = vld [vmem:[%s13573_s3 + $0xf8] sm:$0xff]   ;;  %v11723_v33 = vcombine.high %v11538_v18, %v11538_v18 }
  0xec   : > { %v749_v23 = vpop.permute.xlu0 %748  ;;  %10280 = vmatpush3.bf16.msra.mxu0 %v10558_v12  ;;  %v10576_v60 = vld [vmem:[#allocation3 + $0x20] sm:$0xff]   ;;  %v10590_v12 = vld [vmem:[#allocation3 + $0x34] sm:$0xff]   ;;  %2494 = vst.msk [vmem:[#allocation4 + $0xc] sm:$0x3] %vm2491_vm2, %v11538_v18  ;;  %2498 = vst.msk [vmem:[#allocation4 + $0x1c] sm:$0x3] %vm2491_vm2, %v11538_v18 }
  0xed   : > { %10281 = vmatprep.subr.bf16.mxu0 %v10560_v40  ;;  %10294 = vmatpush3.bf16.msra.mxu1 %v10566_v19  ;;  %v1095_v46 = vsel %vm1079_vm12, %v1078_v24, %v749_v23  ;;  %v10585_v10 = vld [vmem:[#allocation3 + $0x20] sm:$0xff]   ;;  %2499 = vst.msk [vmem:[#allocation4 + $0x20] sm:$0xf] %vm2489_vm1, %v11538_v18  ;;  %2501 = vst.msk [vmem:[#allocation4 + $0x28] sm:$0xf] %vm2489_vm1, %v11538_v18  ;;  %v10594_v19 = vld [vmem:[%s13573_s3 + $0x118] sm:$0xff]  }
  0xee   : > { %10260 = vmatmul.mubr.msk.bf16.gmra.mxu0 %vm1265_vm10, %v10557_v25  ;;  %10295 = vmatprep.subr.bf16.mxu1 %v10569_v16  ;;  %v1003_v30 = vpop.permute.xlu1 %1002  ;;  %2500 = vst.msk [vmem:[#allocation4 + $0x24] sm:$0x3] %vm2491_vm2, %v11538_v18  ;;  %2502 = vst.msk [vmem:[#allocation4 + $0x2c] sm:$0x3] %vm2491_vm2, %v11538_v18  ;;  %v10603_v23 = vld [vmem:[%s13573_s3 + $0xb8] sm:$0xff]   ;;  %v10605_v25 = vld [vmem:[%s13573_s3 + $0xf0] sm:$0xff]  }
  0xef   : > { %10283 = vmatprep.mubr.msk.bf16.mxu0 %vm1265_vm10, %v10559_v1  ;;  %v1144_v39 = vsel %vm1130_vm15, %v1127_v34, %v1003_v30  ;;  %2503 = vst.msk [vmem:[#allocation4 + $0x30] sm:$0xf] %vm2489_vm1, %v11538_v18  ;;  %2505 = vst.msk [vmem:[#allocation4 + $0x38] sm:$0xf] %vm2489_vm1, %v11538_v18  ;;  %v10604_v1 = vld [vmem:[%s13573_s3 + $0x138] sm:$0xff]   ;;  %v10610_v30 = vld [vmem:[%s13573_s3 + $0xa8] sm:$0xff]  }
  0xf0   : > { %v853_v31 = vpop.permute.xlu0 %852  ;;  %10282 = vmatpush3.bf16.msra.mxu0 %v10560_v40  ;;  %2504 = vst.msk [vmem:[#allocation4 + $0x34] sm:$0x3] %vm2491_vm2, %v11538_v18  ;;  %2506 = vst.msk [vmem:[#allocation4 + $0x3c] sm:$0x3] %vm2491_vm2, %v11538_v18  ;;  %v10600_v40 = vld [vmem:[%s13573_s3 + $0x100] sm:$0xff]  }
  0xf1   : > { %10465 = vmatprep.subr.msk.bf16.mxu0 %vm1278_vm9, %v10564_v49  ;;  %10296 = vmatpush3.bf16.msra.mxu1 %v10569_v16  ;;  %v1112_v47 = vsel %vm1096_vm13, %v1095_v46, %v853_v31  ;;  %2959 = vst.msk [vmem:[#allocation5 + $0x8] sm:$0xf] %vm2489_vm1, %v11538_v18  ;;  %2961 = vst.msk [vmem:[#allocation5 + $0x14] sm:$0xf] %vm2489_vm1, %v11538_v18  ;;  %v10597_v49 = vld [vmem:[%s13573_s3 + $0xd0] sm:$0xff]   ;;  %v10601_v16 = vld [vmem:[%s13573_s3 + $0xc0] sm:$0xff]  }
  0xf2   : > { %10466 = vmatprep.subr.msk.bf16.mxu1 %vm1278_vm9, %v10575_v27  ;;  %v1051_v41 = vpop.permute.xlu1 %1050  ;;  %2963 = vst.msk [vmem:[#allocation5 + $0x20] sm:$0xf] %vm2489_vm1, %v11538_v18  ;;  %2965 = vst.msk [vmem:[#allocation5 + $0x2c] sm:$0xf] %vm2489_vm1, %v11538_v18  ;;  %v10606_v27 = vld [vmem:[%s13573_s3 + $0xb0] sm:$0xff]   ;;  %v10615_v31 = vld [vmem:[%s13573_s3 + $0xe0] sm:$0xff]  }
  0xf3   : > { %v1167_v45 = vsel %vm1147_vm0, %v1144_v39, %v1051_v41  ;;  %2967 = vst.msk [vmem:[#allocation5 + $0x38] sm:$0xf] %vm2489_vm1, %v11538_v18  ;;  %2969 = vst.msk [vmem:[#allocation5 + $0x44] sm:$0xf] %vm2489_vm1, %v11538_v18  ;;  %v11735_v39 = vcombine.low %v11538_v18, %v11538_v18  ;;  %vm5940_vm2 = vsmask.f32 7938 }
  0xf4   : > { %v901_v0 = vpop.permute.xlu0 %900  ;;  %1196 = vst.msk [vmem:[#allocation3 + $0x28] sm:$0xf] %vm1172_vm8, %v1167_v45  ;;  %13587 = vst [vmem:[#allocation10_spill] sm:$0xff] %v11723_v33 }
  0xf5   : > { %v1129_v50 = vsel %vm1113_vm14, %v1112_v47, %v901_v0  ;;  %2971 = vst.msk [vmem:[#allocation5 + $0x50] sm:$0xf] %vm2489_vm1, %v11538_v18  ;;  %2973 = vst.msk [vmem:[#allocation5 + $0x5c] sm:$0xf] %vm2489_vm1, %v11538_v18  ;;  %vm6185_vm14 = vcmask 1043456  }
  0xf6   : > { %10284 = vmatmul.mubr.msk.bf16.vlgmr.msra.gmra.mxu0 %vm1265_vm10, %v10561_v35  ;;  %v1053_v13 = vpop.permute.xlu1 %1052  ;;  %2975 = vst.msk [vmem:[#allocation5 + $0x68] sm:$0xf] %vm2489_vm1, %v11538_v18  ;;  %2977 = vst.msk [vmem:[#allocation5 + $0x74] sm:$0xf] %vm2489_vm1, %v11538_v18  ;;  %v10616_v35 = vld [vmem:[%s13573_s3 + $0xa0] sm:$0xff]  }
  0xf7   : > { %10287 = vmatprep.mubr.msk.bf16.mxu0 %vm1265_vm10, %v10562_v42  ;;  %10306 = vmatpush3.bf16.msra.mxu0 %v2093_v26  ;;  %2979 = vst.msk [vmem:[#allocation5 + $0x80] sm:$0xf] %vm2489_vm1, %v11538_v18  ;;  %2981 = vst.msk [vmem:[#allocation5 + $0x8c] sm:$0xf] %vm2489_vm1, %v11538_v18  ;;  %v10607_v26 = vld [vmem:[%s13573_s3 + $0x130] sm:$0xff]  }
  0xf8   : > { %v1005_v51 = vpop.permute.xlu0 %1004  ;;  %10307 = vmatprep.subr.bf16.mxu0 %v10568_v37  ;;  %2983 = vst.msk [vmem:[#allocation5 + $0x98] sm:$0xf] %vm2489_vm1, %v11538_v18  ;;  %2985 = vst.msk [vmem:[#allocation5 + $0xa4] sm:$0xf] %vm2489_vm1, %v11538_v18 }
  0xf9   : > { %v1146_v52 = vsel %vm1130_vm15, %v1129_v50, %v1005_v51  ;;  %5811 = vst.msk [vmem:[#allocation6] sm:$0xf] %vm2489_vm1, %v11538_v18  ;;  %5813 = vst.msk [vmem:[#allocation6 + $0x8] sm:$0xf] %vm2489_vm1, %v11538_v18  ;;  %v10621_v34 = vld [vmem:[#allocation5 + $0x14] ss:$12 sps:$4 sm:$0xff]  }
  0xfa   : > { %v1170_v36 = vsel %vm1147_vm0, %v1146_v52, %v1053_v13  ;;  %5815 = vst.msk [vmem:[#allocation6 + $0x10] sm:$0xf] %vm2489_vm1, %v11538_v18  ;;  %5817 = vst.msk [vmem:[#allocation6 + $0x18] sm:$0xf] %vm2489_vm1, %v11538_v18  ;;  %vm6186_vm15 = vcmask 523268  }
  0xfb   : > { %1197 = vst.msk [vmem:[#allocation3 + $0x2c] sm:$0xf] %vm1172_vm8, %v1170_v36  ;;  %10308 = vmatpush3.bf16.msra.mxu0 %v10568_v37  ;;  %v10565_v54 = vld [vmem:[#allocation3 + $0x24] sm:$0xff]   ;;  %v10622_v37 = vld [vmem:[%s13573_s3 + $0x78] sm:$0xff]   ;;  %13588 = vst [vmem:[#allocation11_spill] sm:$0xff] %v11735_v39 }
  0xfc   : > { %10309 = vmatprep.subr.bf16.mxu0 %v10573_v48  ;;  %10274 = vmatmul.mubr.msk.bf16.gmra.mxu1 %vm1265_vm10, %v10565_v54  ;;  %v10574_v2 = vld [vmem:[#allocation3 + $0x24] sm:$0xff]   ;;  %5819 = vst.msk [vmem:[#allocation6 + $0x20] sm:$0xf] %vm2489_vm1, %v11538_v18  ;;  %5821 = vst.msk [vmem:[#allocation6 + $0x28] sm:$0xf] %vm2489_vm1, %v11538_v18 }
  0xfd   : > { %10297 = vmatprep.mubr.msk.bf16.mxu1 %vm1265_vm10, %v10567_v57  ;;  %v10586_v6 = vld [vmem:[#allocation3 + $0x24] sm:$0xff]   ;;  %5823 = vst.msk [vmem:[#allocation6 + $0x30] sm:$0xf] %vm2489_vm1, %v11538_v18  ;;  %5825 = vst.msk [vmem:[#allocation6 + $0x38] sm:$0xf] %vm2489_vm1, %v11538_v18 }
  0xfe   : > { %7404 = vst.msk [vmem:[#allocation8] sm:$0xf] %vm2489_vm1, %v11538_v18  ;;  %7406 = vst.msk [vmem:[#allocation8 + $0x8] sm:$0xf] %vm2489_vm1, %v11538_v18 }
  0xff   : > { %10310 = vmatpush3.bf16.msra.mxu0 %v10573_v48  ;;  %7408 = vst.msk [vmem:[#allocation8 + $0x10] sm:$0xf] %vm2489_vm1, %v11538_v18  ;;  %7410 = vst.msk [vmem:[#allocation8 + $0x18] sm:$0xf] %vm2489_vm1, %v11538_v18 }
 0x100   : > { %10467 = vmatprep.subr.msk.bf16.mxu0 %vm1278_vm9, %v10577_v53  ;;  %7412 = vst.msk [vmem:[#allocation8 + $0x20] sm:$0xf] %vm2489_vm1, %v11538_v18  ;;  %7414 = vst.msk [vmem:[#allocation8 + $0x28] sm:$0xf] %vm2489_vm1, %v11538_v18 }
 0x101   : > { %7416 = vst.msk [vmem:[#allocation8 + $0x30] sm:$0xf] %vm2489_vm1, %v11538_v18  ;;  %7418 = vst.msk [vmem:[#allocation8 + $0x38] sm:$0xf] %vm2489_vm1, %v11538_v18 }
 0x102   : > { %v10570_v58 = vld [vmem:[#allocation3 + $0x28] sm:$0xff]   ;;  %5812 = vst.msk [vmem:[#allocation6 + $0x4] sm:$0x1] %vm2573_vm3, %v11538_v18  ;;  %5814 = vst.msk [vmem:[#allocation6 + $0xc] sm:$0x1] %vm2573_vm3, %v11538_v18 }
 0x103   : > { %10288 = vmatmul.mubr.msk.bf16.gmra.mxu0 %vm1265_vm10, %v10570_v58  ;;  %v10578_v7 = vld [vmem:[#allocation3 + $0x28] sm:$0xff]   ;;  %5816 = vst.msk [vmem:[#allocation6 + $0x14] sm:$0x1] %vm2573_vm3, %v11538_v18  ;;  %5818 = vst.msk [vmem:[#allocation6 + $0x1c] sm:$0x1] %vm2573_vm3, %v11538_v18 }
 0x104   : > { %10311 = vmatprep.mubr.msk.bf16.mxu0 %vm1265_vm10, %v10571_v59  ;;  %10298 = vmatmul.mubr.msk.bf16.vlgmr.msra.gmra.mxu1 %vm1265_vm10, %v10572_v62  ;;  %v10579_v8 = vld [vmem:[#allocation3 + $0x2c] sm:$0xff]   ;;  %5820 = vst.msk [vmem:[#allocation6 + $0x24] sm:$0x1] %vm2573_vm3, %v11538_v18  ;;  %5822 = vst.msk [vmem:[#allocation6 + $0x2c] sm:$0x1] %vm2573_vm3, %v11538_v18 }
 0x105   : > { %10301 = vmatprep.mubr.msk.bf16.mxu1 %vm1265_vm10, %v10574_v2  ;;  %10320 = vmatpush3.bf16.msra.mxu1 %v2234_v63  ;;  %v10588_v14 = vld [vmem:[#allocation3 + $0x2c] sm:$0xff]   ;;  %5824 = vst.msk [vmem:[#allocation6 + $0x34] sm:$0x1] %vm2573_vm3, %v11538_v18  ;;  %5826 = vst.msk [vmem:[#allocation6 + $0x3c] sm:$0x1] %vm2573_vm3, %v11538_v18 }
 0x106   : > { %10321 = vmatprep.subr.bf16.mxu1 %v10580_v61  ;;  %v10589_v17 = vld [vmem:[#allocation3 + $0x28] sm:$0xff]   ;;  %7405 = vst.msk [vmem:[#allocation8 + $0x4] sm:$0x1] %vm2573_vm3, %v11538_v18  ;;  %7407 = vst.msk [vmem:[#allocation8 + $0xc] sm:$0x1] %vm2573_vm3, %v11538_v18 }
 0x107   : > { %7409 = vst.msk [vmem:[#allocation8 + $0x14] sm:$0x1] %vm2573_vm3, %v11538_v18  ;;  %7411 = vst.msk [vmem:[#allocation8 + $0x1c] sm:$0x1] %vm2573_vm3, %v11538_v18 }
 0x108   : > { %7413 = vst.msk [vmem:[#allocation8 + $0x24] sm:$0x1] %vm2573_vm3, %v11538_v18  ;;  %7415 = vst.msk [vmem:[#allocation8 + $0x2c] sm:$0x1] %vm2573_vm3, %v11538_v18 }
 0x109   : > { %10322 = vmatpush3.bf16.msra.mxu1 %v10580_v61  ;;  %7417 = vst.msk [vmem:[#allocation8 + $0x34] sm:$0x1] %vm2573_vm3, %v11538_v18  ;;  %7419 = vst.msk [vmem:[#allocation8 + $0x3c] sm:$0x1] %vm2573_vm3, %v11538_v18 }
 0x10a   : > { %10323 = vmatprep.subr.bf16.mxu1 %v10583_v5  ;;  %vm12544_vm0 = vmor %vm6186_vm15, %vm6185_vm14 }
 0x10b   : > { %10312 = vmatmul.mubr.msk.bf16.vlgmr.msra.gmra.mxu0 %vm1265_vm10, %v10576_v60  ;;  %v10243_v0 = vpop.f32.mrf.mxu1 }
 0x10c   : > { %10315 = vmatprep.mubr.msk.bf16.mxu0 %vm1265_vm10, %v10578_v7  ;;  %10334 = vmatpush3.bf16.msra.mxu0 %v2375_v3 }
 0x10d   : > { %10335 = vmatprep.subr.bf16.mxu0 %v10582_v4  ;;  %10302 = vmatmul.mubr.msk.bf16.gmra.mxu1 %vm1265_vm10, %v10579_v8  ;;  %v1433_v43 = vpop.f32.mrf.mxu1 }
 0x10e   : > { %10325 = vmatprep.mubr.msk.bf16.mxu1 %vm1265_vm10, %v10581_v55  ;;  %10324 = vmatpush3.bf16.msra.mxu1 %v10583_v5 }
 0x10f   : > { %9885 = vmatprep.subr.bf16.mxu1 %v10594_v19  ;;  %v10244_v45 = vpop.f32.mrf.mxu1 }
 0x110   : > { %10336 = vmatpush3.bf16.msra.mxu0 %v10582_v4 }
 0x111   : > { %10337 = vmatprep.subr.bf16.mxu0 %v10587_v9  ;;  %v1436_v47 = vpop.f32.mrf.mxu1 }
 0x113   : > { %10316 = vmatmul.mubr.msk.bf16.gmra.mxu0 %vm1265_vm10, %v10584_v11 }
 0x114   : > { %10339 = vmatprep.mubr.msk.bf16.mxu0 %vm1265_vm10, %v10585_v10  ;;  %10338 = vmatpush3.bf16.msra.mxu0 %v10587_v9 }
 0x115   : > { %10326 = vmatmul.mubr.msk.bf16.vlgmr.msra.gmra.mxu1 %vm1265_vm10, %v10586_v6  ;;  %10347 = vmatprep.subr.bf16.mxu0 %v10604_v1 }
 0x116   : > { %10329 = vmatprep.mubr.msk.bf16.mxu1 %vm1265_vm10, %v10588_v14  ;;  %9886 = vmatpush3.bf16.msra.mxu1 %v10595_v20 }
 0x117   : > { %9887 = vmatprep.subr.bf16.mxu1 %v10596_v44 }
 0x11a   : > { %9888 = vmatpush3.bf16.msra.mxu1 %v10597_v49 }
 0x11b   : > { %10340 = vmatmul.mubr.msk.bf16.vlgmr.msra.gmra.mxu0 %vm1265_vm10, %v10589_v17  ;;  %9889 = vmatprep.subr.bf16.mxu1 %v10598_v21 }
 0x11c   : > { %10343 = vmatprep.mubr.msk.bf16.mxu0 %vm1265_vm10, %v10591_v15  ;;  %10348 = vmatpush3.bf16.msra.mxu0 %v10604_v1 }
 0x11d   : > { %10330 = vmatmul.mubr.msk.bf16.gmra.mxu1 %vm1265_vm10, %v10590_v12  ;;  %10349 = vmatprep.subr.bf16.mxu0 %v10607_v26 }
 0x11e   : > { %9890 = vmatpush3.bf16.msra.mxu1 %v10599_v22  ;;  %3413 = vmatprep.mubr.bf16.mxu1 %v11723_v33 }
 0x11f   : > { %9891 = vmatprep.subr.bf16.mxu1 %v10600_v40 }
 0x120   : > { %10350 = vmatpush3.bf16.msra.mxu0 %v10607_v26 }
 0x121   : > { %10351 = vmatprep.subr.bf16.mxu0 %v10611_v29 }
 0x122   : > { %9892 = vmatpush3.bf16.msra.mxu1 %v10601_v16 }
 0x123   : > { %10344 = vmatmul.mubr.msk.bf16.gmra.mxu0 %vm1265_vm10, %v10592_v38  ;;  %9893 = vmatprep.subr.bf16.mxu1 %v10602_v56 }
 0x124   : > { %10352 = vmatpush3.bf16.msra.mxu0 %v10611_v29  ;;  %10355 = vmatprep.mubr.msk.bf16.mxu0 %vm2909_vm4, %v10621_v34 }
 0x125   : > { %10353 = vmatprep.subr.bf16.mxu0 %v10617_v32 }
 0x126   : > { %9894 = vmatpush3.bf16.msra.mxu1 %v10603_v23 }
 0x127   : > { %9895 = vmatprep.subr.bf16.mxu1 %v10605_v25 }
 0x128   : > { %10354 = vmatpush3.bf16.msra.mxu0 %v10617_v32 }
 0x129   : > { %9933 = vmatprep.subr.bf16.mxu0 %v10622_v37 }
 0x12a   : > { %9896 = vmatpush3.bf16.msra.mxu1 %v10606_v27 }
 0x12b   : > { %9897 = vmatprep.subr.bf16.mxu1 %v10609_v28 }
 0x12e   : > { %9898 = vmatpush3.bf16.msra.mxu1 %v10610_v30 }
 0x12f   : > { %9899 = vmatprep.subr.bf16.mxu1 %v10615_v31 }
 0x132   : > { %9900 = vmatpush3.bf16.msra.mxu1 %v10616_v35 }
 0x135   : > { %3414 = vmatmul.mubr.bf16.vlgmr.msra.gmra.mxu1 %v11735_v39 }
 0x177   : > { %v10229_v41 = vpop.f32.mrf.mxu0 }
 0x178   : > { %v1442_v21 = vadd.f32 %v10243_v0, %v10229_v41 }
 0x179   : > { %v1316_v42 = vpop.f32.mrf.mxu0 }
 0x17a   : > { %v1434_v16 = vadd.f32 %v1433_v43, %v1316_v42 }
 0x17b   : > { %v10230_v24 = vpop.f32.mrf.mxu0 }
 0x17c   : > { %v1445_v25 = vadd.f32 %v10244_v45, %v10230_v24 }
 0x17d   : > { %v1319_v46 = vpop.f32.mrf.mxu0 }
 0x17e   : > { %v1437_v32 = vadd.f32 %v1436_v47, %v1319_v46 }
 0x19e   : > { %v10233_v48 = vpop.f32.mrf.mxu0 }
 0x19f   : > { %v10247_v50 = vpop.f32.mrf.mxu1 }
 0x1a0   : > { %v1332_v51 = vpop.f32.mrf.mxu0  ;;  %v1458_v33 = vadd.f32 %v10247_v50, %v10233_v48 }
 0x1a1   : > { %v1449_v52 = vpop.f32.mrf.mxu1 }
 0x1a2   : > { %v10234_v13 = vpop.f32.mrf.mxu0 }
 0x1a3   : > { %v10248_v54 = vpop.f32.mrf.mxu1 }
 0x1a4   : > { %v1335_v36 = vpop.f32.mrf.mxu0  ;;  %v1461_v24 = vadd.f32 %v10248_v54, %v10234_v13 }
 0x1a5   : > { %v1452_v59 = vpop.f32.mrf.mxu1 }
 0x1a6   : > { %v10257_v53 = vpop.f32.mrf.mxu0 }
 0x1a7   : > { %v10271_v63 = vpop.f32.mrf.mxu1  ;;  %v1599_v56 = vadd.f32 %v10257_v53, %v1442_v21  ;;  %v1450_v21 = vadd.f32 %v1449_v52, %v1332_v51 }
 0x1a8   : > { %v1566_v57 = vpop.f32.mrf.mxu0 }
 0x1a9   : > { %v1707_v60 = vpop.f32.mrf.mxu1  ;;  %v1597_v26 = vadd.f32 %v1566_v57, %v1434_v16  ;;  %v1740_v29 = vadd.f32 %v10271_v63, %v1599_v56  ;;  %v1453_v16 = vadd.f32 %v1452_v59, %v1335_v36  ;;  %v11747_v36 = vld [vmem:[%s13572_s2] ss:$0 sm:$0xff] }
 0x1aa   : > { %v10258_v58 = vpop.f32.mrf.mxu0 }
 0x1ab   : > { %v10272_v7 = vpop.f32.mrf.mxu1  ;;  %v1600_v30 = vadd.f32 %v10258_v58, %v1445_v25  ;;  %v1738_v35 = vadd.f32 %v1707_v60, %v1597_v26 }
 0x1ac   : > { %v1569_v61 = vpop.f32.mrf.mxu0 }
 0x1ad   : > { %v1710_v55 = vpop.f32.mrf.mxu1  ;;  %v1598_v41 = vadd.f32 %v1569_v61, %v1437_v32 }
 0x1ae   : > { %v10261_v62 = vpop.f32.mrf.mxu0 }
 0x1af   : > { %v1603_v45 = vadd.f32 %v10261_v62, %v1458_v33  ;;  %v1739_v47 = vadd.f32 %v1710_v55, %v1598_v41 }
 0x1b0   : > { %v1582_v2 = vpop.f32.mrf.mxu0 }
 0x1b1   : > { %v1601_v60 = vadd.f32 %v1582_v2, %v1450_v21 }
 0x1b2   : > { %v10262_v3 = vpop.f32.mrf.mxu0 }
 0x1b4   : > { %v1585_v4 = vpop.f32.mrf.mxu0 }
 0x1b5   : > { %v1602_v50 = vadd.f32 %v1585_v4, %v1453_v16 }
 0x1b6   : > { %v10285_v5 = vpop.f32.mrf.mxu0 }
 0x1b7   : > { %v1880_v37 = vadd.f32 %v10285_v5, %v1740_v29  ;;  %v1604_v5 = vadd.f32 %v10262_v3, %v1461_v24 }
 0x1b8   : > { %v1847_v8 = vpop.f32.mrf.mxu0 }
 0x1b9   : > { %v1878_v42 = vadd.f32 %v1847_v8, %v1738_v35 }
 0x1ba   : > { %v10286_v9 = vpop.f32.mrf.mxu0 }
 0x1bc   : > { %v10275_v11 = vpop.f32.mrf.mxu1  ;;  %v1850_v6 = vpop.f32.mrf.mxu0 }
 0x1bd   : > { %v1744_v25 = vadd.f32 %v10275_v11, %v1603_v45  ;;  %v1879_v26 = vadd.f32 %v1850_v6, %v1739_v47 }
 0x1be   : > { %v1723_v10 = vpop.f32.mrf.mxu1 }
 0x1bf   : > { %v1742_v51 = vadd.f32 %v1723_v10, %v1601_v60 }
 0x1c0   : > { %v10276_v14 = vpop.f32.mrf.mxu1 }
 0x1c1   : > { %v1745_v13 = vadd.f32 %v10276_v14, %v1604_v5 }
 0x1c2   : > { %v1726_v17 = vpop.f32.mrf.mxu1 }
 0x1c3   : > { %v10289_v15 = vpop.f32.mrf.mxu0  ;;  %v1743_v54 = vadd.f32 %v1726_v17, %v1602_v50 }
 0x1c4   : > { %v10299_v38 = vpop.f32.mrf.mxu1  ;;  %v1884_v33 = vadd.f32 %v10289_v15, %v1744_v25 }
 0x1c5   : > { %v11738_v12 = vpop.f32.mrf.mxu0  ;;  %v2021_v43 = vadd.f32 %v10299_v38, %v1880_v37 }
 0x1c6   : > { %v1988_v19 = vpop.f32.mrf.mxu1  ;;  %v1882_v4 = vadd.f32 %v11738_v12, %v1742_v51 }
 0x1c7   : > { %v11740_v18 = vpop.f32.mrf.mxu0  ;;  %v2019_v58 = vadd.f32 %v1988_v19, %v1878_v42 }
 0x1c8   : > { %v10300_v44 = vpop.f32.mrf.mxu1  ;;  %v1885_v55 = vadd.f32 %v11740_v18, %v1745_v13 }
 0x1c9   : > { %v11742_v20 = vpop.f32.mrf.mxu0 }
 0x1ca   : > { %13589 = vst [vmem:[#allocation12_spill] sm:$0xff] %v11742_v20  ;;  %v1991_v22 = vpop.f32.mrf.mxu1  ;;  %v1741_v20 = vadd.f32 %v10272_v7, %v1600_v30 }
 0x1cb   : > { %v10313_v49 = vpop.f32.mrf.mxu0 }
 0x1cc   : > { %v1881_v63 = vadd.f32 %v10286_v9, %v1741_v20  ;;  %v2162_v56 = vadd.f32 %v10313_v49, %v2021_v43  ;;  %v2020_v9 = vadd.f32 %v1991_v22, %v1879_v26 }
 0x1cd   : > { %v2129_v40 = vpop.f32.mrf.mxu0  ;;  %v10303_v23 = vpop.f32.mrf.mxu1 }
 0x1ce   : > { %v2022_v61 = vadd.f32 %v10300_v44, %v1881_v63  ;;  %v2160_v7 = vadd.f32 %v2129_v40, %v2019_v58  ;;  %v2025_v11 = vadd.f32 %v10303_v23, %v1884_v33 }
 0x1cf   : > { %v10314_v1 = vpop.f32.mrf.mxu0  ;;  %v2004_v27 = vpop.f32.mrf.mxu1 }
 0x1d0   : > { %v2163_v59 = vadd.f32 %v10314_v1, %v2022_v61  ;;  %v2023_v17 = vadd.f32 %v2004_v27, %v1882_v4 }
 0x1d1   : > { %v2132_v28 = vpop.f32.mrf.mxu0  ;;  %v10304_v31 = vpop.f32.mrf.mxu1  ;;  %v13590_v6 = vld [vmem:[#allocation12_spill] sm:$0xff] }
 0x1d2   : > { %v1883_v14 = vadd.f32 %v13590_v6, %v1743_v54  ;;  %v2161_v49 = vadd.f32 %v2132_v28, %v2020_v9  ;;  %v2026_v40 = vadd.f32 %v10304_v31, %v1885_v55 }
 0x1d3   : > { %v10317_v34 = vpop.f32.mrf.mxu0  ;;  %v2007_v39 = vpop.f32.mrf.mxu1 }
 0x1d4   : > { %v2166_v1 = vadd.f32 %v10317_v34, %v2025_v11  ;;  %v2024_v23 = vadd.f32 %v2007_v39, %v1883_v14 }
 0x1d5   : > { %v2145_v0 = vpop.f32.mrf.mxu0  ;;  %v10327_v53 = vpop.f32.mrf.mxu1 }
 0x1d6   : > { %v2303_v8 = vadd.f32 %v10327_v53, %v2162_v56  ;;  %v2164_v32 = vadd.f32 %v2145_v0, %v2023_v17 }
 0x1d7   : > { %v10318_v57 = vpop.f32.mrf.mxu0  ;;  %v2270_v46 = vpop.f32.mrf.mxu1 }
 0x1d8   : > { %v2301_v62 = vadd.f32 %v2270_v46, %v2160_v7  ;;  %v2167_v31 = vadd.f32 %v10318_v57, %v2026_v40 }
 0x1d9   : > { %v2148_v48 = vpop.f32.mrf.mxu0  ;;  %v10328_v38 = vpop.f32.mrf.mxu1 }
 0x1da   : > { %v2304_v15 = vadd.f32 %v10328_v38, %v2163_v59  ;;  %v2165_v39 = vadd.f32 %v2148_v48, %v2024_v23 }
 0x1db   : > { %v10341_v52 = vpop.f32.mrf.mxu0  ;;  %v2273_v3 = vpop.f32.mrf.mxu1 }
 0x1dc   : > { %v2444_v2 = vadd.f32 %v10341_v52, %v2303_v8  ;;  %v2302_v35 = vadd.f32 %v2273_v3, %v2161_v49 }
 0x1dd   : > { %v2411_v10 = vpop.f32.mrf.mxu0  ;;  %v10331_v44 = vpop.f32.mrf.mxu1 }
 0x1de   : > { %v2459_v19 = vadd.f32 %v11747_v36, %v2444_v2  ;;  %v2442_v20 = vadd.f32 %v2411_v10, %v2301_v62  ;;  %v2307_v37 = vadd.f32 %v10331_v44, %v2166_v1 }
 0x1df   : > { %v10342_v29 = vpop.f32.mrf.mxu0  ;;  %v2286_v22 = vpop.f32.mrf.mxu1 }
 0x1e0   : > { %vm2467_vm6 = vcmp.ge.f32.partialorder %v2459_v19, 0.0  ;;  %v2475_v30 = vmul.f32 0.01, %v2459_v19  ;;  %v2457_v12 = vadd.f32 %v11747_v36, %v2442_v20  ;;  %v2445_v18 = vadd.f32 %v10342_v29, %v2304_v15 }
 0x1e1   : > { %v2414_v41 = vpop.f32.mrf.mxu0  ;;  %v10332_v28 = vpop.f32.mrf.mxu1  ;;  %v2305_v53 = vadd.f32 %v2286_v22, %v2164_v32 }
 0x1e2   : > { %v2483_v42 = vsel %vm2467_vm6, %v2459_v19, %v2475_v30  ;;  %vm2465_vm7 = vcmp.ge.f32.partialorder %v2457_v12, 0.0  ;;  %v2473_v43 = vmul.f32 0.01, %v2457_v12  ;;  %v2460_v27 = vadd.f32 %v11747_v36, %v2445_v18 }
 0x1e3   : > { %v9800_v34 = vpack.c.bf16 %v2483_v42, %v2483_v42  ;;  %v2443_v21 = vadd.f32 %v2414_v41, %v2302_v35  ;;  %v10345_v24 = vpop.f32.mrf.mxu0  ;;  %v2308_v60 = vadd.f32 %v10332_v28, %v2167_v31  ;;  %v2289_v25 = vpop.f32.mrf.mxu1 }
 0x1e4   : > { %v2481_v45 = vsel %vm2465_vm7, %v2457_v12, %v2473_v43  ;;  %vm2468_vm8 = vcmp.ge.f32.partialorder %v2460_v27, 0.0  ;;  %v2476_v16 = vmul.f32 0.01, %v2460_v27  ;;  %v2448_v63 = vadd.f32 %v10345_v24, %v2307_v37 }
 0x1e5   : > { %v2543_v0 = vrot.slane %v9800_v34, 7  ;;  %v9798_v58 = vpack.c.bf16 %v2481_v45, %v2481_v45  ;;  %v2458_v56 = vadd.f32 %v11747_v36, %v2443_v21  ;;  %v2427_v46 = vpop.f32.mrf.mxu0  ;;  %v2306_v33 = vadd.f32 %v2289_v25, %v2165_v39 }
 0x1e6   : > { %v2484_v47 = vsel %vm2468_vm8, %v2460_v27, %v2476_v16  ;;  %v2463_v5 = vadd.f32 %v11747_v36, %v2448_v63  ;;  %v2446_v57 = vadd.f32 %v2427_v46, %v2305_v53 }
 0x1e7   : > { %v2544_v50 = vrot.slane %v2543_v0, 4  ;;  %2577 = vst.msk [vmem:[#allocation4 + $0x10] sm:$0xe] %vm2571_vm5, %v2543_v0  ;;  %v2539_v61 = vrot.slane %v9798_v58, 7  ;;  %v9801_v7 = vpack.c.bf16 %v2484_v47, %v2484_v47  ;;  %vm2466_vm9 = vcmp.ge.f32.partialorder %v2458_v56, 0.0  ;;  %v10346_v8 = vpop.f32.mrf.mxu0 }
 0x1e8   : > { %v2474_v38 = vmul.f32 0.01, %v2458_v56  ;;  %vm2471_vm10 = vcmp.ge.f32.partialorder %v2463_v5, 0.0  ;;  %v2479_v48 = vmul.f32 0.01, %v2463_v5  ;;  %v2461_v26 = vadd.f32 %v11747_v36, %v2446_v57 }
 0x1e9   : > { %2578 = vst.msk [vmem:[#allocation4 + $0x14] sm:$0x1] %vm2573_vm3, %v2544_v50  ;;  %v2540_v51 = vrot.slane %v2539_v61, 4  ;;  %v2545_v13 = vrot.slane %v9801_v7, 7  ;;  %v2449_v52 = vadd.f32 %v10346_v8, %v2308_v60  ;;  %v2430_v54 = vpop.f32.mrf.mxu0 }
 0x1ea   : > { %2572 = vst.msk [vmem:[#allocation4] sm:$0xe] %vm2571_vm5, %v2539_v61  ;;  %v2482_v59 = vsel %vm2466_vm9, %v2458_v56, %v2474_v38  ;;  %v2487_v62 = vsel %vm2471_vm10, %v2463_v5, %v2479_v48  ;;  %vm2469_vm11 = vcmp.ge.f32.partialorder %v2461_v26, 0.0  ;;  %v2477_v2 = vmul.f32 0.01, %v2461_v26  ;;  %vm12830_vm9 = vmand %vm2489_vm1, %vm5940_vm2 }
 0x1eb   : > { %2574 = vst.msk [vmem:[#allocation4 + $0x4] sm:$0x1] %vm2573_vm3, %v2540_v51  ;;  %v2546_v3 = vrot.slane %v2545_v13, 4  ;;  %v9799_v4 = vpack.c.bf16 %v2482_v59, %v2482_v59  ;;  %v9804_v55 = vpack.c.bf16 %v2487_v62, %v2487_v62  ;;  %v2464_v9 = vadd.f32 %v11747_v36, %v2449_v52 }
 0x1ec   : > { %2579 = vst.msk [vmem:[#allocation4 + $0x18] sm:$0xe] %vm2571_vm5, %v2545_v13  ;;  %v2485_v11 = vsel %vm2469_vm11, %v2461_v26, %v2477_v2  ;;  %v2447_v10 = vadd.f32 %v2430_v54, %v2306_v33 }
 0x1ed   : > { %2580 = vst.msk [vmem:[#allocation4 + $0x1c] sm:$0x1] %vm2573_vm3, %v2546_v3  ;;  %v2541_v6 = vrot.slane %v9799_v4, 7  ;;  %v2551_v14 = vrot.slane %v9804_v55, 7  ;;  %v9802_v15 = vpack.c.bf16 %v2485_v11, %v2485_v11  ;;  %vm2472_vm12 = vcmp.ge.f32.partialorder %v2464_v9, 0.0 }
 0x1ee   : > { %v2480_v19 = vmul.f32 0.01, %v2464_v9  ;;  %v2462_v20 = vadd.f32 %v11747_v36, %v2447_v10  ;;  %v11775_v18 = vld [vmem:[#allocation4 + $0x10] sm:$0xf] }
 0x1ef   : > { %v2542_v44 = vrot.slane %v2541_v6, 4  ;;  %2575 = vst.msk [vmem:[#allocation4 + $0x8] sm:$0xe] %vm2571_vm5, %v2541_v6  ;;  %v2552_v17 = vrot.slane %v2551_v14, 4  ;;  %2585 = vst.msk [vmem:[#allocation4 + $0x30] sm:$0xe] %vm2571_vm5, %v2551_v14 }
 0x1f0   : > { %v2547_v49 = vrot.slane %v9802_v15, 7  ;;  %v2488_v40 = vsel %vm2472_vm12, %v2464_v9, %v2480_v19  ;;  %vm2470_vm13 = vcmp.ge.f32.partialorder %v2462_v20, 0.0  ;;  %v2478_v1 = vmul.f32 0.01, %v2462_v20  ;;  %v11777_v22 = vld [vmem:[#allocation4 + $0x10] sm:$0xe] }
 0x1f1   : > { %2576 = vst.msk [vmem:[#allocation4 + $0xc] sm:$0x1] %vm2573_vm3, %v2542_v44  ;;  %2586 = vst.msk [vmem:[#allocation4 + $0x34] sm:$0x1] %vm2573_vm3, %v2552_v17  ;;  %v9805_v30 = vpack.c.bf16 %v2488_v40, %v2488_v40  ;;  %v11771_v12 = vld [vmem:[#allocation4] sm:$0xf] }
 0x1f2   : > { %v2548_v29 = vrot.slane %v2547_v49, 4  ;;  %2581 = vst.msk [vmem:[#allocation4 + $0x20] sm:$0xe] %vm2571_vm5, %v2547_v49  ;;  %v11773_v36 = vld [vmem:[#allocation4] sm:$0xe]  ;;  %v2486_v23 = vsel %vm2470_vm13, %v2462_v20, %v2478_v1 }
 0x1f3   : > { %v11779_v32 = vld [vmem:[#allocation4 + $0x4] sm:$0x1]  ;;  %v2621_v37 = vld [vmem:[#allocation4] sm:$0xc]  ;;  %v2553_v41 = vrot.slane %v9805_v30, 7  ;;  %v9803_v42 = vpack.c.bf16 %v2486_v23, %v2486_v23 }
 0x1f4   : > { %v2613_v35 = vld [vmem:[#allocation4 + $0x4] sm:$0x3]  ;;  %2582 = vst.msk [vmem:[#allocation4 + $0x24] sm:$0x1] %vm2573_vm3, %v2548_v29  ;;  %v8835_v43 = vcombine.low %v11771_v12, %v11779_v32  ;;  %v11785_v28 = vld [vmem:[#allocation4 + $0x14] sm:$0x1] }
 0x1f5   : > { %v8851_v27 = vcombine.low %v11773_v36, %v2613_v35  ;;  %v2615_v31 = vld [vmem:[#allocation4 + $0x14] sm:$0x3]  ;;  %v8859_v34 = vcombine.low %v2621_v37, %v2613_v35  ;;  %v11789_v53 = vcombine.low %v11775_v18, %v11785_v28  ;;  %v2554_v24 = vrot.slane %v2553_v41, 4  ;;  %2587 = vst.msk [vmem:[#allocation4 + $0x38] sm:$0xe] %vm2571_vm5, %v2553_v41 }
 0x1f6   : > { %v11792_v21 = vcombine.low %v11777_v22, %v2615_v31  ;;  %v2549_v45 = vrot.slane %v9803_v42, 7  ;;  %v2623_v16 = vld [vmem:[#allocation4 + $0x10] sm:$0xc]  ;;  %v11795_v63 = vld [vmem:[#allocation4 + $0x1c] sm:$0x3]  ;;  %v2672_v39 = vshll.u32 %v8835_v43, 16 }
 0x1f7   : > { %v2798_v0 = vshrl.u32 %v8851_v27, 16  ;;  %v2801_v58 = vshll.u32 %v8851_v27, 16  ;;  %v2901_v56 = vrot.slane %v8859_v34, 2  ;;  %v11797_v46 = vld [vmem:[#allocation4 + $0x1c] sm:$0x1]  ;;  %v2670_v60 = vshrl.u32 %v8835_v43, 16 }
 0x1f8   : > { %2588 = vst.msk [vmem:[#allocation4 + $0x3c] sm:$0x1] %vm2573_vm3, %v2554_v24  ;;  %v2550_v47 = vrot.slane %v2549_v45, 4  ;;  %v11801_v5 = vld [vmem:[#allocation4 + $0x8] sm:$0xf]  ;;  %v2686_v25 = vshll.u32 %v11789_v53, 16  ;;  %v8861_v48 = vcombine.low %v2623_v16, %v2615_v31 }
 0x1f9   : > { %2583 = vst.msk [vmem:[#allocation4 + $0x28] sm:$0xe] %vm2571_vm5, %v2549_v45  ;;  %v11804_v57 = vld [vmem:[#allocation4 + $0x18] sm:$0xf]  ;;  %v2674_v50 = vrot.slane %v2672_v39, 1  ;;  %v8868_v61 = vcombine.low %v2901_v56, %v2901_v56  ;;  %v2814_v38 = vshrl.u32 %v11792_v21, 16 }
 0x1fa   : > { %v11806_v7 = vld [vmem:[#allocation4 + $0xc] sm:$0x1]  ;;  %v11808_v8 = vld [vmem:[#allocation4 + $0x8] sm:$0xe]  ;;  %2584 = vst.msk [vmem:[#allocation4 + $0x2c] sm:$0x1] %vm2573_vm3, %v2550_v47  ;;  %v11818_v3 = vcombine.low %v11804_v57, %v11797_v46 }
 0x1fb   : > { %v2800_v26 = vrot.slane %v2798_v0, 1  ;;  %v2803_v51 = vrot.slane %v2801_v58, 2  ;;  %v8836_v13 = vcombine.low %v11801_v5, %v11806_v7  ;;  %v2614_v33 = vld [vmem:[#allocation4 + $0xc] sm:$0x3]  ;;  %v2622_v52 = vld [vmem:[#allocation4 + $0x8] sm:$0xc]  ;;  %v2675_v59 = vor.u32 %v2674_v50, %v2670_v60 }
 0x1fc   : > { %v2624_v54 = vld [vmem:[#allocation4 + $0x18] sm:$0xc]  ;;  %3060 = vst.msk [vmem:[#allocation5 + $0x2c] sm:$0xf] %vm2489_vm1, %v8868_v61  ;;  %v8852_v62 = vcombine.low %v11808_v8, %v2614_v33  ;;  %v8860_v2 = vcombine.low %v2622_v52, %v2614_v33  ;;  %v2684_v9 = vshrl.u32 %v11789_v53, 16  ;;  %v2688_v11 = vrot.slane %v2686_v25, 1 }
 0x1fd   : > { %v8862_v4 = vcombine.low %v2624_v54, %v11795_v63  ;;  %v2679_v55 = vshll.u32 %v8836_v13, 16  ;;  %2725 = vrot.lane.b32.xlu0 %v2675_v59, %s10991_s20  ;;  %v2903_v15 = vrot.slane %v8861_v48, 2  ;;  %v11823_v19 = vld [vmem:[#allocation4 + $0x24] sm:$0x1]  ;;  %v2677_v20 = vshrl.u32 %v8836_v13, 16 }
 0x1fe   : > { %v2806_v10 = vshrl.u32 %v8852_v62, 16  ;;  %v2809_v6 = vshll.u32 %v8852_v62, 16  ;;  %v2902_v14 = vrot.slane %v8860_v2, 2  ;;  %v11825_v17 = vrot.slane %v2814_v38, 1  ;;  %v2617_v40 = vld [vmem:[#allocation4 + $0x24] sm:$0x3] }
 0x1ff   : > { %v2681_v44 = vrot.slane %v2679_v55, 1  ;;  %v2817_v49 = vshll.u32 %v11792_v21, 16  ;;  %v2804_v1 = vor.u32 %v2803_v51, %v2800_v26  ;;  %v8872_v30 = vcombine.low %v2903_v15, %v2903_v15  ;;  %v11829_v35 = vld [vmem:[#allocation4 + $0x18] sm:$0xe]  ;;  %v11831_v37 = vld [vmem:[#allocation4 + $0x20] sm:$0xf] }
 0x200   : > { %v8870_v29 = vcombine.low %v2902_v14, %v2902_v14  ;;  %v2693_v23 = vshll.u32 %v11818_v3, 16  ;;  %v2808_v42 = vrot.slane %v2806_v10, 1  ;;  %v2811_v43 = vrot.slane %v2809_v6, 2  ;;  %v11833_v31 = vld [vmem:[#allocation4 + $0x20] sm:$0xe]  ;;  %v10626_v55 = vld [vmem:[%s13573_s3 + $0x38] sm:$0xff]  }
 0x201   : > { %v2682_v41 = vor.u32 %v2681_v44, %v2677_v20  ;;  %v2904_v27 = vrot.slane %v8862_v4, 2  ;;  %v2626_v34 = vld [vmem:[#allocation4 + $0x28] sm:$0xc]  ;;  %2861 = vrot.lane.b32.xlu0 %v2804_v1, %s10991_s20  ;;  %v2689_v53 = vor.u32 %v2688_v11, %v2684_v9  ;;  %3064 = vst.msk [vmem:[#allocation5 + $0x44] sm:$0xf] %vm2489_vm1, %v8872_v30  ;;  %v8854_v21 = vcombine.low %v11829_v35, %v11795_v63  ;;  %v10629_v20 = vld [vmem:[%s13573_s3 + $0x70] sm:$0xff]  }
 0x202   : > { %3062 = vst.msk [vmem:[#allocation5 + $0x38] sm:$0xf] %vm2489_vm1, %v8870_v29  ;;  %v11842_v24 = vcombine.low %v11831_v37, %v11823_v19  ;;  %v2625_v45 = vld [vmem:[#allocation4 + $0x20] sm:$0xc]  ;;  %v8855_v16 = vcombine.low %v11833_v31, %v2617_v40  ;;  %v2618_v39 = vld [vmem:[#allocation4 + $0x2c] sm:$0x3]  ;;  %v2812_v48 = vor.u32 %v2811_v43, %v2808_v42 }
 0x203   : > { %2727 = vrot.lane.b32.xlu1 %v2682_v41, %s10991_s20  ;;  %v2819_v0 = vrot.slane %v2817_v49, 2  ;;  %v8874_v58 = vcombine.low %v2904_v27, %v2904_v27  ;;  %v8863_v56 = vcombine.low %v2625_v45, %v2617_v40  ;;  %v8864_v47 = vcombine.low %v2626_v34, %v2618_v39  ;;  %v11846_v60 = vld [vmem:[#allocation4 + $0x2c] sm:$0x1]  ;;  %v11850_v38 = vld [vmem:[#allocation4 + $0x28] sm:$0xf]  ;;  %v10656_v29 = vld [vmem:[%s13573_s3 + $0x98] sm:$0xff]  }
 0x204   : > { %v2691_v25 = vshrl.u32 %v11818_v3, 16  ;;  %v2822_v50 = vshrl.u32 %v8854_v21, 16  ;;  %v2825_v63 = vshll.u32 %v8854_v21, 16  ;;  %v2700_v61 = vshll.u32 %v11842_v24, 16  ;;  %v11853_v33 = vld [vmem:[#allocation4 + $0x34] sm:$0x1]  ;;  %10363 = vmatprep.subr.bf16.mxu1 %v10656_v29 }
 0x205   : > { %v2695_v26 = vrot.slane %v2693_v23, 1  ;;  %3066 = vst.msk [vmem:[#allocation5 + $0x50] sm:$0xf] %vm2489_vm1, %v8874_v58  ;;  %v2905_v51 = vrot.slane %v8863_v56, 2  ;;  %v2906_v13 = vrot.slane %v8864_v47, 2  ;;  %2729 = vrot.lane.b32.xlu0 %v2689_v53, %s10991_s20  ;;  %v2830_v52 = vshrl.u32 %v8855_v16, 16  ;;  %10364 = vmatpush3.bf16.msra.mxu1 %v10656_v29 }
 0x206   : > { %v2833_v54 = vshll.u32 %v8855_v16, 16  ;;  %v11858_v59 = vcombine.low %v11850_v38, %v11846_v60  ;;  %v11860_v62 = vld [vmem:[#allocation4 + $0x30] sm:$0xf]  ;;  %v11862_v2 = vld [vmem:[#allocation4 + $0x28] sm:$0xe]  ;;  %v2820_v4 = vor.u32 %v2819_v0, %v11825_v17  ;;  %v2698_v9 = vshrl.u32 %v11842_v24, 16 }
 0x207   : > { %v11864_v3 = vld [vmem:[#allocation4 + $0x3c] sm:$0x1]  ;;  %2863 = vrot.lane.b32.xlu1 %v2812_v48, %s10991_s20  ;;  %v8876_v11 = vcombine.low %v2905_v51, %v2905_v51  ;;  %v8878_v10 = vcombine.low %v2906_v13, %v2906_v13  ;;  %v11872_v6 = vld [vmem:[#allocation4 + $0x38] sm:$0xf]  ;;  %v2619_v14 = vld [vmem:[#allocation4 + $0x34] sm:$0x3]  ;;  %v2696_v23 = vor.u32 %v2695_v26, %v2691_v25  ;;  %v8841_v41 = vcombine.low %v11860_v62, %v11853_v33 }
 0x208   : > { %v2627_v15 = vld [vmem:[#allocation4 + $0x30] sm:$0xc]  ;;  %v2824_v44 = vrot.slane %v2822_v50, 1  ;;  %v2827_v49 = vrot.slane %v2825_v63, 2  ;;  %v2702_v40 = vrot.slane %v2700_v61, 1  ;;  %v2707_v17 = vshll.u32 %v11858_v59, 16 }
 0x209   : > { %v11878_v1 = vld [vmem:[#allocation4 + $0x30] sm:$0xe]  ;;  %v10625_v30 = vld [vmem:[#allocation5 + $0x2c] ss:$12 sps:$4 sm:$0xff]   ;;  %3068 = vst.msk [vmem:[#allocation5 + $0x5c] sm:$0xf] %vm2489_vm1, %v8876_v11  ;;  %v8856_v42 = vcombine.low %v11862_v2, %v2618_v39  ;;  %2865 = vrot.lane.b32.xlu0 %v2820_v4, %s10991_s20  ;;  %v11891_v34 = vcombine.low %v11872_v6, %v11864_v3  ;;  %v8865_v53 = vcombine.low %v2627_v15, %v2619_v14 }
 0x20a   : > { %3070 = vst.msk [vmem:[#allocation5 + $0x68] sm:$0xf] %vm2489_vm1, %v8878_v10  ;;  %v2832_v43 = vrot.slane %v2830_v52, 1  ;;  %v2835_v27 = vrot.slane %v2833_v54, 2  ;;  %v2620_v21 = vld [vmem:[#allocation4 + $0x3c] sm:$0x3]  ;;  %10356 = vmatmul.mubr.msk.bf16.vlgmr.msra.gmra.mxu0 %vm2909_vm4, %v10625_v30  ;;  %v8857_v58 = vcombine.low %v11878_v1, %v2619_v14  ;;  %v2703_v47 = vor.u32 %v2702_v40, %v2698_v9 }
 0x20b   : > { %v10661_v24 = vld [vmem:[%s13573_s3 + $0x90] sm:$0xff]   ;;  %2731 = vrot.lane.b32.xlu1 %v2696_v23, %s10991_s20  ;;  %v2714_v16 = vshll.u32 %v8841_v41, 16  ;;  %v2838_v39 = vshrl.u32 %v8856_v42, 16  ;;  %v2841_v0 = vshll.u32 %v8856_v42, 16  ;;  %9934 = vmatpush3.bf16.msra.mxu0 %v10626_v55  ;;  %v2628_v25 = vld [vmem:[#allocation4 + $0x38] sm:$0xc]  ;;  %v2828_v50 = vor.u32 %v2827_v49, %v2824_v44 }
 0x20c   : > { %v10630_v45 = vld [vmem:[%s13573_s3 + $0x30] sm:$0xff]   ;;  %9935 = vmatprep.subr.bf16.mxu0 %v10629_v20  ;;  %v10632_v63 = vld [vmem:[%s13573_s3 + $0x68] sm:$0xff]   ;;  %v2709_v61 = vrot.slane %v2707_v17, 1  ;;  %v11905_v48 = vld [vmem:[#allocation4 + $0x38] sm:$0xe]  ;;  %v8866_v26 = vcombine.low %v2628_v25, %v2620_v21  ;;  %10365 = vmatprep.subr.bf16.mxu1 %v10661_v24  ;;  %v2705_v13 = vshrl.u32 %v11858_v59, 16  ;;  %v2836_v14 = vor.u32 %v2835_v27, %v2832_v43 }
 0x20d   : > { %v10628_v56 = vld [vmem:[#allocation5 + $0x44] ss:$12 sps:$4 sm:$0xff]   ;;  %2733 = vrot.lane.b32.xlu0 %v2703_v47, %s10991_s20  ;;  %v10633_v51 = vld [vmem:[%s13573_s3 + $0x28] sm:$0xff]   ;;  %v2721_v52 = vshll.u32 %v11891_v34, 16  ;;  %v2907_v54 = vrot.slane %v8865_v53, 2  ;;  %v8858_v4 = vcombine.low %v11905_v48, %v2620_v21  ;;  %v2716_v55 = vrot.slane %v2714_v16, 1  ;;  %10366 = vmatpush3.bf16.msra.mxu1 %v10661_v24 }
 0x20e   : > { %10359 = vmatprep.mubr.msk.bf16.mxu0 %vm2909_vm4, %v10628_v56  ;;  %v2840_v9 = vrot.slane %v2838_v39, 1  ;;  %v2843_v11 = vrot.slane %v2841_v0, 2  ;;  %v2846_v10 = vshrl.u32 %v8857_v58, 16  ;;  %v8843_v44 = vcombine.low %v11773_v36, %v11779_v32  ;;  %v10638_v40 = vld [vmem:[%s13573_s3 + $0x60] sm:$0xff]   ;;  %v10666_v23 = vld [vmem:[%s13573_s3 + $0x88] sm:$0xff]   ;;  %v13591_v39 = vld [vmem:[#allocation10_spill] sm:$0xff] }
 0x20f   : > { %2867 = vrot.lane.b32.xlu1 %v2828_v50, %s10991_s20  ;;  %9936 = vmatpush3.bf16.msra.mxu0 %v10630_v45  ;;  %v8880_v20 = vcombine.low %v2907_v54, %v2907_v54  ;;  %v8844_v59 = vcombine.low %v11808_v8, %v11806_v7  ;;  %v2710_v49 = vor.u32 %v2709_v61, %v2705_v13  ;;  %v2712_v17 = vshrl.u32 %v8841_v41, 16  ;;  %v10639_v24 = vld [vmem:[%s13573_s3 + $0x20] sm:$0xff]   ;;  %v10641_v56 = vld [vmem:[%s13573_s3 + $0x58] sm:$0xff]   ;;  %v10646_v54 = vld [vmem:[%s13573_s3 + $0x50] sm:$0xff]  }
 0x210   : > { %9937 = vmatprep.subr.bf16.mxu0 %v10632_v63  ;;  %v2849_v29 = vshll.u32 %v8857_v58, 16  ;;  %v2908_v30 = vrot.slane %v8866_v26, 2  ;;  %v8845_v42 = vcombine.low %v11777_v22, %v11785_v28  ;;  %v8846_v43 = vcombine.low %v11829_v35, %v11797_v46  ;;  %10367 = vmatprep.subr.bf16.mxu1 %v10666_v23  ;;  %v10671_v61 = vld [vmem:[%s13573_s3 + $0x80] sm:$0xff]   ;;  %v11962_v13 = vld [vmem:[%s13573_s3 + $0x1d8] sm:$0xff]  }
 0x211   : > { %v10636_v15 = vld [vmem:[#allocation5 + $0x5c] ss:$12 sps:$4 sm:$0xff]   ;;  %2869 = vrot.lane.b32.xlu0 %v2836_v14, %s10991_s20  ;;  %3072 = vst.msk [vmem:[#allocation5 + $0x74] sm:$0xf] %vm2489_vm1, %v8880_v20  ;;  %v2717_v41 = vor.u32 %v2716_v55, %v2712_v17  ;;  %v2723_v27 = vrot.slane %v2721_v52, 1  ;;  %v2854_v53 = vshrl.u32 %v8858_v4, 16  ;;  %v2844_v45 = vor.u32 %v2843_v11, %v2840_v9  ;;  %10368 = vmatpush3.bf16.msra.mxu1 %v10666_v23 }
 0x212   : > { %10360 = vmatmul.mubr.msk.bf16.gmra.mxu0 %vm2909_vm4, %v10636_v15  ;;  %v8882_v21 = vcombine.low %v2908_v30, %v2908_v30  ;;  %v2848_v16 = vrot.slane %v2846_v10, 1  ;;  %v8847_v0 = vcombine.low %v11833_v31, %v11823_v19  ;;  %v8848_v58 = vcombine.low %v11862_v2, %v11846_v60  ;;  %10369 = vmatprep.subr.bf16.mxu1 %v10671_v61  ;;  %v10647_v9 = vld [vmem:[%s13573_s3 + $0x10] sm:$0xff]   ;;  %v10650_v10 = vld [vmem:[%s13573_s3 + $0x48] sm:$0xff]   ;;  %v10652_v15 = vld [vmem:[%s13573_s3 + $0x40] sm:$0xff]  }
 0x213   : > { %2735 = vrot.lane.b32.xlu1 %v2710_v49, %s10991_s20  ;;  %9938 = vmatpush3.bf16.msra.mxu0 %v10633_v51  ;;  %v2851_v47 = vrot.slane %v2849_v29, 2  ;;  %v2857_v25 = vshll.u32 %v8858_v4, 16  ;;  %v8849_v50 = vcombine.low %v11878_v1, %v11853_v33  ;;  %v8850_v63 = vcombine.low %v11905_v48, %v11864_v3  ;;  %v10642_v51 = vld [vmem:[%s13573_s3 + $0x18] sm:$0xff]   ;;  %v10651_v14 = vld [vmem:[%s13573_s3 + $0x8] sm:$0xff]   ;;  %v10653_v20 = vld [vmem:[%s13573_s3] sm:$0xff]  }
 0x214   : > { %3735 = vmatprep.mubr.bf16.mxu0 %v13591_v39  ;;  %9939 = vmatprep.subr.bf16.mxu0 %v10638_v40  ;;  %3074 = vst.msk [vmem:[#allocation5 + $0x80] sm:$0xf] %vm2489_vm1, %v8882_v21  ;;  %v2719_v26 = vshrl.u32 %v11891_v34, 16  ;;  %v2856_v4 = vrot.slane %v2854_v53, 1  ;;  %v10654_v49 = vld [vmem:[%s13573_s3 + $0x1b8] sm:$0xff]   ;;  %v10657_v17 = vld [vmem:[%s13573_s3 + $0x1b0] sm:$0xff]  }
 0x215   : > { %2737 = vrot.lane.b32.xlu0 %v2717_v41, %s10991_s20  ;;  %v2852_v34 = vor.u32 %v2851_v47, %v2848_v16  ;;  %v2859_v55 = vrot.slane %v2857_v25, 2  ;;  %10370 = vmatpush3.bf16.msra.mxu1 %v10671_v61  ;;  %v10655_v40 = vld [vmem:[%s13573_s3 + $0x178] sm:$0xff]   ;;  %v13592_v29 = vld [vmem:[#allocation11_spill] sm:$0xff]  ;;  %v10658_v30 = vld [vmem:[%s13573_s3 + $0x170] sm:$0xff]   ;;  %v2767_v7 = vrot.slane %v8845_v42, 1  ;;  %v2768_v22 = vrot.slane %v8846_v43, 1 }
 0x216   : > { %v2724_v52 = vor.u32 %v2723_v27, %v2719_v26  ;;  %10379 = vmatprep.subr.bf16.mxu1 %v11962_v13  ;;  %v10659_v23 = vld [vmem:[%s13573_s3 + $0x1a8] sm:$0xff]   ;;  %v10662_v27 = vld [vmem:[%s13573_s3 + $0x1a0] sm:$0xff]   ;;  %v10664_v21 = vld [vmem:[%s13573_s3 + $0x198] sm:$0xff]   ;;  %v9901_v26 = vpop.f32.mrf.mxu1  ;;  %v2770_v19 = vrot.slane %v8848_v58, 1  ;;  %v2771_v60 = vrot.slane %v8849_v50, 1  ;;  %v2772_v1 = vrot.slane %v8850_v63, 1 }
 0x217   : > { %2871 = vrot.lane.b32.xlu1 %v2844_v45, %s10991_s20  ;;  %9940 = vmatpush3.bf16.msra.mxu0 %v10639_v24  ;;  %v2860_v11 = vor.u32 %v2859_v55, %v2856_v4  ;;  %v10660_v41 = vld [vmem:[%s13573_s3 + $0x168] sm:$0xff]   ;;  %v10663_v53 = vld [vmem:[%s13573_s3 + $0x160] sm:$0xff]   ;;  %v10665_v24 = vld [vmem:[%s13573_s3 + $0x158] sm:$0xff]   ;;  %vm5946_vm5 = vsmask.f32 256 }
 0x218   : > { %9941 = vmatprep.subr.bf16.mxu0 %v10641_v56  ;;  %v10667_v45 = vld [vmem:[%s13573_s3 + $0x190] sm:$0xff]   ;;  %v10669_v39 = vld [vmem:[%s13573_s3 + $0x188] sm:$0xff]   ;;  %v10672_v47 = vld [vmem:[%s13573_s3 + $0x180] sm:$0xff]  }
 0x219   : > { %2739 = vrot.lane.b32.xlu0 %v2724_v52, %s10991_s20  ;;  %v10668_v16 = vld [vmem:[%s13573_s3 + $0x150] sm:$0xff]   ;;  %v10670_v56 = vld [vmem:[%s13573_s3 + $0x148] sm:$0xff]   ;;  %v10673_v25 = vld [vmem:[%s13573_s3 + $0x140] sm:$0xff]  }
 0x21a   : > { %v12038_v61 = vld [vmem:[%s13573_s3 + $0x278] sm:$0xff]   ;;  %vm12836_vm10 = vmand %vm2573_vm3, %vm5946_vm5 }
 0x21b   : > { %2873 = vrot.lane.b32.xlu1 %v2852_v34, %s10991_s20  ;;  %9942 = vmatpush3.bf16.msra.mxu0 %v10642_v51  ;;  %v9902_v51 = vpop.f32.mrf.mxu1  ;;  %v2765_v34 = vrot.slane %v8843_v44, 1 }
 0x21c   : > { %9943 = vmatprep.subr.bf16.mxu0 %v10646_v54  ;;  %v12041_v52 = vadd.f32 %v9902_v51, %v9901_v26  ;;  %v10674_v51 = vld [vmem:[#allocation5 + $0x8] ss:$12 sps:$4 sm:$0xff]  }
 0x21f   : > { %2875 = vrot.lane.b32.xlu1 %v2860_v11, %s10991_s20  ;;  %9944 = vmatpush3.bf16.msra.mxu0 %v10647_v9 }
 0x220   : > { %9945 = vmatprep.subr.bf16.mxu0 %v10650_v10 }
 0x223   : > { %9946 = vmatpush3.bf16.msra.mxu0 %v10651_v14 }
 0x224   : > { %9947 = vmatprep.subr.bf16.mxu0 %v10652_v15  ;;  %v2766_v15 = vrot.slane %v8844_v59, 1 }
 0x227   : > { %9948 = vmatpush3.bf16.msra.mxu0 %v10653_v20  ;;  %v12052_v20 = vld [vmem:[#allocation5] sm:$0xff] }
 0x228   : > { %9981 = vmatprep.subr.bf16.mxu0 %v10654_v49 }
 0x22a   : > { %3736 = vmatmul.mubr.bf16.vlgmr.msra.gmra.mxu0 %v13592_v29 }
 0x22b   : > { %9982 = vmatpush3.bf16.msra.mxu0 %v10655_v40 }
 0x22c   : > { %9983 = vmatprep.subr.bf16.mxu0 %v10657_v17 }
 0x22f   : > { %9984 = vmatpush3.bf16.msra.mxu0 %v10658_v30 }
 0x230   : > { %9985 = vmatprep.subr.bf16.mxu0 %v10659_v23 }
 0x233   : > { %9986 = vmatpush3.bf16.msra.mxu0 %v10660_v41 }
 0x234   : > { %9987 = vmatprep.subr.bf16.mxu0 %v10662_v27 }
 0x237   : > { %9988 = vmatpush3.bf16.msra.mxu0 %v10663_v53 }
 0x238   : > { %9989 = vmatprep.subr.bf16.mxu0 %v10664_v21 }
 0x23b   : > { %9990 = vmatpush3.bf16.msra.mxu0 %v10665_v24  ;;  %v2769_v24 = vrot.slane %v8847_v0, 1 }
 0x23c   : > { %9991 = vmatprep.subr.bf16.mxu0 %v10667_v45 }
 0x23f   : > { %9992 = vmatpush3.bf16.msra.mxu0 %v10668_v16 }
 0x240   : > { %9993 = vmatprep.subr.bf16.mxu0 %v10669_v39 }
 0x243   : > { %9994 = vmatpush3.bf16.msra.mxu0 %v10670_v56 }
 0x244   : > { %9995 = vmatprep.subr.bf16.mxu0 %v10672_v47 }
 0x247   : > { %9996 = vmatpush3.bf16.msra.mxu0 %v10673_v25 }
 0x248   : > { %10395 = vmatprep.subr.bf16.mxu0 %v12038_v61 }
 0x26f   : > { %v2726_v54 = vpop.permute.xlu0 %2725 }
 0x270   : > { %v2912_v55 = vsel %vm2909_vm4, %v11771_v12, %v2726_v54 }
 0x271   : > { %v12056_v36 = vcombine.low %v12052_v20, %v2912_v55 }
 0x273   : > { %v2862_v4 = vpop.permute.xlu0 %2861 }
 0x274   : > { %v2936_v9 = vsel %vm2909_vm4, %v2765_v34, %v2862_v4 }
 0x275   : > { %v2728_v11 = vpop.permute.xlu1 %2727  ;;  %v8867_v10 = vcombine.low %v2912_v55, %v2936_v9 }
 0x276   : > { %v2915_v12 = vsel %vm2909_vm4, %v11801_v5, %v2728_v11 }
 0x277   : > { %v2730_v14 = vpop.permute.xlu0 %2729  ;;  %v8963_v49 = vcombine.high %v12052_v20, %v8867_v10  ;;  %v12070_v5 = vcombine.low %v2912_v55, %v2915_v12  ;;  %v10685_v55 = vld [vmem:[%s13573_s3 + $0x270] sm:$0xff]  }
 0x278   : > { %v2918_v59 = vsel %vm2909_vm4, %v11775_v18, %v2730_v14  ;;  %v10676_v14 = vld [vmem:[#allocation5 + $0x20] ss:$12 sps:$4 sm:$0xff]  }
 0x279   : > { %v2864_v32 = vpop.permute.xlu1 %2863  ;;  %3743 = vmatprep.mubr.bf16.mxu0 %v8963_v49  ;;  %v12077_v42 = vcombine.low %v2915_v12, %v2918_v59 }
 0x27a   : > { %v2939_v44 = vsel %vm2909_vm4, %v2766_v15, %v2864_v32  ;;  %3744 = vmatmul.mubr.bf16.gmra.mxu0 %v12056_v36  ;;  %v10690_v15 = vld [vmem:[%s13573_s3 + $0x268] sm:$0xff]   ;;  %v10682_v32 = vld [vmem:[%s13573_s3 + $0x1c0] sm:$0xff]  }
 0x27b   : > { %v8869_v40 = vcombine.low %v2915_v12, %v2939_v44  ;;  %v2866_v8 = vpop.permute.xlu0 %2865  ;;  %v12068_v30 = vcombine.low %v2936_v9, %v2939_v44  ;;  %v10698_v12 = vld [vmem:[%s13573_s3 + $0x318] sm:$0xff]  }
 0x27c   : > { %v2942_v17 = vsel %vm2909_vm4, %v2767_v7, %v2866_v8  ;;  %v10687_v7 = vld [vmem:[%s13573_s3 + $0x218] sm:$0xff]  }
 0x27d   : > { %3061 = vst [vmem:[#allocation5 + $0x30] sm:$0xff] %v8869_v40  ;;  %v2732_v29 = vpop.permute.xlu1 %2731  ;;  %v8871_v23 = vcombine.low %v2918_v59, %v2942_v17  ;;  %3421 = vmatprep.mubr.bf16.mxu1 %v12068_v30  ;;  %v10963_v18 = vcombine.low %v2939_v44, %v2942_v17  ;;  %v10681_v44 = vld [vmem:[#allocation5 + $0x20] ss:$12 sps:$4 sm:$0xff]   ;;  %v10684_v40 = vld [vmem:[%s13573_s3 + $0x258] sm:$0xff]  }
 0x27e   : > { %3422 = vmatmul.mubr.bf16.gmra.mxu1 %v12070_v5  ;;  %v2921_v27 = vsel %vm2909_vm4, %v11804_v57, %v2732_v29  ;;  %v10686_v8 = vld [vmem:[#allocation5 + $0x38] ss:$12 sps:$4 sm:$0xff]   ;;  %v10691_v29 = vld [vmem:[%s13573_s3 + $0x210] sm:$0xff]  }
 0x27f   : > { %3063 = vst [vmem:[#allocation5 + $0x3c] sm:$0xff] %v8871_v23  ;;  %v2734_v28 = vpop.permute.xlu0 %2733  ;;  %3751 = vmatprep.mubr.bf16.mxu0 %v10963_v18  ;;  %v12091_v57 = vcombine.low %v2918_v59, %v2921_v27  ;;  %v10689_v59 = vld [vmem:[%s13573_s3 + $0x250] sm:$0xff]   ;;  %v10692_v23 = vld [vmem:[#allocation5 + $0x2c] ss:$12 sps:$4 sm:$0xff]  }
 0x280   : > { %v2924_v35 = vsel %vm2909_vm4, %v11831_v37, %v2734_v28  ;;  %v10696_v28 = vld [vmem:[%s13573_s3 + $0x208] sm:$0xff]  }
 0x281   : > { %v2868_v41 = vpop.permute.xlu1 %2867  ;;  %v12098_v0 = vcombine.low %v2921_v27, %v2924_v35 }
 0x282   : > { %v2945_v53 = vsel %vm2909_vm4, %v2768_v22, %v2868_v41  ;;  %3752 = vmatmul.mubr.bf16.gmra.mxu0 %v12077_v42  ;;  %v10693_v22 = vld [vmem:[%s13573_s3 + $0x248] sm:$0xff]   ;;  %v10699_v41 = vld [vmem:[%s13573_s3 + $0x200] sm:$0xff]  }
 0x283   : > { %v8873_v21 = vcombine.low %v2921_v27, %v2945_v53  ;;  %v2870_v46 = vpop.permute.xlu0 %2869  ;;  %v12089_v16 = vcombine.low %v2942_v17, %v2945_v53  ;;  %v10688_v17 = vld [vmem:[#allocation5 + $0x50] ss:$12 sps:$4 sm:$0xff]  }
 0x284   : > { %v2948_v43 = vsel %vm2909_vm4, %v2769_v24, %v2870_v46  ;;  %v10700_v27 = vld [vmem:[#allocation5 + $0x44] ss:$12 sps:$4 sm:$0xff]   ;;  %v10702_v24 = vld [vmem:[%s13573_s3 + $0x238] sm:$0xff]   ;;  %v10706_v46 = vld [vmem:[%s13573_s3 + $0x308] sm:$0xff]  }
 0x285   : > { %3065 = vst [vmem:[#allocation5 + $0x48] sm:$0xff] %v8873_v21  ;;  %v2736_v45 = vpop.permute.xlu1 %2735  ;;  %v8875_v39 = vcombine.low %v2924_v35, %v2948_v43  ;;  %3429 = vmatprep.mubr.bf16.mxu1 %v12089_v16  ;;  %v10967_v31 = vcombine.low %v2945_v53, %v2948_v43  ;;  %v10703_v53 = vld [vmem:[%s13573_s3 + $0x310] sm:$0xff]   ;;  %v10701_v21 = vld [vmem:[#allocation5 + $0x5c] ss:$12 sps:$4 sm:$0xff]  }
 0x286   : > { %3430 = vmatmul.mubr.bf16.gmra.mxu1 %v12091_v57  ;;  %v12102_v47 = vsel %vm2909_vm4, %v11850_v38, %v2736_v45  ;;  %v10708_v45 = vld [vmem:[#allocation5 + $0x74] ss:$12 sps:$4 sm:$0xff]  }
 0x287   : > { %3067 = vst [vmem:[#allocation5 + $0x54] sm:$0xff] %v8875_v39  ;;  %v2738_v37 = vpop.permute.xlu0 %2737  ;;  %3759 = vmatprep.mubr.bf16.mxu0 %v10967_v31  ;;  %v12117_v38 = vcombine.low %v2924_v35, %v12102_v47  ;;  %v10705_v35 = vld [vmem:[%s13573_s3 + $0x230] sm:$0xff]   ;;  %v10711_v39 = vld [vmem:[%s13573_s3 + $0x300] sm:$0xff]  }
 0x288   : > { %v12121_v54 = vsel %vm2909_vm4, %v11860_v62, %v2738_v37  ;;  %v10714_v37 = vld [vmem:[%s13573_s3 + $0x398] sm:$0xff]  }
 0x289   : > { %v2872_v56 = vpop.permute.xlu1 %2871  ;;  %v10972_v9 = vcombine.low %v12102_v47, %v12121_v54 }
 0x28a   : > { %v12105_v25 = vsel %vm2909_vm4, %v2770_v19, %v2872_v56  ;;  %3760 = vmatmul.mubr.bf16.gmra.mxu0 %v12098_v0  ;;  %v10709_v19 = vld [vmem:[#allocation5 + $0x38] ss:$12 sps:$4 sm:$0xff]  }
 0x28b   : > { %v8877_v26 = vcombine.low %v12102_v47, %v12105_v25  ;;  %4115 = vmatprep.mubr.bf16.mxu0 %v8963_v49  ;;  %v12114_v58 = vcombine.low %v2948_v43, %v12105_v25  ;;  %v2740_v4 = vpop.permute.xlu0 %2739  ;;  %v10677_v49 = vld [vmem:[#allocation5 + $0x38] ss:$12 sps:$4 sm:$0xff]   ;;  %v10707_v43 = vld [vmem:[%s13573_s3 + $0x1f0] sm:$0xff]  }
 0x28c   : > { %v2933_v3 = vsel %vm2909_vm4, %v11872_v6, %v2740_v4  ;;  %v10678_v6 = vld [vmem:[%s13573_s3 + $0x1d0] sm:$0xff]   ;;  %v10713_v56 = vld [vmem:[%s13573_s3 + $0x220] sm:$0xff]   ;;  %v10717_v47 = vld [vmem:[%s13573_s3 + $0x358] sm:$0xff]  }
 0x28d   : > { %3069 = vst [vmem:[#allocation5 + $0x60] sm:$0xff] %v8877_v26  ;;  %v2874_v2 = vpop.permute.xlu1 %2873  ;;  %3437 = vmatprep.mubr.bf16.mxu1 %v12114_v58  ;;  %v12148_v10 = vcombine.low %v12121_v54, %v2933_v3  ;;  %v10716_v26 = vld [vmem:[#allocation5 + $0x50] ss:$12 sps:$4 sm:$0xff]  }
 0x28e   : > { %v2954_v34 = vsel %vm2909_vm4, %v2771_v60, %v2874_v2  ;;  %3438 = vmatmul.mubr.bf16.gmra.mxu1 %v12117_v38  ;;  %v10720_v60 = vld [vmem:[%s13573_s3 + $0x390] sm:$0xff]   ;;  %v10721_v4 = vld [vmem:[%s13573_s3 + $0x2b8] sm:$0xff]  }
 0x28f   : > { %v12125_v33 = vcombine.low %v12121_v54, %v2954_v34  ;;  %10371 = vmatprep.mubr.msk.bf16.mxu1 %vm2909_vm4, %v10674_v51  ;;  %v10971_v62 = vcombine.low %v12105_v25, %v2954_v34  ;;  %v10715_v25 = vld [vmem:[%s13573_s3 + $0x1e0] sm:$0xff]   ;;  %v10718_v2 = vld [vmem:[#allocation5 + $0x68] ss:$12 sps:$4 sm:$0xff]   ;;  %v10719_v51 = vld [vmem:[%s13573_s3 + $0x2f8] sm:$0xff]  }
 0x291   : > { %3071 = vst [vmem:[#allocation5 + $0x6c] sm:$0xff] %v12125_v33  ;;  %v2876_v50 = vpop.permute.xlu1 %2875 }
 0x292   : > { %v2957_v48 = vsel %vm2909_vm4, %v2772_v1, %v2876_v50  ;;  %4116 = vmatmul.mubr.bf16.vlgmr.msra.gmra.mxu0 %v12056_v36  ;;  %v10679_v36 = vld [vmem:[%s13573_s3 + $0x1c8] sm:$0xff]   ;;  %v10723_v1 = vld [vmem:[%s13573_s3 + $0x2f0] sm:$0xff]  }
 0x293   : > { %v8881_v63 = vcombine.low %v2933_v3, %v2957_v48  ;;  %4123 = vmatprep.mubr.bf16.mxu0 %v10963_v18  ;;  %10396 = vmatpush3.bf16.msra.mxu0 %v12038_v61  ;;  %v12145_v11 = vcombine.low %v2954_v34, %v2957_v48  ;;  %v10694_v61 = vld [vmem:[%s13573_s3 + $0x260] sm:$0xff]   ;;  %v10695_v18 = vld [vmem:[#allocation5 + $0x68] ss:$12 sps:$4 sm:$0xff]  }
 0x294   : > { %10397 = vmatprep.subr.bf16.mxu0 %v10685_v55  ;;  %v10722_v34 = vld [vmem:[%s13573_s3 + $0x350] sm:$0xff]   ;;  %v10724_v50 = vld [vmem:[%s13573_s3 + $0x388] sm:$0xff]   ;;  %v10729_v3 = vld [vmem:[%s13573_s3 + $0x380] sm:$0xff]  }
 0x295   : > { %3073 = vst [vmem:[#allocation5 + $0x78] sm:$0xff] %v8881_v63  ;;  %v10731_v63 = vld [vmem:[%s13573_s3 + $0x340] sm:$0xff]  }
 0x296   : > { %10372 = vmatmul.mubr.msk.bf16.vlgmr.msra.gmra.mxu1 %vm2909_vm4, %v10676_v14 }
 0x297   : > { %10398 = vmatpush3.bf16.msra.mxu0 %v10685_v55  ;;  %10380 = vmatpush3.bf16.msra.mxu1 %v11962_v13  ;;  %v10680_v13 = vld [vmem:[#allocation5 + $0x50] ss:$12 sps:$4 sm:$0xff]  }
 0x298   : > { %10375 = vmatprep.mubr.msk.bf16.mxu1 %vm2909_vm4, %v10677_v49  ;;  %10381 = vmatprep.subr.bf16.mxu1 %v10678_v6  ;;  %v10725_v55 = vld [vmem:[%s13573_s3 + $0x2b0] sm:$0xff]   ;;  %v10732_v49 = vld [vmem:[%s13573_s3 + $0x2e0] sm:$0xff]  }
 0x299   : > { %10399 = vmatprep.subr.bf16.mxu0 %v10690_v15 }
 0x29a   : > { %4124 = vmatmul.mubr.bf16.gmra.mxu0 %v12077_v42  ;;  %v10697_v42 = vld [vmem:[%s13573_s3 + $0x240] sm:$0xff]  }
 0x29b   : > { %4131 = vmatprep.mubr.bf16.mxu0 %v10967_v31  ;;  %10400 = vmatpush3.bf16.msra.mxu0 %v10690_v15  ;;  %v10710_v31 = vld [vmem:[%s13573_s3 + $0x228] sm:$0xff]  }
 0x29c   : > { %10382 = vmatpush3.bf16.msra.mxu1 %v10678_v6  ;;  %10401 = vmatprep.subr.bf16.mxu0 %v10694_v61  ;;  %v10730_v6 = vld [vmem:[%s13573_s3 + $0x2a8] sm:$0xff]  }
 0x29d   : > { %10383 = vmatprep.subr.bf16.mxu1 %v10679_v36 }
 0x29e   : > { %10376 = vmatmul.mubr.msk.bf16.gmra.mxu1 %vm2909_vm4, %v10680_v13  ;;  %v10736_v13 = vld [vmem:[%s13573_s3 + $0x2d8] sm:$0xff]  }
 0x29f   : > { %10402 = vmatpush3.bf16.msra.mxu0 %v10694_v61  ;;  %10387 = vmatprep.mubr.msk.bf16.mxu1 %vm2909_vm4, %v10681_v44  ;;  %v10735_v61 = vld [vmem:[%s13573_s3 + $0x338] sm:$0xff]  }
 0x2a0   : > { %10384 = vmatpush3.bf16.msra.mxu1 %v10679_v36  ;;  %10411 = vmatprep.subr.bf16.mxu0 %v10698_v12  ;;  %v10737_v36 = vld [vmem:[%s13573_s3 + $0x370] sm:$0xff]   ;;  %v10738_v44 = vld [vmem:[%s13573_s3 + $0x298] sm:$0xff]  }
 0x2a1   : > { %10385 = vmatprep.subr.bf16.mxu1 %v10682_v32 }
 0x2a2   : > { %4132 = vmatmul.mubr.bf16.gmra.mxu0 %v12098_v0  ;;  %v10712_v0 = vld [vmem:[%s13573_s3 + $0x1e8] sm:$0xff]  }
 0x2a3   : > { %4139 = vmatprep.mubr.bf16.mxu0 %v10971_v62  ;;  %v10727_v62 = vld [vmem:[%s13573_s3 + $0x348] sm:$0xff]  }
 0x2a4   : > { %10386 = vmatpush3.bf16.msra.mxu1 %v10682_v32  ;;  %v10739_v32 = vld [vmem:[%s13573_s3 + $0x330] sm:$0xff]  }
 0x2a5   : > { %10029 = vmatprep.subr.bf16.mxu1 %v10684_v40  ;;  %v10740_v40 = vld [vmem:[%s13573_s3 + $0x2d0] sm:$0xff]  }
 0x2a7   : > { %10388 = vmatmul.mubr.msk.bf16.vlgmr.msra.gmra.mxu1 %vm2909_vm4, %v10686_v8  ;;  %v10743_v8 = vld [vmem:[%s13573_s3 + $0x328] sm:$0xff]  }
 0x2a8   : > { %10030 = vmatpush3.bf16.msra.mxu1 %v10687_v7  ;;  %10391 = vmatprep.mubr.msk.bf16.mxu1 %vm2909_vm4, %v10688_v17  ;;  %v10741_v7 = vld [vmem:[%s13573_s3 + $0x368] sm:$0xff]   ;;  %v10742_v17 = vld [vmem:[%s13573_s3 + $0x290] sm:$0xff]  }
 0x2a9   : > { %10031 = vmatprep.subr.bf16.mxu1 %v10689_v59 }
 0x2aa   : > { %4140 = vmatmul.mubr.bf16.gmra.mxu0 %v10972_v9  ;;  %v10726_v9 = vld [vmem:[#allocation5 + $0x80] ss:$12 sps:$4 sm:$0xff]  }
 0x2ab   : > { %10403 = vmatprep.mubr.msk.bf16.mxu0 %vm2909_vm4, %v10692_v23  ;;  %v10744_v23 = vld [vmem:[%s13573_s3 + $0x2c8] sm:$0xff]  }
 0x2ac   : > { %10032 = vmatpush3.bf16.msra.mxu1 %v10691_v29  ;;  %v10745_v29 = vld [vmem:[%s13573_s3 + $0x360] sm:$0xff]  }
 0x2ad   : > { %10033 = vmatprep.subr.bf16.mxu1 %v10693_v22  ;;  %v10750_v22 = vld [vmem:[%s13573_s3 + $0x320] sm:$0xff]  }
 0x2af   : > { %10392 = vmatmul.mubr.msk.bf16.gmra.mxu1 %vm2909_vm4, %v10695_v18  ;;  %v10746_v18 = vld [vmem:[%s13573_s3 + $0x288] sm:$0xff]  }
 0x2b0   : > { %10034 = vmatpush3.bf16.msra.mxu1 %v10696_v28  ;;  %4502 = vmatprep.mubr.bf16.mxu1 %v12068_v30  ;;  %v10704_v30 = vld [vmem:[%s13573_s3 + $0x1f8] sm:$0xff]  }
 0x2b1   : > { %10035 = vmatprep.subr.bf16.mxu1 %v10697_v42  ;;  %v10751_v42 = vld [vmem:[%s13573_s3 + $0x2c0] sm:$0xff]  }
 0x2b2   : > { %10404 = vmatmul.mubr.msk.bf16.vlgmr.msra.gmra.mxu0 %vm2909_vm4, %v10700_v27  ;;  %v10749_v27 = vld [vmem:[#allocation5 + $0x34] ss:$12 sps:$4 sm:$0xff]  }
 0x2b3   : > { %10412 = vmatpush3.bf16.msra.mxu0 %v10698_v12  ;;  %10407 = vmatprep.mubr.msk.bf16.mxu0 %vm2909_vm4, %v10701_v21 }
 0x2b4   : > { %10036 = vmatpush3.bf16.msra.mxu1 %v10699_v41  ;;  %10413 = vmatprep.subr.bf16.mxu0 %v10703_v53  ;;  %v10752_v41 = vld [vmem:[%s13573_s3 + $0x438] sm:$0xff]  }
 0x2b5   : > { %10037 = vmatprep.subr.bf16.mxu1 %v10702_v24  ;;  %v10753_v24 = vld [vmem:[%s13573_s3 + $0x280] sm:$0xff]  }
 0x2b7   : > { %10414 = vmatpush3.bf16.msra.mxu0 %v10703_v53  ;;  %v10754_v53 = vld [vmem:[%s13573_s3 + $0x3f8] sm:$0xff]  }
 0x2b8   : > { %10038 = vmatpush3.bf16.msra.mxu1 %v10704_v30  ;;  %10415 = vmatprep.subr.bf16.mxu0 %v10706_v46  ;;  %v10756_v30 = vld [vmem:[%s13573_s3 + $0x430] sm:$0xff]  }
 0x2b9   : > { %10039 = vmatprep.subr.bf16.mxu1 %v10705_v35  ;;  %v10759_v35 = vld [vmem:[%s13573_s3 + $0x3f0] sm:$0xff]  }
 0x2ba   : > { %10408 = vmatmul.mubr.msk.bf16.gmra.mxu0 %vm2909_vm4, %v10708_v45  ;;  %v10747_v45 = vld [vmem:[#allocation5 + $0x30] ss:$12 sps:$4 sm:$0xff]  }
 0x2bb   : > { %10416 = vmatpush3.bf16.msra.mxu0 %v10706_v46  ;;  %10419 = vmatprep.mubr.msk.bf16.mxu0 %vm2909_vm4, %v10709_v19  ;;  %v10755_v46 = vld [vmem:[%s13573_s3 + $0x3b8] sm:$0xff]  }
 0x2bc   : > { %10040 = vmatpush3.bf16.msra.mxu1 %v10707_v43  ;;  %10417 = vmatprep.subr.bf16.mxu0 %v10711_v39  ;;  %v12386_v19 = vld [vmem:[#allocation5 + $0x4c] ss:$12 sps:$4 sm:$0xff]  }
 0x2bd   : > { %10041 = vmatprep.subr.bf16.mxu1 %v10710_v31  ;;  %v10761_v31 = vld [vmem:[%s13573_s3 + $0x3e8] sm:$0xff]  }
 0x2bf   : > { %10418 = vmatpush3.bf16.msra.mxu0 %v10711_v39  ;;  %v10760_v39 = vld [vmem:[%s13573_s3 + $0x428] sm:$0xff]  }
 0x2c0   : > { %10042 = vmatpush3.bf16.msra.mxu1 %v10712_v0  ;;  %10125 = vmatprep.subr.bf16.mxu0 %v10714_v37  ;;  %v10764_v37 = vld [vmem:[%s13573_s3 + $0x420] sm:$0xff]  }
 0x2c1   : > { %10043 = vmatprep.subr.bf16.mxu1 %v10713_v56  ;;  %v10768_v56 = vld [vmem:[%s13573_s3 + $0x3a8] sm:$0xff]  }
 0x2c2   : > { %10420 = vmatmul.mubr.msk.bf16.vlgmr.msra.gmra.mxu0 %vm2909_vm4, %v10716_v26  ;;  %v12402_v26 = vld [vmem:[#allocation5 + $0x60] sm:$0xff] }
 0x2c3   : > { %10126 = vmatpush3.bf16.msra.mxu0 %v10717_v47  ;;  %10423 = vmatprep.mubr.msk.bf16.mxu0 %vm2909_vm4, %v10718_v2 }
 0x2c4   : > { %10044 = vmatpush3.bf16.msra.mxu1 %v10715_v25  ;;  %10127 = vmatprep.subr.bf16.mxu0 %v10720_v60  ;;  %v10765_v60 = vld [vmem:[%s13573_s3 + $0x3e0] sm:$0xff]  }
 0x2c5   : > { %10077 = vmatprep.subr.bf16.mxu1 %v10719_v51  ;;  %v10766_v51 = vld [vmem:[%s13573_s3 + $0x418] sm:$0xff]  }
 0x2c7   : > { %4503 = vmatmul.mubr.bf16.vlgmr.msra.gmra.mxu1 %v12070_v5  ;;  %10128 = vmatpush3.bf16.msra.mxu0 %v10722_v34  ;;  %v10728_v5 = vld [vmem:[%s13573_s3 + $0x2e8] sm:$0xff]  }
 0x2c8   : > { %4510 = vmatprep.mubr.bf16.mxu1 %v12089_v16  ;;  %10078 = vmatpush3.bf16.msra.mxu1 %v10721_v4 }
 0x2c9   : > { %10079 = vmatprep.subr.bf16.mxu1 %v10723_v1  ;;  %10129 = vmatprep.subr.bf16.mxu0 %v10724_v50  ;;  %v10762_v1 = vld [vmem:[#allocation5 + $0x48] ss:$12 sps:$4 sm:$0xff]   ;;  %v10773_v50 = vld [vmem:[%s13573_s3 + $0x3a0] sm:$0xff]  }
 0x2ca   : > { %v12281_v48 = vpop.f32.mrf.mxu0  ;;  %10424 = vmatmul.mubr.msk.bf16.gmra.mxu0 %vm2909_vm4, %v10726_v9 }
 0x2cb   : > { %10130 = vmatpush3.bf16.msra.mxu0 %v10727_v62  ;;  %5278 = vmatprep.mubr.bf16.mxu0 %v12089_v16  ;;  %v10733_v16 = vld [vmem:[%s13573_s3 + $0x378] sm:$0xff]  }
 0x2cc   : > { %v3480_v14 = vpop.f32.mrf.mxu0  ;;  %10080 = vmatpush3.bf16.msra.mxu1 %v10725_v55  ;;  %10131 = vmatprep.subr.bf16.mxu0 %v10729_v3  ;;  %v10767_v62 = vld [vmem:[%s13573_s3 + $0x3d8] sm:$0xff]   ;;  %v12420_v55 = vcombine.high %v12052_v20, %v12052_v20 }
 0x2cd   : > { %v12292_v15 = vadd.f32 %v12041_v52, %v3480_v14  ;;  %10081 = vmatprep.subr.bf16.mxu1 %v10728_v5  ;;  %v10734_v52 = vld [vmem:[%s13573_s3 + $0x2a0] sm:$0xff]   ;;  %v10780_v14 = vld [vmem:[%s13573_s3 + $0x458] sm:$0xff]  }
 0x2ce   : > { %v12317_v12 = vpop.f32.mrf.mxu0 }
 0x2cf   : > { %4511 = vmatmul.mubr.bf16.gmra.mxu1 %v12091_v57  ;;  %10132 = vmatpush3.bf16.msra.mxu0 %v10731_v63 }
 0x2d0   : > { %4518 = vmatprep.mubr.bf16.mxu1 %v12114_v58  ;;  %10082 = vmatpush3.bf16.msra.mxu1 %v10730_v6  ;;  %v12332_v59 = vpop.f32.mrf.mxu0  ;;  %v4621_v6 = vld [vmem:[#allocation5 + $0x78] sm:$0xff] }
 0x2d1   : > { %10083 = vmatprep.subr.bf16.mxu1 %v10732_v49  ;;  %10133 = vmatprep.subr.bf16.mxu0 %v10733_v16  ;;  %v10975_v16 = vcombine.low %v12402_v26, %v12121_v54  ;;  %v10776_v54 = vld [vmem:[%s13573_s3 + $0x3c0] sm:$0xff]  }
 0x2d2   : > { %v12347_v28 = vpop.f32.mrf.mxu0 }
 0x2d3   : > { %10134 = vmatpush3.bf16.msra.mxu0 %v10735_v61  ;;  %v9197_v61 = vcombine.high %v4621_v6, %v12052_v20 }
 0x2d4   : > { %10084 = vmatpush3.bf16.msra.mxu1 %v10734_v52  ;;  %10135 = vmatprep.subr.bf16.mxu0 %v10737_v36  ;;  %v12362_v21 = vpop.f32.mrf.mxu0  ;;  %v9272_v52 = vcombine.low %v12052_v20, %v12052_v20  ;;  %v10772_v36 = vld [vmem:[%s13573_s3 + $0x3c8] sm:$0xff]  }
 0x2d5   : > { %10085 = vmatprep.subr.bf16.mxu1 %v10736_v13  ;;  %v10774_v13 = vld [vmem:[%s13573_s3 + $0x400] sm:$0xff]  }
 0x2d6   : > { %v12378_v43 = vpop.f32.mrf.mxu0 }
 0x2d7   : > { %4519 = vmatmul.mubr.bf16.gmra.mxu1 %v12117_v38  ;;  %10136 = vmatpush3.bf16.msra.mxu0 %v10739_v32  ;;  %v9196_v32 = vcombine.low %v4621_v6, %v12052_v20 }
 0x2d8   : > { %4526 = vmatprep.mubr.bf16.mxu1 %v12145_v11  ;;  %10086 = vmatpush3.bf16.msra.mxu1 %v10738_v44  ;;  %v12391_v0 = vpop.f32.mrf.mxu0  ;;  %v10775_v44 = vld [vmem:[#allocation5 + $0x44] ss:$12 sps:$4 sm:$0xff]  }
 0x2d9   : > { %10087 = vmatprep.subr.bf16.mxu1 %v10740_v40  ;;  %10137 = vmatprep.subr.bf16.mxu0 %v10741_v7  ;;  %v5391_v40 = vld [vmem:[#allocation5 + $0x6c] sm:$0xff] }
 0x2da   : > { %v9343_v7 = vcombine.high %v12402_v26, %v5391_v40 }
 0x2db   : > { %10138 = vmatpush3.bf16.msra.mxu0 %v10743_v8  ;;  %v10779_v8 = vld [vmem:[#allocation5 + $0x5c] ss:$12 sps:$4 sm:$0xff]  }
 0x2dc   : > { %10088 = vmatpush3.bf16.msra.mxu1 %v10742_v17  ;;  %10139 = vmatprep.subr.bf16.mxu0 %v10745_v29  ;;  %v10781_v17 = vld [vmem:[#allocation5 + $0x74] ss:$12 sps:$4 sm:$0xff]   ;;  %v9342_v29 = vcombine.low %v12402_v26, %v5391_v40 }
 0x2dd   : > { %10089 = vmatprep.subr.bf16.mxu1 %v10744_v23  ;;  %v10784_v23 = vld [vmem:[%s13573_s3 + $0x448] sm:$0xff]  }
 0x2df   : > { %4527 = vmatmul.mubr.bf16.gmra.mxu1 %v12148_v10  ;;  %10140 = vmatpush3.bf16.msra.mxu0 %v10750_v22  ;;  %v10783_v22 = vld [vmem:[#allocation5 + $0x8c] ss:$12 sps:$4 sm:$0xff]  }
 0x2e0   : > { %10090 = vmatpush3.bf16.msra.mxu1 %v10746_v18  ;;  %4890 = vmatprep.mubr.bf16.mxu1 %v10749_v27  ;;  %v10786_v18 = vld [vmem:[%s13573_s3 + $0x440] sm:$0xff]  }
 0x2e1   : > { %10091 = vmatprep.subr.bf16.mxu1 %v10751_v42  ;;  %10173 = vmatprep.subr.bf16.mxu0 %v10752_v41  ;;  %v10785_v42 = vld [vmem:[#allocation5 + $0x50] ss:$12 sps:$4 sm:$0xff]   ;;  %v10787_v41 = vld [vmem:[#allocation5 + $0x68] ss:$12 sps:$4 sm:$0xff]   ;;  %v10788_v27 = vld [vmem:[#allocation5 + $0x80] ss:$12 sps:$4 sm:$0xff]  }
 0x2e2   : > { %5279 = vmatmul.mubr.bf16.vlgmr.msra.gmra.mxu0 %v12091_v57  ;;  %v10763_v57 = vld [vmem:[%s13573_s3 + $0x3b0] sm:$0xff]  }
 0x2e3   : > { %5286 = vmatprep.mubr.bf16.mxu0 %v12114_v58  ;;  %10174 = vmatpush3.bf16.msra.mxu0 %v10754_v53  ;;  %v9904_v58 = vpop.f32.mrf.mxu1  ;;  %v10789_v53 = vld [vmem:[#allocation5 + $0x98] ss:$12 sps:$4 sm:$0xff]  }
 0x2e4   : > { %10092 = vmatpush3.bf16.msra.mxu1 %v10753_v24  ;;  %10175 = vmatprep.subr.bf16.mxu0 %v10756_v30 }
 0x2e5   : > { %10427 = vmatprep.subr.bf16.mxu1 %v10755_v46  ;;  %v9905_v47 = vpop.f32.mrf.mxu1 }
 0x2e6   : > { %v9906_v34 = vadd.f32 %v9905_v47, %v9904_v58 }
 0x2e7   : > { %4891 = vmatmul.mubr.bf16.vlgmr.msra.gmra.mxu1 %v10747_v45  ;;  %10176 = vmatpush3.bf16.msra.mxu0 %v10759_v35 }
 0x2e8   : > { %4898 = vmatprep.mubr.bf16.mxu1 %v12386_v19  ;;  %10428 = vmatpush3.bf16.msra.mxu1 %v10755_v46  ;;  %v3484_v5 = vadd.f32 %v9906_v34, %v12332_v59  ;;  %v10782_v59 = vld [vmem:[%s13573_s3 + $0x450] sm:$0xff]  }
 0x2e9   : > { %10177 = vmatprep.subr.bf16.mxu0 %v10760_v39  ;;  %10429 = vmatprep.subr.bf16.mxu1 %v10763_v57 }
 0x2ea   : > { %v9949_v25 = vpop.f32.mrf.mxu0  ;;  %5287 = vmatmul.mubr.bf16.gmra.mxu0 %v12117_v38 }
 0x2eb   : > { %5294 = vmatprep.mubr.bf16.mxu0 %v12145_v11  ;;  %10178 = vmatpush3.bf16.msra.mxu0 %v10761_v31  ;;  %v9194_v11 = vcombine.high %v12402_v26, %v12125_v33  ;;  %v10769_v33 = vld [vmem:[%s13573_s3 + $0x410] sm:$0xff]  }
 0x2ec   : > { %v9950_v2 = vpop.f32.mrf.mxu0  ;;  %10179 = vmatprep.subr.bf16.mxu0 %v10764_v37  ;;  %10430 = vmatpush3.bf16.msra.mxu1 %v10763_v57 }
 0x2ed   : > { %v9951_v4 = vadd.f32 %v9950_v2, %v9949_v25  ;;  %10431 = vmatprep.subr.bf16.mxu1 %v10768_v56 }
 0x2ee   : > { %v9952_v38 = vpop.f32.mrf.mxu0 }
 0x2ef   : > { %4899 = vmatmul.mubr.bf16.gmra.mxu1 %v10762_v1  ;;  %10180 = vmatpush3.bf16.msra.mxu0 %v10765_v60  ;;  %v12423_v9 = vadd.f32 %v9951_v4, %v12292_v15  ;;  %v10770_v15 = vld [vmem:[%s13573_s3 + $0x3d0] sm:$0xff]  }
 0x2f0   : > { %v9953_v3 = vpop.f32.mrf.mxu0  ;;  %4906 = vmatprep.mubr.bf16.mxu1 %v9194_v11  ;;  %10181 = vmatprep.subr.bf16.mxu0 %v10766_v51 }
 0x2f1   : > { %v9954_v63 = vadd.f32 %v9953_v3, %v9952_v38  ;;  %10432 = vmatpush3.bf16.msra.mxu1 %v10768_v56 }
 0x2f2   : > { %5295 = vmatmul.mubr.bf16.gmra.mxu0 %v12148_v10  ;;  %10433 = vmatprep.subr.bf16.mxu1 %v10773_v50  ;;  %v10771_v10 = vld [vmem:[%s13573_s3 + $0x408] sm:$0xff]  }
 0x2f3   : > { %10182 = vmatpush3.bf16.msra.mxu0 %v10767_v62  ;;  %5302 = vmatprep.mubr.bf16.mxu0 %v12420_v55  ;;  %v12437_v49 = vadd.f32 %v9954_v63, %v3484_v5 }
 0x2f4   : > { %10183 = vmatprep.subr.bf16.mxu0 %v10769_v33 }
 0x2f5   : > { %10434 = vmatpush3.bf16.msra.mxu1 %v10773_v50 }
 0x2f6   : > { %10443 = vmatprep.subr.bf16.mxu1 %v10780_v14 }
 0x2f7   : > { %4907 = vmatmul.mubr.bf16.gmra.mxu1 %v10975_v16  ;;  %10184 = vmatpush3.bf16.msra.mxu0 %v10770_v15 }
 0x2f8   : > { %4914 = vmatprep.mubr.bf16.mxu1 %v9197_v61  ;;  %10185 = vmatprep.subr.bf16.mxu0 %v10771_v10 }
 0x2fa   : > { %5303 = vmatmul.mubr.bf16.gmra.mxu0 %v9272_v52 }
 0x2fb   : > { %10186 = vmatpush3.bf16.msra.mxu0 %v10772_v36  ;;  %5666 = vmatprep.mubr.bf16.mxu0 %v12386_v19 }
 0x2fc   : > { %10187 = vmatprep.subr.bf16.mxu0 %v10774_v13 }
 0x2ff   : > { %4915 = vmatmul.mubr.bf16.gmra.mxu1 %v9196_v32  ;;  %10188 = vmatpush3.bf16.msra.mxu0 %v10776_v54 }
 0x300   : > { %10435 = vmatprep.mubr.msk.bf16.mxu1 %vm2909_vm4, %v10775_v44  ;;  %6620 = vmatprep.subr.bf16.mxu0 %v12052_v20 }
 0x302   : > { %5667 = vmatmul.mubr.bf16.vlgmr.msra.gmra.mxu0 %v10762_v1 }
 0x303   : > { %5674 = vmatprep.mubr.bf16.mxu0 %v9343_v7 }
 0x307   : > { %10436 = vmatmul.mubr.msk.bf16.vlgmr.msra.gmra.mxu1 %vm2909_vm4, %v10779_v8 }
 0x308   : > { %10439 = vmatprep.mubr.msk.bf16.mxu1 %vm2909_vm4, %v10781_v17  ;;  %10444 = vmatpush3.bf16.msra.mxu1 %v10780_v14 }
 0x309   : > { %10445 = vmatprep.subr.bf16.mxu1 %v10782_v59 }
 0x30a   : > { %5675 = vmatmul.mubr.bf16.gmra.mxu0 %v9342_v29 }
 0x30b   : > { %5682 = vmatprep.mubr.bf16.mxu0 %v9197_v61 }
 0x30c   : > { %10446 = vmatpush3.bf16.msra.mxu1 %v10782_v59 }
 0x30d   : > { %10447 = vmatprep.subr.bf16.mxu1 %v10784_v23 }
 0x30f   : > { %10440 = vmatmul.mubr.msk.bf16.gmra.mxu1 %vm2909_vm4, %v10783_v22 }
 0x310   : > { %10448 = vmatpush3.bf16.msra.mxu1 %v10784_v23  ;;  %10451 = vmatprep.mubr.msk.bf16.mxu1 %vm2909_vm4, %v10785_v42 }
 0x311   : > { %10449 = vmatprep.subr.bf16.mxu1 %v10786_v18 }
 0x312   : > { %5683 = vmatmul.mubr.bf16.gmra.mxu0 %v9196_v32 }
 0x313   : > { %5690 = vmatprep.mubr.bf16.mxu0 %v12420_v55 }
 0x314   : > { %10450 = vmatpush3.bf16.msra.mxu1 %v10786_v18 }
 0x315   : > { %6435 = vmatprep.subr.bf16.mxu1 %v12052_v20 }
 0x317   : > { %10452 = vmatmul.mubr.msk.bf16.vlgmr.msra.gmra.mxu1 %vm2909_vm4, %v10787_v41 }
 0x318   : > { %10455 = vmatprep.mubr.msk.bf16.mxu1 %vm2909_vm4, %v10788_v27 }
 0x31a   : > { %5691 = vmatmul.mubr.bf16.gmra.mxu0 %v9272_v52 }
 0x31f   : > { %10456 = vmatmul.mubr.msk.bf16.gmra.mxu1 %vm2909_vm4, %v10789_v53 }
 0x33a   : > { %v9955_v24 = vpop.f32.mrf.mxu0 }
 0x33c   : > { %v9956_v30 = vpop.f32.mrf.mxu0 }
 0x33d   : > { %v9957_v46 = vadd.f32 %v9956_v30, %v9955_v24 }
 0x33e   : > { %v9958_v35 = vpop.f32.mrf.mxu0  ;;  %v9907_v45 = vpop.f32.mrf.mxu1 }
 0x340   : > { %v9959_v39 = vpop.f32.mrf.mxu0  ;;  %v9908_v57 = vpop.f32.mrf.mxu1 }
 0x341   : > { %v9909_v58 = vadd.f32 %v9908_v57, %v9907_v45  ;;  %v9960_v51 = vadd.f32 %v9959_v39, %v9958_v35 }
 0x342   : > { %v9961_v19 = vpop.f32.mrf.mxu0  ;;  %v9910_v31 = vpop.f32.mrf.mxu1 }
 0x343   : > { %v3489_v20 = vadd.f32 %v12281_v48, %v9909_v58 }
 0x344   : > { %v9962_v37 = vpop.f32.mrf.mxu0  ;;  %v9911_v56 = vpop.f32.mrf.mxu1 }
 0x345   : > { %v9963_v47 = vadd.f32 %v9962_v37, %v9961_v19  ;;  %v9912_v25 = vadd.f32 %v9911_v56, %v9910_v31  ;;  %v3746_v60 = vadd.f32 %v9957_v46, %v3489_v20 }
 0x346   : > { %v9964_v26 = vpop.f32.mrf.mxu0  ;;  %v9913_v2 = vpop.f32.mrf.mxu1 }
 0x347   : > { %v3492_v34 = vadd.f32 %v12317_v12, %v9912_v25 }
 0x348   : > { %v9965_v4 = vpop.f32.mrf.mxu0  ;;  %v9914_v1 = vpop.f32.mrf.mxu1 }
 0x349   : > { %v9915_v38 = vadd.f32 %v9914_v1, %v9913_v2  ;;  %v3749_v50 = vadd.f32 %v9960_v51, %v3492_v34  ;;  %v9966_v15 = vadd.f32 %v9965_v4, %v9964_v26 }
 0x34a   : > { %v9967_v11 = vpop.f32.mrf.mxu0  ;;  %v9916_v62 = vpop.f32.mrf.mxu1 }
 0x34b   : > { %v3497_v55 = vadd.f32 %v9915_v38, %v12362_v21 }
 0x34c   : > { %v9968_v3 = vpop.f32.mrf.mxu0  ;;  %v9917_v48 = vpop.f32.mrf.mxu1 }
 0x34d   : > { %v9969_v33 = vadd.f32 %v9968_v3, %v9967_v11  ;;  %v9918_v5 = vadd.f32 %v9917_v48, %v9916_v62  ;;  %v3754_v14 = vadd.f32 %v9963_v47, %v3497_v55 }
 0x34e   : > { %v9970_v63 = vpop.f32.mrf.mxu0  ;;  %v9919_v6 = vpop.f32.mrf.mxu1 }
 0x34f   : > { %v3500_v10 = vadd.f32 %v9918_v5, %v12391_v0 }
 0x350   : > { %v9971_v16 = vpop.f32.mrf.mxu0  ;;  %v9920_v12 = vpop.f32.mrf.mxu1 }
 0x351   : > { %v9921_v61 = vadd.f32 %v9920_v12, %v9919_v6  ;;  %v12484_v36 = vadd.f32 %v9966_v15, %v3500_v10  ;;  %v9972_v17 = vadd.f32 %v9971_v16, %v9970_v63 }
 0x352   : > { %v9997_v52 = vpop.f32.mrf.mxu0  ;;  %v9922_v13 = vpop.f32.mrf.mxu1 }
 0x353   : > { %v3505_v54 = vadd.f32 %v12347_v28, %v9921_v61 }
 0x354   : > { %v9998_v21 = vpop.f32.mrf.mxu0  ;;  %v9923_v32 = vpop.f32.mrf.mxu1 }
 0x355   : > { %v9999_v44 = vadd.f32 %v9998_v21, %v9997_v52  ;;  %v9924_v40 = vadd.f32 %v9923_v32, %v9922_v13  ;;  %v3762_v8 = vadd.f32 %v9969_v33, %v3505_v54 }
 0x356   : > { %v10000_v7 = vpop.f32.mrf.mxu0  ;;  %v10373_v59 = vpop.f32.mrf.mxu1 }
 0x357   : > { %v3508_v29 = vadd.f32 %v12378_v43, %v9924_v40  ;;  %v3811_v0 = vadd.f32 %v10373_v59, %v3746_v60 }
 0x358   : > { %v10001_v23 = vpop.f32.mrf.mxu0  ;;  %v3802_v22 = vpop.f32.mrf.mxu1 }
 0x359   : > { %v3803_v18 = vadd.f32 %v3802_v22, %v12423_v9  ;;  %v3765_v41 = vadd.f32 %v9972_v17, %v3508_v29  ;;  %v10002_v38 = vadd.f32 %v10001_v23, %v10000_v7 }
 0x35a   : > { %v10003_v42 = vpop.f32.mrf.mxu0  ;;  %v10374_v27 = vpop.f32.mrf.mxu1 }
 0x35b   : > { %v3814_v53 = vadd.f32 %v10374_v27, %v3749_v50 }
 0x35c   : > { %v10004_v28 = vpop.f32.mrf.mxu0  ;;  %v3805_v24 = vpop.f32.mrf.mxu1 }
 0x35d   : > { %v10005_v30 = vadd.f32 %v10004_v28, %v10003_v42  ;;  %v3806_v48 = vadd.f32 %v3805_v24, %v12437_v49 }
 0x35e   : > { %v10006_v46 = vpop.f32.mrf.mxu0  ;;  %v10377_v35 = vpop.f32.mrf.mxu1 }
 0x35f   : > { %v3827_v45 = vadd.f32 %v10377_v35, %v3762_v8 }
 0x360   : > { %v10007_v39 = vpop.f32.mrf.mxu0  ;;  %v3818_v57 = vpop.f32.mrf.mxu1 }
 0x361   : > { %v3819_v58 = vadd.f32 %v3818_v57, %v3754_v14  ;;  %v10008_v2 = vadd.f32 %v10007_v39, %v10006_v46 }
 0x362   : > { %v10009_v19 = vpop.f32.mrf.mxu0  ;;  %v10378_v43 = vpop.f32.mrf.mxu1 }
 0x363   : > { %v3830_v31 = vadd.f32 %v10378_v43, %v3765_v41 }
 0x364   : > { %v10010_v20 = vpop.f32.mrf.mxu0  ;;  %v3821_v37 = vpop.f32.mrf.mxu1 }
 0x365   : > { %v10011_v56 = vadd.f32 %v10010_v20, %v10009_v19  ;;  %v3822_v49 = vadd.f32 %v3821_v37, %v12484_v36 }
 0x366   : > { %v10012_v9 = vpop.f32.mrf.mxu0 }
 0x367   : > { %v10389_v47 = vpop.f32.mrf.mxu1 }
 0x368   : > { %v4191_v25 = vadd.f32 %v10389_v47, %v10005_v30  ;;  %v10013_v26 = vpop.f32.mrf.mxu0 }
 0x369   : > { %v4182_v60 = vpop.f32.mrf.mxu1  ;;  %v10014_v21 = vadd.f32 %v10013_v26, %v10012_v9 }
 0x36a   : > { %v4215_v51 = vadd.f32 %v4191_v25, %v3811_v0  ;;  %v4183_v34 = vadd.f32 %v9999_v44, %v4182_v60  ;;  %v10015_v4 = vpop.f32.mrf.mxu0 }
 0x36b   : > { %v10390_v1 = vpop.f32.mrf.mxu1 }
 0x36c   : > { %v4213_v11 = vadd.f32 %v4183_v34, %v3803_v18  ;;  %v4194_v50 = vadd.f32 %v10390_v1, %v10008_v2  ;;  %v10016_v62 = vpop.f32.mrf.mxu0  ;;  %v10798_v2 = vld [vmem:[%s13575_s5 + $0x38] sm:$0xff]  }
 0x36d   : > { %v10017_v55 = vadd.f32 %v10016_v62, %v10015_v4  ;;  %v4185_v3 = vpop.f32.mrf.mxu1  ;;  %v10803_v1 = vld [vmem:[%s13575_s5 + $0x98] sm:$0xff]   ;;  %6621 = vmatpush1.bf16.msra.mxu0 %v10798_v2  ;;  %v12532_v62 = vld [vmem:[#allocation5] sm:$0xff] }
 0x36e   : > { %v4216_v33 = vadd.f32 %v4194_v50, %v3814_v53  ;;  %v4186_v5 = vadd.f32 %v10002_v38, %v4185_v3  ;;  %v10018_v63 = vpop.f32.mrf.mxu0  ;;  %6622 = vmatprep.subr.bf16.mxu0 %v12532_v62  ;;  %6436 = vmatpush1.bf16.msra.mxu1 %v10803_v1  ;;  %6188 = vst.msk [vmem:[#allocation7] sm:$0xff] %vm12544_vm0, %v12532_v62  ;;  %6189 = vst.msk [vmem:[#allocation7 + $0x8] sm:$0xff] %vm12544_vm0, %v12532_v62 }
 0x36f   : > { %v10393_v14 = vpop.f32.mrf.mxu1  ;;  %6437 = vmatprep.subr.bf16.mxu1 %v12532_v62  ;;  %6190 = vst.msk [vmem:[#allocation7 + $0x10] sm:$0xff] %vm12544_vm0, %v12532_v62  ;;  %6191 = vst.msk [vmem:[#allocation7 + $0x18] sm:$0xff] %vm12544_vm0, %v12532_v62 }
 0x370   : > { %v4214_v6 = vadd.f32 %v4186_v5, %v3806_v48  ;;  %v4207_v15 = vadd.f32 %v10393_v14, %v10017_v55  ;;  %v10019_v10 = vpop.f32.mrf.mxu0  ;;  %v10805_v55 = vld [vmem:[%s13575_s5 + $0x90] sm:$0xff]   ;;  %6192 = vst.msk [vmem:[#allocation7 + $0x20] sm:$0xff] %vm12544_vm0, %v12532_v62  ;;  %6193 = vst.msk [vmem:[#allocation7 + $0x28] sm:$0xff] %vm12544_vm0, %v12532_v62 }
 0x371   : > { %v10020_v16 = vadd.f32 %v10019_v10, %v10018_v63  ;;  %v4198_v12 = vpop.f32.mrf.mxu1  ;;  %v10800_v63 = vld [vmem:[%s13575_s5 + $0x28] sm:$0xff]   ;;  %6194 = vst.msk [vmem:[#allocation7 + $0x30] sm:$0xff] %vm12544_vm0, %v12532_v62  ;;  %6195 = vst.msk [vmem:[#allocation7 + $0x38] sm:$0xff] %vm12544_vm0, %v12532_v62  ;;  %v10920_v14 = vld [vmem:[%s13577_s7 + $0xd0] sm:$0xff]  }
 0x372   : > { %v12490_v61 = vadd.f32 %v4207_v15, %v3827_v45  ;;  %v4199_v52 = vadd.f32 %v10011_v56, %v4198_v12  ;;  %v10405_v13 = vpop.f32.mrf.mxu0  ;;  %6438 = vmatpush1.bf16.msra.mxu1 %v10805_v55  ;;  %v10807_v10 = vld [vmem:[%s13575_s5 + $0x88] sm:$0xff]   ;;  %6196 = vst.msk [vmem:[#allocation7 + $0x40] sm:$0xff] %vm12544_vm0, %v12532_v62  ;;  %6197 = vst.msk [vmem:[#allocation7 + $0x48] sm:$0xff] %vm12544_vm0, %v12532_v62 }
 0x373   : > { %v10394_v54 = vpop.f32.mrf.mxu1  ;;  %6198 = vst.msk [vmem:[#allocation7 + $0x50] sm:$0xff] %vm12544_vm0, %v12532_v62  ;;  %6199 = vst.msk [vmem:[#allocation7 + $0x58] sm:$0xff] %vm12544_vm0, %v12532_v62  ;;  %6439 = vmatprep.subr.bf16.mxu1 %v12532_v62 }
 0x374   : > { %v4217_v32 = vadd.f32 %v4199_v52, %v3819_v58  ;;  %v4210_v44 = vadd.f32 %v10394_v54, %v10020_v16  ;;  %v4569_v40 = vpop.f32.mrf.mxu0  ;;  %7772 = vst.msk [vmem:[#allocation9] sm:$0xff] %vm12544_vm0, %v12532_v62  ;;  %7773 = vst.msk [vmem:[#allocation9 + $0x8] sm:$0xff] %vm12544_vm0, %v12532_v62  ;;  %v10801_v54 = vld [vmem:[%s13575_s5 + $0x20] sm:$0xff]  }
 0x375   : > { %v4201_v7 = vpop.f32.mrf.mxu1  ;;  %7774 = vst.msk [vmem:[#allocation9 + $0x10] sm:$0xff] %vm12544_vm0, %v12532_v62  ;;  %7775 = vst.msk [vmem:[#allocation9 + $0x18] sm:$0xff] %vm12544_vm0, %v12532_v62 }
 0x376   : > { %v12493_v8 = vadd.f32 %v4210_v44, %v3830_v31  ;;  %v4202_v59 = vadd.f32 %v10014_v21, %v4201_v7  ;;  %v10406_v17 = vpop.f32.mrf.mxu0  ;;  %7776 = vst.msk [vmem:[#allocation9 + $0x20] sm:$0xff] %vm12544_vm0, %v12532_v62  ;;  %7777 = vst.msk [vmem:[#allocation9 + $0x28] sm:$0xff] %vm12544_vm0, %v12532_v62  ;;  %6440 = vmatpush1.bf16.msra.mxu1 %v10807_v10 }
 0x377   : > { %7778 = vst.msk [vmem:[#allocation9 + $0x30] sm:$0xff] %vm12544_vm0, %v12532_v62  ;;  %7779 = vst.msk [vmem:[#allocation9 + $0x38] sm:$0xff] %vm12544_vm0, %v12532_v62  ;;  %6441 = vmatprep.subr.bf16.mxu1 %v12532_v62 }
 0x378   : > { %v12495_v29 = vadd.f32 %v4202_v59, %v3822_v49  ;;  %v4572_v0 = vpop.f32.mrf.mxu0  ;;  %7780 = vst.msk [vmem:[#allocation9 + $0x40] sm:$0xff] %vm12544_vm0, %v12532_v62  ;;  %7781 = vst.msk [vmem:[#allocation9 + $0x48] sm:$0xff] %vm12544_vm0, %v12532_v62 }
 0x37a   : > { %v12497_v23 = vpop.f32.mrf.mxu0 }
 0x37c   : > { %v4585_v22 = vpop.f32.mrf.mxu0 }
 0x37e   : > { %v12499_v18 = vpop.f32.mrf.mxu0 }
 0x380   : > { %v12501_v42 = vpop.f32.mrf.mxu0 }
 0x382   : > { %v12503_v41 = vpop.f32.mrf.mxu0 }
 0x384   : > { %v12505_v53 = vpop.f32.mrf.mxu0 }
 0x386   : > { %v12507_v30 = vpop.f32.mrf.mxu0 }
 0x387   : > { %v10045_v27 = vpop.f32.mrf.mxu1 }
 0x388   : > { %v12511_v58 = vpop.f32.mrf.mxu0 }
 0x389   : > { %v10046_v36 = vpop.f32.mrf.mxu1 }
 0x38a   : > { %v10047_v28 = vadd.f32 %v10046_v36, %v10045_v27  ;;  %v12515_v56 = vpop.f32.mrf.mxu0 }
 0x38b   : > { %v10048_v24 = vpop.f32.mrf.mxu1 }
 0x38c   : > { %v4570_v46 = vadd.f32 %v10047_v28, %v4569_v40  ;;  %v12522_v34 = vpop.f32.mrf.mxu0  ;;  %v10809_v40 = vld [vmem:[%s13575_s5 + $0x80] sm:$0xff]  }
 0x38d   : > { %v10049_v35 = vpop.f32.mrf.mxu1  ;;  %6442 = vmatpush1.bf16.msra.mxu1 %v10809_v40 }
 0x38e   : > { %v12509_v45 = vadd.f32 %v4570_v46, %v4213_v11  ;;  %v10050_v39 = vadd.f32 %v10049_v35, %v10048_v24  ;;  %v12539_v48 = vpop.f32.mrf.mxu0  ;;  %6443 = vmatprep.subr.bf16.mxu1 %v12532_v62 }
 0x38f   : > { %v10051_v57 = vpop.f32.mrf.mxu1 }
 0x390   : > { %v4573_v19 = vadd.f32 %v10050_v39, %v4572_v0  ;;  %v12621_v12 = vpop.f32.mrf.mxu0  ;;  %v12643_v0 = vld [vmem:[#allocation7] sm:$0xff]  ;;  %v10804_v39 = vld [vmem:[%s13575_s5 + $0x10] sm:$0xff]  }
 0x391   : > { %v10052_v43 = vpop.f32.mrf.mxu1 }
 0x392   : > { %v12513_v31 = vadd.f32 %v4573_v19, %v4214_v6  ;;  %v10053_v20 = vadd.f32 %v10052_v43, %v10051_v57 }
 0x393   : > { %v10054_v37 = vpop.f32.mrf.mxu1 }
 0x394   : > { %v4578_v9 = vadd.f32 %v10405_v13, %v10053_v20 }
 0x395   : > { %v10055_v47 = vpop.f32.mrf.mxu1 }
 0x396   : > { %v12517_v25 = vadd.f32 %v4578_v9, %v4215_v51  ;;  %v10056_v26 = vadd.f32 %v10055_v47, %v10054_v37  ;;  %v10799_v51 = vld [vmem:[%s13575_s5 + $0x30] sm:$0xff]  }
 0x397   : > { %v10057_v60 = vpop.f32.mrf.mxu1  ;;  %6623 = vmatpush1.bf16.msra.mxu0 %v10799_v51 }
 0x398   : > { %v4581_v4 = vadd.f32 %v10406_v17, %v10056_v26  ;;  %6624 = vmatprep.subr.bf16.mxu0 %v12532_v62  ;;  %v10815_v26 = vld [vmem:[%s13575_s5 + $0x68] sm:$0xff]  }
 0x399   : > { %v10058_v38 = vpop.f32.mrf.mxu1 }
 0x39a   : > { %v12530_v11 = vadd.f32 %v4581_v4, %v4216_v33  ;;  %v10059_v50 = vadd.f32 %v10058_v38, %v10057_v60  ;;  %v10808_v38 = vld [vmem:[%s13575_s5] sm:$0xff]  }
 0x39b   : > { %v10060_v3 = vpop.f32.mrf.mxu1  ;;  %6625 = vmatpush1.bf16.msra.mxu0 %v10800_v63  ;;  %v10821_v63 = vld [vmem:[%s13575_s5 + $0xb8] sm:$0xff]  }
 0x39c   : > { %v4586_v5 = vadd.f32 %v10059_v50, %v4585_v22  ;;  %6626 = vmatprep.subr.bf16.mxu0 %v12532_v62  ;;  %v12645_v22 = vld [vmem:[#allocation7 + $0x8] sm:$0xff] }
 0x39d   : > { %v10061_v33 = vpop.f32.mrf.mxu1  ;;  %v9457_v24 = vcombine.high %v12643_v0, %v12645_v22 }
 0x39e   : > { %v12548_v6 = vadd.f32 %v4586_v5, %v4217_v32  ;;  %v10062_v15 = vadd.f32 %v10061_v33, %v10060_v3 }
 0x39f   : > { %v10063_v16 = vpop.f32.mrf.mxu1  ;;  %6627 = vmatpush1.bf16.msra.mxu0 %v10801_v54  ;;  %9476 = vmatprep.mubr.msk.bf16.mxu0 %vm2909_vm4, %v9457_v24 }
 0x3a0   : > { %v4589_v52 = vadd.f32 %v10062_v15, %v12501_v42  ;;  %6628 = vmatprep.subr.bf16.mxu0 %v12532_v62 }
 0x3a1   : > { %v10064_v13 = vpop.f32.mrf.mxu1 }
 0x3a2   : > { %v12628_v21 = vadd.f32 %v4589_v52, %v12495_v29  ;;  %v10065_v32 = vadd.f32 %v10064_v13, %v10063_v16  ;;  %v12630_v44 = vpop.f32.mrf.mxu0  ;;  %v10802_v29 = vld [vmem:[%s13575_s5 + $0x18] sm:$0xff]   ;;  %v10812_v52 = vld [vmem:[%s13575_s5 + $0x50] sm:$0xff]  }
 0x3a3   : > { %v10066_v7 = vpop.f32.mrf.mxu1  ;;  %6629 = vmatpush1.bf16.msra.mxu0 %v10802_v29 }
 0x3a4   : > { %v4594_v49 = vadd.f32 %v12497_v23, %v10065_v32  ;;  %v12638_v59 = vpop.f32.mrf.mxu0  ;;  %v10811_v23 = vld [vmem:[%s13575_s5 + $0x78] sm:$0xff]   ;;  %6630 = vmatprep.subr.bf16.mxu0 %v12532_v62 }
 0x3a5   : > { %v10067_v17 = vpop.f32.mrf.mxu1  ;;  %6444 = vmatpush1.bf16.msra.mxu1 %v10811_v23 }
 0x3a6   : > { %v12648_v42 = vadd.f32 %v4594_v49, %v12490_v61  ;;  %v10068_v27 = vadd.f32 %v10067_v17, %v10066_v7  ;;  %v12650_v36 = vpop.f32.mrf.mxu0  ;;  %6445 = vmatprep.subr.bf16.mxu1 %v12532_v62  ;;  %v10814_v17 = vld [vmem:[%s13575_s5 + $0x48] sm:$0xff]  }
 0x3a7   : > { %v12656_v28 = vpop.f32.mrf.mxu1  ;;  %6631 = vmatpush1.bf16.msra.mxu0 %v10804_v39 }
 0x3a8   : > { %v4597_v61 = vadd.f32 %v12499_v18, %v10068_v27  ;;  %v12662_v46 = vpop.f32.mrf.mxu0  ;;  %v10813_v18 = vld [vmem:[%s13575_s5 + $0x70] sm:$0xff]   ;;  %6632 = vmatprep.subr.bf16.mxu0 %v12532_v62 }
 0x3a9   : > { %v12664_v35 = vpop.f32.mrf.mxu1  ;;  %6446 = vmatpush1.bf16.msra.mxu1 %v10813_v18  ;;  %v10816_v18 = vld [vmem:[%s13575_s5 + $0x40] sm:$0xff]  }
 0x3aa   : > { %v12671_v57 = vadd.f32 %v4597_v61, %v12493_v8  ;;  %v12673_v19 = vpop.f32.mrf.mxu0  ;;  %v10806_v8 = vld [vmem:[%s13575_s5 + $0x8] sm:$0xff]   ;;  %6447 = vmatprep.subr.bf16.mxu1 %v12532_v62 }
 0x3ab   : > { %v10096_v43 = vpop.f32.mrf.mxu1  ;;  %6633 = vmatpush1.bf16.msra.mxu0 %v10806_v8 }
 0x3ac   : > { %v12680_v20 = vpop.f32.mrf.mxu0  ;;  %6634 = vmatprep.subr.bf16.mxu0 %v12532_v62 }
 0x3ad   : > { %v10097_v37 = vpop.f32.mrf.mxu1  ;;  %6448 = vmatpush1.bf16.msra.mxu1 %v10815_v26 }
 0x3ae   : > { %v10098_v9 = vadd.f32 %v10097_v37, %v10096_v43  ;;  %v12685_v47 = vpop.f32.mrf.mxu0  ;;  %6449 = vmatprep.subr.bf16.mxu1 %v12532_v62 }
 0x3af   : > { %v12691_v60 = vpop.f32.mrf.mxu1  ;;  %6635 = vmatpush1.bf16.msra.mxu0 %v10808_v38  ;;  %v10820_v38 = vld [vmem:[%s13575_s5 + $0x158] sm:$0xff]  }
 0x3b0   : > { %v4961_v2 = vadd.f32 %v10098_v9, %v12511_v58  ;;  %v12695_v4 = vpop.f32.mrf.mxu0  ;;  %v10817_v58 = vld [vmem:[%s13575_s5 + $0x60] sm:$0xff]   ;;  %6644 = vmatprep.subr.bf16.mxu0 %v12532_v62 }
 0x3b1   : > { %v12697_v1 = vpop.f32.mrf.mxu1  ;;  %6450 = vmatpush1.bf16.msra.mxu1 %v10817_v58 }
 0x3b2   : > { %v12702_v51 = vpop.f32.mrf.mxu0  ;;  %v12705_v50 = vadd.f32 %v4961_v2, %v12513_v31  ;;  %v10810_v31 = vld [vmem:[%s13575_s5 + $0x58] sm:$0xff]   ;;  %6459 = vmatprep.subr.bf16.mxu1 %v12532_v62 }
 0x3b3   : > { %v12711_v55 = vpop.f32.mrf.mxu1  ;;  %6645 = vmatpush2.bf16.msra.mxu0 %v10810_v31 }
 0x3b4   : > { %v12714_v3 = vpop.f32.mrf.mxu0  ;;  %6646 = vmatprep.subr.bf16.mxu0 %v12532_v62 }
 0x3b5   : > { %v12716_v5 = vpop.f32.mrf.mxu1  ;;  %6460 = vmatpush2.bf16.msra.mxu1 %v10821_v63 }
 0x3b6   : > { %v12721_v33 = vpop.f32.mrf.mxu0  ;;  %6461 = vmatprep.subr.bf16.mxu1 %v12532_v62 }
 0x3b7   : > { %v10105_v15 = vpop.f32.mrf.mxu1  ;;  %6647 = vmatpush2.bf16.msra.mxu0 %v10812_v52 }
 0x3b8   : > { %v12728_v10 = vpop.f32.mrf.mxu0  ;;  %6648 = vmatprep.subr.bf16.mxu0 %v12532_v62 }
 0x3b9   : > { %v10106_v16 = vpop.f32.mrf.mxu1 }
 0x3ba   : > { %v10107_v13 = vadd.f32 %v10106_v16, %v10105_v15  ;;  %v12733_v54 = vpop.f32.mrf.mxu0  ;;  %v10822_v16 = vld [vmem:[%s13575_s5 + $0x150] sm:$0xff]  }
 0x3bb   : > { %v10108_v32 = vpop.f32.mrf.mxu1  ;;  %6649 = vmatpush2.bf16.msra.mxu0 %v10814_v17  ;;  %v10095_v17 = vadd.f32 %v12664_v35, %v12656_v28  ;;  %v10143_v28 = vadd.f32 %v12638_v59, %v12630_v44  ;;  %v10155_v44 = vadd.f32 %v12714_v3, %v12702_v51  ;;  %v10158_v59 = vadd.f32 %v12728_v10, %v12721_v33  ;;  %v12812_v3 = vld [vmem:[%s13574_s4] ss:$0 sm:$0xff] }
 0x3bc   : > { %v4974_v40 = vadd.f32 %v10107_v13, %v12522_v34  ;;  %v10160_v7 = vpop.f32.mrf.mxu0  ;;  %6650 = vmatprep.subr.bf16.mxu0 %v12532_v62 }
 0x3bd   : > { %v10109_v49 = vpop.f32.mrf.mxu1 }
 0x3be   : > { %v10110_v29 = vadd.f32 %v10109_v49, %v10108_v32  ;;  %v12741_v27 = vpop.f32.mrf.mxu0  ;;  %v12744_v23 = vadd.f32 %v4974_v40, %v12548_v6 }
 0x3bf   : > { %v10111_v24 = vpop.f32.mrf.mxu1  ;;  %6651 = vmatpush2.bf16.msra.mxu0 %v10816_v18 }
 0x3c0   : > { %v4977_v61 = vadd.f32 %v10110_v29, %v12621_v12  ;;  %v12748_v39 = vpop.f32.mrf.mxu0  ;;  %v9456_v12 = vcombine.low %v12643_v0, %v12645_v22  ;;  %7065 = vmatprep.subr.bf16.mxu0 %v12532_v62  ;;  %v10104_v29 = vadd.f32 %v12716_v5, %v12711_v55  ;;  %v10146_v55 = vadd.f32 %v12662_v46, %v12650_v36 }
 0x3c1   : > { %v10112_v34 = vpop.f32.mrf.mxu1  ;;  %v10161_v5 = vadd.f32 %v10160_v7, %v12733_v54 }
 0x3c2   : > { %v10113_v43 = vadd.f32 %v10112_v34, %v10111_v24  ;;  %v10189_v37 = vpop.f32.mrf.mxu0  ;;  %v12754_v8 = vadd.f32 %v4977_v61, %v12628_v21  ;;  %6653 = vmatmul.mubr.bf16.vlgmr.msra.gmra.mxu0 %v9456_v12  ;;  %v10149_v34 = vadd.f32 %v12680_v20, %v12673_v19 }
 0x3c3   : > { %v10114_v6 = vpop.f32.mrf.mxu1  ;;  %7066 = vmatpush1.bf16.msra.mxu0 %v10820_v38  ;;  %v10164_v38 = vadd.f32 %v12748_v39, %v12741_v27 }
 0x3c4   : > { %v4982_v9 = vadd.f32 %v12515_v56, %v10113_v43  ;;  %v10190_v26 = vpop.f32.mrf.mxu0  ;;  %7067 = vmatprep.subr.bf16.mxu0 %v12532_v62 }
 0x3c5   : > { %v10115_v2 = vpop.f32.mrf.mxu1  ;;  %v10191_v7 = vadd.f32 %v10190_v26, %v10189_v37 }
 0x3c6   : > { %v10116_v58 = vadd.f32 %v10115_v2, %v10114_v6  ;;  %v12763_v31 = vpop.f32.mrf.mxu0  ;;  %v12766_v21 = vadd.f32 %v4982_v9, %v12648_v42 }
 0x3c7   : > { %v10437_v63 = vpop.f32.mrf.mxu1  ;;  %7068 = vmatpush1.bf16.msra.mxu0 %v10822_v16 }
 0x3c8   : > { %v4985_v56 = vadd.f32 %v12539_v48, %v10116_v58  ;;  %v10193_v15 = vpop.f32.mrf.mxu0  ;;  %v10101_v48 = vadd.f32 %v12697_v1, %v12691_v60  ;;  %7069 = vmatprep.subr.bf16.mxu0 %v12532_v62  ;;  %v4958_v60 = vadd.f32 %v10095_v17, %v12505_v53  ;;  %v4969_v1 = vadd.f32 %v12507_v30, %v10104_v29 }
 0x3c9   : > { %v5345_v0 = vpop.f32.mrf.mxu1  ;;  %v5354_v35 = vadd.f32 %v10437_v63, %v10149_v34 }
 0x3ca   : > { %v10195_v52 = vpop.f32.mrf.mxu0  ;;  %v12774_v13 = vadd.f32 %v4985_v56, %v12671_v57  ;;  %v4966_v18 = vadd.f32 %v12503_v41, %v10101_v48  ;;  %v10152_v41 = vadd.f32 %v12695_v4, %v12685_v47  ;;  %v5346_v53 = vadd.f32 %v10143_v28, %v5345_v0 }
 0x3cb   : > { %v10438_v42 = vpop.f32.mrf.mxu1  ;;  %v4988_v36 = vadd.f32 %v4958_v60, %v12509_v45  ;;  %v4991_v46 = vadd.f32 %v4969_v1, %v12530_v11  ;;  %v10194_v56 = vadd.f32 %v10193_v15, %v12763_v31 }
 0x3cc   : > { %v10196_v32 = vpop.f32.mrf.mxu0  ;;  %v4990_v19 = vadd.f32 %v4966_v18, %v12517_v25  ;;  %v5357_v47 = vadd.f32 %v10438_v42, %v10152_v41 }
 0x3cd   : > { %v5348_v40 = vpop.f32.mrf.mxu1  ;;  %v10197_v20 = vadd.f32 %v10196_v32, %v10195_v52  ;;  %v5376_v11 = vadd.f32 %v5346_v53, %v4988_v36 }
 0x3ce   : > { %v10198_v49 = vpop.f32.mrf.mxu0  ;;  %v5378_v2 = vadd.f32 %v5354_v35, %v4990_v19  ;;  %v5349_v58 = vadd.f32 %v10146_v55, %v5348_v40  ;;  %v5379_v39 = vadd.f32 %v5357_v47, %v4991_v46  ;;  %v5957_v47 = vld [vmem:[#allocation6 + $0x10] sm:$0xf] }
 0x3cf   : > { %v10441_v57 = vpop.f32.mrf.mxu1 }
 0x3d0   : > { %v10199_v24 = vpop.f32.mrf.mxu0  ;;  %v5370_v63 = vadd.f32 %v10441_v57, %v10161_v5  ;;  %v5377_v48 = vadd.f32 %v5349_v58, %v12705_v50 }
 0x3d1   : > { %v5361_v61 = vpop.f32.mrf.mxu1  ;;  %v10200_v33 = vadd.f32 %v10199_v24, %v10198_v49 }
 0x3d2   : > { %v10201_v43 = vpop.f32.mrf.mxu0  ;;  %v5362_v51 = vadd.f32 %v10155_v44, %v5361_v61  ;;  %v5382_v49 = vadd.f32 %v5370_v63, %v12766_v21 }
 0x3d3   : > { %v10442_v6 = vpop.f32.mrf.mxu1 }
 0x3d4   : > { %v10202_v9 = vpop.f32.mrf.mxu0  ;;  %v5373_v0 = vadd.f32 %v10442_v6, %v10164_v38  ;;  %v5380_v17 = vadd.f32 %v5362_v51, %v12744_v23  ;;  %v5960_v51 = vld [vmem:[#allocation6 + $0x14] sm:$0x1] }
 0x3d5   : > { %v5364_v12 = vpop.f32.mrf.mxu1  ;;  %v10203_v60 = vadd.f32 %v10202_v9, %v10201_v43 }
 0x3d6   : > { %v12797_v30 = vpop.f32.mrf.mxu0  ;;  %v5365_v16 = vadd.f32 %v10158_v59, %v5364_v12  ;;  %v12821_v34 = vadd.f32 %v5373_v0, %v12774_v13 }
 0x3d7   : > { %v10453_v54 = vpop.f32.mrf.mxu1 }
 0x3d8   : > { %v5742_v4 = vadd.f32 %v10453_v54, %v10197_v20  ;;  %v12805_v25 = vpop.f32.mrf.mxu0  ;;  %v12824_v18 = vadd.f32 %v5365_v16, %v12754_v8  ;;  %v5948_v16 = vld [vmem:[#allocation6 + $0x4] sm:$0x1] }
 0x3d9   : > { %v5733_v45 = vpop.f32.mrf.mxu1 }
 0x3da   : > { %v5766_v10 = vadd.f32 %v5742_v4, %v5378_v2  ;;  %v5734_v37 = vadd.f32 %v10191_v7, %v5733_v45  ;;  %v10207_v26 = vpop.f32.mrf.mxu0 }
 0x3db   : > { %v10454_v27 = vpop.f32.mrf.mxu1 }
 0x3dc   : > { %v5781_v52 = vadd.f32 %v12812_v3, %v5766_v10  ;;  %v5764_v42 = vadd.f32 %v5734_v37, %v5376_v11  ;;  %v5745_v32 = vadd.f32 %v10454_v27, %v10200_v33  ;;  %v10208_v40 = vpop.f32.mrf.mxu0 }
 0x3dd   : > { %v10209_v29 = vadd.f32 %v10208_v40, %v10207_v26  ;;  %v5736_v57 = vpop.f32.mrf.mxu1 }
 0x3de   : > { %vm5789_vm6 = vcmp.ge.f32.partialorder %v5781_v52, 0.0  ;;  %v5797_v31 = vmul.f32 0.01, %v5781_v52  ;;  %v5779_v15 = vadd.f32 %v12812_v3, %v5764_v42  ;;  %v5767_v24 = vadd.f32 %v5745_v32, %v5379_v39  ;;  %v10210_v61 = vpop.f32.mrf.mxu0 }
 0x3df   : > { %v5737_v50 = vadd.f32 %v10194_v56, %v5736_v57  ;;  %v10457_v1 = vpop.f32.mrf.mxu1  ;;  %v5942_v56 = vld [vmem:[#allocation6] sm:$0xf] }
 0x3e0   : > { %v5805_v21 = vsel %vm5789_vm6, %v5781_v52, %v5797_v31  ;;  %vm5787_vm7 = vcmp.ge.f32.partialorder %v5779_v15, 0.0  ;;  %v5795_v23 = vmul.f32 0.01, %v5779_v15  ;;  %v5782_v6 = vadd.f32 %v12812_v3, %v5767_v24  ;;  %v10211_v28 = vpop.f32.mrf.mxu0  ;;  %v5966_v24 = vld [vmem:[#allocation6 + $0x1c] sm:$0x1] }
 0x3e1   : > { %v9808_v35 = vpack.c.bf16 %v5805_v21, %v5805_v21  ;;  %v5765_v55 = vadd.f32 %v5737_v50, %v5377_v48  ;;  %v5758_v5 = vadd.f32 %v10457_v1, %v10209_v29  ;;  %v10212_v12 = vadd.f32 %v10211_v28, %v10210_v61  ;;  %v5749_v41 = vpop.f32.mrf.mxu1 }
 0x3e2   : > { %v5803_v19 = vsel %vm5787_vm7, %v5779_v15, %v5795_v23  ;;  %vm5790_vm8 = vcmp.ge.f32.partialorder %v5782_v6, 0.0  ;;  %v5798_v13 = vmul.f32 0.01, %v5782_v6  ;;  %v5750_v53 = vadd.f32 %v10203_v60, %v5749_v41  ;;  %v5963_v15 = vld [vmem:[#allocation6 + $0x18] sm:$0xf] }
 0x3e3   : > { %v5876_v8 = vshrl.u32 %v9808_v35, 16  ;;  %v5879_v20 = vshll.u32 %v9808_v35, 16  ;;  %v9806_v43 = vpack.c.bf16 %v5803_v19, %v5803_v19  ;;  %v5780_v9 = vadd.f32 %v12812_v3, %v5765_v55  ;;  %v10458_v44 = vpop.f32.mrf.mxu1 }
 0x3e4   : > { %v5806_v59 = vsel %vm5790_vm8, %v5782_v6, %v5798_v13  ;;  %v5770_v36 = vadd.f32 %v5758_v5, %v5382_v49  ;;  %v5768_v46 = vadd.f32 %v5750_v53, %v5380_v17  ;;  %v5761_v54 = vadd.f32 %v10458_v44, %v10212_v12  ;;  %v5954_v13 = vld [vmem:[#allocation6 + $0xc] sm:$0x1] }
 0x3e5   : > { %v5878_v7 = vrot.slane %v5876_v8, 7  ;;  %v5860_v4 = vshrl.u32 %v9806_v43, 16  ;;  %v5863_v38 = vshll.u32 %v9806_v43, 16  ;;  %v9809_v58 = vpack.c.bf16 %v5806_v59, %v5806_v59  ;;  %v5752_v6 = vpop.f32.mrf.mxu1  ;;  %v5984_v59 = vld [vmem:[#allocation6 + $0x34] sm:$0x1] }
 0x3e6   : > { %vm5788_vm11 = vcmp.ge.f32.partialorder %v5780_v9, 0.0  ;;  %v5796_v45 = vmul.f32 0.01, %v5780_v9  ;;  %v5785_v11 = vadd.f32 %v12812_v3, %v5770_v36  ;;  %v5783_v33 = vadd.f32 %v12812_v3, %v5768_v46 }
 0x3e7   : > { %v5881_v10 = vor.u32 %v5879_v20, %v5878_v7  ;;  %v5882_v37 = vrot.slane %v5878_v7, 4  ;;  %v5862_v26 = vrot.slane %v5860_v4, 7  ;;  %v5884_v0 = vshrl.u32 %v9809_v58, 16  ;;  %v5981_v20 = vld [vmem:[#allocation6 + $0x30] sm:$0xf] }
 0x3e8   : > { %v5887_v27 = vshll.u32 %v9809_v58, 16  ;;  %v5804_v39 = vsel %vm5788_vm11, %v5780_v9, %v5796_v45  ;;  %vm5793_vm1 = vcmp.ge.f32.partialorder %v5785_v11, 0.0  ;;  %v5801_v52 = vmul.f32 0.01, %v5785_v11  ;;  %v5969_v45 = vld [vmem:[#allocation6 + $0x20] sm:$0xf] }
 0x3e9   : > { %v5958_v42 = vsel %vm12830_vm9, %v5881_v10, %v5957_v47  ;;  %v5961_v32 = vsel %vm12836_vm10, %v5882_v37, %v5960_v51  ;;  %v5865_v40 = vor.u32 %v5863_v38, %v5862_v26  ;;  %v5866_v48 = vrot.slane %v5862_v26, 4  ;;  %v5972_v26 = vld [vmem:[#allocation6 + $0x24] sm:$0x1] }
 0x3ea   : > { %5959 = vst [vmem:[#allocation6 + $0x10] sm:$0xf] %v5958_v42  ;;  %5962 = vst [vmem:[#allocation6 + $0x14] sm:$0x1] %v5961_v32  ;;  %v5886_v49 = vrot.slane %v5884_v0, 7  ;;  %v9807_v17 = vpack.c.bf16 %v5804_v39, %v5804_v39  ;;  %v5809_v29 = vsel %vm5793_vm1, %v5785_v11, %v5801_v52  ;;  %vm5791_vm3 = vcmp.ge.f32.partialorder %v5783_v33, 0.0 }
 0x3eb   : > { %v5943_v57 = vsel %vm12830_vm9, %v5865_v40, %v5942_v56  ;;  %v5949_v31 = vsel %vm12836_vm10, %v5866_v48, %v5948_v16  ;;  %v9812_v61 = vpack.c.bf16 %v5809_v29, %v5809_v29  ;;  %v5799_v60 = vmul.f32 0.01, %v5783_v33  ;;  %v10823_v32 = vld [vmem:[%s13575_s5 + $0xb0] sm:$0xff]   ;;  %v10824_v40 = vld [vmem:[%s13575_s5 + $0x148] sm:$0xff]  }
 0x3ec   : > { %v10206_v50 = vadd.f32 %v12805_v25, %v12797_v30  ;;  %5944 = vst [vmem:[#allocation6] sm:$0xf] %v5943_v57  ;;  %5950 = vst [vmem:[#allocation6 + $0x4] sm:$0x1] %v5949_v31  ;;  %v5889_v1 = vor.u32 %v5887_v27, %v5886_v49  ;;  %v5890_v21 = vrot.slane %v5886_v49, 4  ;;  %v5868_v23 = vshrl.u32 %v9807_v17, 16  ;;  %6462 = vmatpush2.bf16.msra.mxu1 %v10823_v32 }
 0x3ed   : > { %v5871_v28 = vshll.u32 %v9807_v17, 16  ;;  %v5908_v35 = vshrl.u32 %v9812_v61, 16  ;;  %v5807_v55 = vsel %vm5791_vm3, %v5783_v33, %v5799_v60  ;;  %v5771_v5 = vadd.f32 %v5761_v54, %v12821_v34  ;;  %v5951_v30 = vld [vmem:[#allocation6 + $0x8] sm:$0xf]  ;;  %7070 = vmatpush1.bf16.msra.mxu0 %v10824_v40  ;;  %6463 = vmatprep.subr.bf16.mxu1 %v12532_v62 }
 0x3ee   : > { %v5964_v12 = vsel %vm12830_vm9, %v5889_v1, %v5963_v15  ;;  %v5967_v41 = vsel %vm12836_vm10, %v5890_v21, %v5966_v24  ;;  %v5870_v19 = vrot.slane %v5868_v23, 7  ;;  %v9810_v25 = vpack.c.bf16 %v5807_v55, %v5807_v55  ;;  %7071 = vmatprep.subr.bf16.mxu0 %v12532_v62  ;;  %v5990_v1 = vld [vmem:[#allocation6 + $0x3c] sm:$0x1] }
 0x3ef   : > { %5965 = vst [vmem:[#allocation6 + $0x18] sm:$0xf] %v5964_v12  ;;  %5968 = vst [vmem:[#allocation6 + $0x1c] sm:$0x1] %v5967_v41  ;;  %v5910_v53 = vrot.slane %v5908_v35, 7  ;;  %v5911_v8 = vshll.u32 %v9812_v61, 16  ;;  %v5786_v43 = vadd.f32 %v12812_v3, %v5771_v5  ;;  %v5753_v9 = vadd.f32 %v10206_v50, %v5752_v6 }
 0x3f0   : > { %v5873_v44 = vor.u32 %v5871_v28, %v5870_v19  ;;  %v5874_v34 = vrot.slane %v5870_v19, 4  ;;  %v5892_v36 = vshrl.u32 %v9810_v25, 16  ;;  %v5895_v46 = vshll.u32 %v9810_v25, 16  ;;  %v5987_v50 = vld [vmem:[#allocation6 + $0x38] sm:$0xf]  ;;  %v10825_v35 = vld [vmem:[%s13575_s5 + $0xa8] sm:$0xff]  }
 0x3f1   : > { %v5913_v54 = vor.u32 %v5911_v8, %v5910_v53  ;;  %v5914_v7 = vrot.slane %v5910_v53, 4  ;;  %vm5794_vm12 = vcmp.ge.f32.partialorder %v5786_v43, 0.0  ;;  %v5802_v47 = vmul.f32 0.01, %v5786_v43  ;;  %v12859_v4 = vld [vmem:[#allocation6 + $0x10] sm:$0xf]  ;;  %6464 = vmatpush2.bf16.msra.mxu1 %v10825_v35 }
 0x3f2   : > { %v5952_v38 = vsel %vm12830_vm9, %v5873_v44, %v5951_v30  ;;  %v5955_v58 = vsel %vm12836_vm10, %v5874_v34, %v5954_v13  ;;  %v5894_v51 = vrot.slane %v5892_v36, 7  ;;  %v5769_v11 = vadd.f32 %v5753_v9, %v12824_v18  ;;  %v12866_v33 = vld [vmem:[#allocation6 + $0x14] sm:$0x1]  ;;  %v10826_v55 = vld [vmem:[%s13575_s5 + $0x140] sm:$0xff]   ;;  %6465 = vmatprep.subr.bf16.mxu1 %v12532_v62 }
 0x3f3   : > { %5953 = vst [vmem:[#allocation6 + $0x8] sm:$0xf] %v5952_v38  ;;  %5956 = vst [vmem:[#allocation6 + $0xc] sm:$0x1] %v5955_v58  ;;  %v5982_v10 = vsel %vm12830_vm9, %v5913_v54, %v5981_v20  ;;  %v5985_v37 = vsel %vm12836_vm10, %v5914_v7, %v5984_v59  ;;  %v5810_v56 = vsel %vm5794_vm12, %v5786_v43, %v5802_v47  ;;  %v12872_v0 = vld [vmem:[#allocation6] sm:$0xf]  ;;  %7072 = vmatpush1.bf16.msra.mxu0 %v10826_v55 }
 0x3f4   : > { %v12874_v16 = vld [vmem:[#allocation6 + $0x4] sm:$0x1]  ;;  %v12878_v27 = vcombine.low %v12859_v4, %v12866_v33  ;;  %5983 = vst [vmem:[#allocation6 + $0x30] sm:$0xf] %v5982_v10  ;;  %5986 = vst [vmem:[#allocation6 + $0x34] sm:$0x1] %v5985_v37  ;;  %v5897_v18 = vor.u32 %v5895_v46, %v5894_v51  ;;  %v9813_v52 = vpack.c.bf16 %v5810_v56, %v5810_v56  ;;  %7073 = vmatprep.subr.bf16.mxu0 %v12532_v62 }
 0x3f5   : > { %v5898_v39 = vrot.slane %v5894_v51, 4  ;;  %v5784_v42 = vadd.f32 %v12812_v3, %v5769_v11  ;;  %v9384_v48 = vcombine.low %v12872_v0, %v12874_v16  ;;  %v10827_v54 = vld [vmem:[%s13575_s5 + $0xa0] sm:$0xff]   ;;  %v10828_v7 = vld [vmem:[%s13575_s5 + $0x138] sm:$0xff]   ;;  %v5978_v11 = vld [vmem:[#allocation6 + $0x2c] sm:$0x1] }
 0x3f6   : > { %v5970_v49 = vsel %vm12830_vm9, %v5897_v18, %v5969_v45  ;;  %v5916_v29 = vshrl.u32 %v9813_v52, 16  ;;  %v12893_v57 = vld [vmem:[#allocation6 + $0x18] sm:$0xf]  ;;  %v12895_v3 = vld [vmem:[#allocation6 + $0x1c] sm:$0x1]  ;;  %v6074_v24 = vshll.u32 %v12878_v27, 16  ;;  %6466 = vmatpush2.bf16.msra.mxu1 %v10827_v54 }
 0x3f7   : > { %v5973_v17 = vsel %vm12836_vm10, %v5898_v39, %v5972_v26  ;;  %5971 = vst [vmem:[#allocation6 + $0x20] sm:$0xf] %v5970_v49  ;;  %vm5792_vm13 = vcmp.ge.f32.partialorder %v5784_v42, 0.0  ;;  %v5800_v31 = vmul.f32 0.01, %v5784_v42  ;;  %v6060_v15 = vshll.u32 %v9384_v48, 16  ;;  %7074 = vmatpush1.bf16.msra.mxu0 %v10828_v7  ;;  %6838 = vmatprep.subr.bf16.mxu1 %v12532_v62 }
 0x3f8   : > { %5974 = vst [vmem:[#allocation6 + $0x24] sm:$0x1] %v5973_v17  ;;  %v5918_v61 = vrot.slane %v5916_v29, 7  ;;  %v5919_v60 = vshll.u32 %v9813_v52, 16  ;;  %v6058_v23 = vshrl.u32 %v9384_v48, 16  ;;  %v9387_v28 = vcombine.low %v12893_v57, %v12895_v3  ;;  %7075 = vmatprep.subr.bf16.mxu0 %v12532_v62 }
 0x3f9   : > { %v5808_v21 = vsel %vm5792_vm13, %v5784_v42, %v5800_v31  ;;  %v6062_v6 = vrot.slane %v6060_v15, 1  ;;  %v6076_v53 = vrot.slane %v6074_v24, 1  ;;  %v6072_v59 = vshrl.u32 %v12878_v27, 16  ;;  %v5975_v45 = vld [vmem:[#allocation6 + $0x28] sm:$0xf] }
 0x3fa   : > { %v5921_v5 = vor.u32 %v5919_v60, %v5918_v61  ;;  %v5922_v12 = vrot.slane %v5918_v61, 4  ;;  %v9811_v41 = vpack.c.bf16 %v5808_v21, %v5808_v21  ;;  %v12908_v19 = vld [vmem:[#allocation6 + $0x8] sm:$0xf]  ;;  %v12910_v30 = vld [vmem:[#allocation6 + $0xc] sm:$0x1]  ;;  %v6081_v36 = vshll.u32 %v9387_v28, 16 }
 0x3fb   : > { %v6063_v25 = vor.u32 %v6062_v6, %v6058_v23  ;;  %v9385_v13 = vcombine.low %v12908_v19, %v12910_v30  ;;  %v12914_v8 = vld [vmem:[#allocation6 + $0x30] sm:$0xf]  ;;  %v12916_v20 = vld [vmem:[#allocation6 + $0x34] sm:$0x1]  ;;  %v6077_v26 = vor.u32 %v6076_v53, %v6072_v59  ;;  %v6079_v49 = vshrl.u32 %v9387_v28, 16  ;;  %v10830_v23 = vld [vmem:[%s13575_s5 + $0x130] sm:$0xff]  }
 0x3fc   : > { %v5988_v43 = vsel %vm12830_vm9, %v5921_v5, %v5987_v50  ;;  %v5991_v9 = vsel %vm12836_vm10, %v5922_v12, %v5990_v1  ;;  %v5900_v44 = vshrl.u32 %v9811_v41, 16  ;;  %v9390_v46 = vcombine.low %v12914_v8, %v12916_v20  ;;  %7076 = vmatpush1.bf16.msra.mxu0 %v10830_v23  ;;  %v10833_v12 = vld [vmem:[%s13575_s5 + $0x128] sm:$0xff]   ;;  %v10846_v59 = vld [vmem:[%s13575_s5 + $0x170] sm:$0xff]  }
 0x3fd   : > { %5989 = vst [vmem:[#allocation6 + $0x38] sm:$0xf] %v5988_v43  ;;  %5992 = vst [vmem:[#allocation6 + $0x3c] sm:$0x1] %v5991_v9  ;;  %6113 = vrot.lane.b32.xlu0 %v6063_v25, %s10991_s20  ;;  %v6067_v34 = vshll.u32 %v9385_v13, 16  ;;  %v5903_v38 = vshll.u32 %v9811_v41, 16  ;;  %7077 = vmatprep.subr.bf16.mxu0 %v12532_v62 }
 0x3fe   : > { %v5902_v47 = vrot.slane %v5900_v44, 7  ;;  %v12934_v58 = vld [vmem:[#allocation6 + $0x20] sm:$0xf]  ;;  %v6065_v10 = vshrl.u32 %v9385_v13, 16  ;;  %v6083_v52 = vrot.slane %v6081_v36, 1  ;;  %v6102_v32 = vshll.u32 %v9390_v46, 16 }
 0x3ff   : > { %v12936_v51 = vld [vmem:[#allocation6 + $0x24] sm:$0x1]  ;;  %v6069_v37 = vrot.slane %v6067_v34, 1  ;;  %v6100_v50 = vshrl.u32 %v9390_v46, 16  ;;  %v10838_v13 = vld [vmem:[%s13575_s5 + $0x120] sm:$0xff]   ;;  %v10842_v44 = vld [vmem:[%s13575_s5 + $0x178] sm:$0xff]  }
 0x400   : > { %v9388_v56 = vcombine.low %v12934_v58, %v12936_v51  ;;  %v5905_v27 = vor.u32 %v5903_v38, %v5902_v47  ;;  %v5906_v18 = vrot.slane %v5902_v47, 4  ;;  %v6084_v31 = vor.u32 %v6083_v52, %v6079_v49  ;;  %7078 = vmatpush1.bf16.msra.mxu0 %v10833_v12  ;;  %v10849_v36 = vld [vmem:[%s13575_s5 + $0x168] sm:$0xff]   ;;  %v10852_v46 = vld [vmem:[%s13575_s5 + $0x160] sm:$0xff]   ;;  %v6011_v47 = vld [vmem:[#allocation6 + $0x10] sm:$0xe] }
 0x401   : > { %v6070_v39 = vor.u32 %v6069_v37, %v6065_v10  ;;  %6117 = vrot.lane.b32.xlu0 %v6077_v26, %s10991_s20  ;;  %v6104_v24 = vrot.slane %v6102_v32, 1  ;;  %7079 = vmatprep.subr.bf16.mxu0 %v12532_v62  ;;  %v6009_v54 = vld [vmem:[#allocation6] sm:$0xe]  ;;  %v6010_v38 = vld [vmem:[#allocation6 + $0x8] sm:$0xe]  ;;  %v9394_v10 = vcombine.low %v6011_v47, %v12866_v33 }
 0x402   : > { %v6088_v42 = vshll.u32 %v9388_v56, 16  ;;  %v5976_v40 = vsel %vm12830_vm9, %v5905_v27, %v5975_v45  ;;  %v5979_v48 = vsel %vm12836_vm10, %v5906_v18, %v5978_v11  ;;  %v6086_v17 = vshrl.u32 %v9388_v56, 16  ;;  %v6012_v27 = vld [vmem:[#allocation6 + $0x18] sm:$0xe]  ;;  %v6013_v18 = vld [vmem:[#allocation6 + $0x20] sm:$0xe] }
 0x403   : > { %5977 = vst [vmem:[#allocation6 + $0x28] sm:$0xf] %v5976_v40  ;;  %5980 = vst [vmem:[#allocation6 + $0x2c] sm:$0x1] %v5979_v48  ;;  %6115 = vrot.lane.b32.xlu1 %v6070_v39, %s10991_s20  ;;  %v6105_v1 = vor.u32 %v6104_v24, %v6100_v50  ;;  %v9392_v7 = vcombine.low %v6009_v54, %v12874_v16  ;;  %v9393_v56 = vcombine.low %v6010_v38, %v12910_v30  ;;  %v6015_v40 = vld [vmem:[#allocation6 + $0x30] sm:$0xe] }
 0x404   : > { %v6090_v29 = vrot.slane %v6088_v42, 1  ;;  %v12948_v61 = vld [vmem:[#allocation6 + $0x38] sm:$0xf]  ;;  %v12950_v60 = vld [vmem:[#allocation6 + $0x3c] sm:$0x1]  ;;  %7080 = vmatpush1.bf16.msra.mxu0 %v10838_v13  ;;  %v9395_v33 = vcombine.low %v6012_v27, %v12895_v3  ;;  %v10832_v12 = vld [vmem:[%s13575_s5 + $0xf0] sm:$0xff]  }
 0x405   : > { %v9391_v21 = vcombine.low %v12948_v61, %v12950_v60  ;;  %7089 = vmatprep.subr.bf16.mxu0 %v12532_v62  ;;  %v6153_v45 = vrot.slane %v9392_v7, 1  ;;  %v6154_v52 = vrot.slane %v9393_v56, 1  ;;  %v10844_v27 = vld [vmem:[%s13575_s5 + $0xd8] sm:$0xff]  }
 0x406   : > { %v6091_v15 = vor.u32 %v6090_v29, %v6086_v17  ;;  %v6156_v49 = vrot.slane %v9395_v33, 1  ;;  %v10853_v33 = vld [vmem:[%s13575_s5 + $0xc0] sm:$0xff]  }
 0x407   : > { %6119 = vrot.lane.b32.xlu1 %v6084_v31, %s10991_s20  ;;  %v6109_v5 = vshll.u32 %v9391_v21, 16  ;;  %v6107_v9 = vshrl.u32 %v9391_v21, 16  ;;  %v9398_v31 = vcombine.low %v6015_v40, %v12916_v20  ;;  %v10829_v21 = vld [vmem:[%s13575_s5 + $0xf8] sm:$0xff]   ;;  %v10856_v40 = vld [vmem:[%s13575_s5 + $0x108] sm:$0xff]  }
 0x408   : > { %6121 = vrot.lane.b32.xlu0 %v6091_v15, %s10991_s20  ;;  %7090 = vmatpush2.bf16.msra.mxu0 %v10842_v44 }
 0x409   : > { %v6111_v43 = vrot.slane %v6109_v5, 1  ;;  %7091 = vmatprep.subr.bf16.mxu0 %v12532_v62  ;;  %v13027_v5 = vld [vmem:[#allocation5] sm:$0xff] }
 0x40a   : > { %v12959_v6 = vld [vmem:[#allocation6 + $0x28] sm:$0xf]  ;;  %v12961_v28 = vld [vmem:[#allocation6 + $0x2c] sm:$0x1] }
 0x40b   : > { %v9389_v35 = vcombine.low %v12959_v6, %v12961_v28  ;;  %v6112_v34 = vor.u32 %v6111_v43, %v6107_v9 }
 0x40c   : > { %6125 = vrot.lane.b32.xlu0 %v6105_v1, %s10991_s20  ;;  %7092 = vmatpush2.bf16.msra.mxu0 %v10846_v59 }
 0x40d   : > { %v6095_v55 = vshll.u32 %v9389_v35, 16  ;;  %v6093_v41 = vshrl.u32 %v9389_v35, 16  ;;  %7093 = vmatprep.subr.bf16.mxu0 %v12532_v62 }
 0x40f   : > { %v6097_v25 = vrot.slane %v6095_v55, 1 }
 0x410   : > { %7094 = vmatpush2.bf16.msra.mxu0 %v10849_v36 }
 0x411   : > { %v6098_v53 = vor.u32 %v6097_v25, %v6093_v41  ;;  %7095 = vmatprep.subr.bf16.mxu0 %v12532_v62 }
 0x413   : > { %6123 = vrot.lane.b32.xlu1 %v6098_v53, %s10991_s20  ;;  %v6016_v53 = vld [vmem:[#allocation6 + $0x38] sm:$0xe] }
 0x414   : > { %7096 = vmatpush2.bf16.msra.mxu0 %v10852_v46  ;;  %v9399_v36 = vcombine.low %v6016_v53, %v12950_v60  ;;  %v10840_v60 = vld [vmem:[%s13575_s5 + $0xe0] sm:$0xff]  }
 0x415   : > { %8016 = vmatprep.subr.bf16.mxu0 %v12532_v62  ;;  %v6155_v62 = vrot.slane %v9394_v10, 1 }
 0x417   : > { %6127 = vrot.lane.b32.xlu1 %v6112_v34, %s10991_s20 }
 0x46f   : > { %v6114_v11 = vpop.permute.xlu0 %6113 }
 0x470   : > { %v6163_v37 = vsel %vm2909_vm4, %v12872_v0, %v6114_v11  ;;  %v9396_v0 = vcombine.low %v6013_v18, %v12936_v51 }
 0x471   : > { %v9400_v26 = vcombine.low %v6163_v37, %v6153_v45  ;;  %v6160_v45 = vrot.slane %v9399_v36, 1 }
 0x472   : > { %v6157_v17 = vrot.slane %v9396_v0, 1  ;;  %v10854_v0 = vld [vmem:[%s13575_s5 + $0x118] sm:$0xff]  }
 0x473   : > { %6241 = vst.msk [vmem:[#allocation7 + $0x10] sm:$0xff] %vm12544_vm0, %v9400_v26  ;;  %v6118_v39 = vpop.permute.xlu0 %6117 }
 0x474   : > { %v6169_v16 = vsel %vm2909_vm4, %v12859_v4, %v6118_v39 }
 0x475   : > { %v6116_v42 = vpop.permute.xlu1 %6115  ;;  %v9402_v32 = vcombine.low %v6169_v16, %v6155_v62  ;;  %v10848_v62 = vld [vmem:[%s13575_s5 + $0xd0] sm:$0xff]  }
 0x476   : > { %v6166_v30 = vsel %vm2909_vm4, %v12908_v19, %v6116_v42 }
 0x477   : > { %v9401_v48 = vcombine.low %v6166_v30, %v6154_v52  ;;  %6243 = vst.msk [vmem:[#allocation7 + $0x20] sm:$0xff] %vm12544_vm0, %v9402_v32  ;;  %v10851_v32 = vld [vmem:[%s13575_s5 + $0xc8] sm:$0xff]   ;;  %v10855_v30 = vld [vmem:[%s13575_s5 + $0x110] sm:$0xff]  }
 0x479   : > { %6242 = vst.msk [vmem:[#allocation7 + $0x18] sm:$0xff] %vm12544_vm0, %v9401_v48  ;;  %v6120_v4 = vpop.permute.xlu1 %6119  ;;  %v10857_v48 = vld [vmem:[%s13575_s5 + $0x100] sm:$0xff]  }
 0x47a   : > { %v6122_v29 = vpop.permute.xlu0 %6121  ;;  %v6172_v3 = vsel %vm2909_vm4, %v12893_v57, %v6120_v4  ;;  %v6283_v51 = vld [vmem:[#allocation7 + $0x10] sm:$0xff]  ;;  %v6159_v57 = vrot.slane %v9398_v31, 1  ;;  %v10861_v31 = vld [vmem:[%s13575_s5 + $0x1b0] sm:$0xff]  }
 0x47b   : > { %v6175_v19 = vsel %vm2909_vm4, %v12934_v58, %v6122_v29  ;;  %v9403_v15 = vcombine.low %v6172_v3, %v6156_v49  ;;  %v9432_v50 = vcombine.low %v12645_v22, %v6283_v51  ;;  %v9433_v1 = vcombine.high %v12645_v22, %v6283_v51  ;;  %v6014_v58 = vld [vmem:[#allocation6 + $0x28] sm:$0xe]  ;;  %v13115_v4 = vld [vmem:[#allocation7 + $0x50] sm:$0xff] }
 0x47c   : > { %v9404_v24 = vcombine.low %v6175_v19, %v6157_v17  ;;  %v9397_v41 = vcombine.low %v6014_v58, %v12961_v28  ;;  %v10836_v28 = vld [vmem:[%s13575_s5 + $0xe8] sm:$0xff]   ;;  %v10859_v29 = vld [vmem:[%s13575_s5 + $0x1b8] sm:$0xff]   ;;  %v10869_v58 = vld [vmem:[%s13575_s5 + $0x180] sm:$0xff]  }
 0x47d   : > { %6244 = vst.msk [vmem:[#allocation7 + $0x28] sm:$0xff] %vm12544_vm0, %v9403_v15  ;;  %9452 = vmatprep.mubr.msk.bf16.mxu1 %vm2909_vm4, %v9433_v1  ;;  %v10862_v19 = vld [vmem:[%s13575_s5 + $0x1a8] sm:$0xff]   ;;  %v10865_v15 = vld [vmem:[%s13575_s5 + $0x198] sm:$0xff]   ;;  %v10866_v1 = vld [vmem:[%s13575_s5 + $0x190] sm:$0xff]  }
 0x47e   : > { %6245 = vst.msk [vmem:[#allocation7 + $0x30] sm:$0xff] %vm12544_vm0, %v9404_v24  ;;  %v6126_v20 = vpop.permute.xlu0 %6125  ;;  %6468 = vmatmul.mubr.bf16.vlgmr.msra.gmra.mxu1 %v9432_v50  ;;  %v6285_v22 = vld [vmem:[#allocation7 + $0x20] sm:$0xff]  ;;  %v6158_v34 = vrot.slane %v9397_v41, 1 }
 0x47f   : > { %v6181_v23 = vsel %vm2909_vm4, %v12914_v8, %v6126_v20  ;;  %6839 = vmatpush1.bf16.msra.mxu1 %v10829_v21 }
 0x480   : > { %v9406_v35 = vcombine.low %v6181_v23, %v6159_v57  ;;  %v6284_v55 = vld [vmem:[#allocation7 + $0x18] sm:$0xff]  ;;  %6840 = vmatprep.subr.bf16.mxu1 %v13027_v5  ;;  %v10868_v57 = vld [vmem:[%s13575_s5 + $0x188] sm:$0xff]   ;;  %v10870_v23 = vld [vmem:[%s13575_s5 + $0x1d8] sm:$0xff]  }
 0x481   : > { %v9435_v25 = vcombine.high %v6284_v55, %v6285_v22  ;;  %v9459_v8 = vcombine.high %v6283_v51, %v6284_v55  ;;  %v13036_v13 = vcombine.low %v6283_v51, %v6284_v55  ;;  %v9434_v9 = vcombine.low %v6284_v55, %v6285_v22  ;;  %v10863_v51 = vld [vmem:[%s13575_s5 + $0x1a0] sm:$0xff]  }
 0x482   : > { %6247 = vst.msk [vmem:[#allocation7 + $0x40] sm:$0xff] %vm12544_vm0, %v9406_v35  ;;  %v13056_v38 = vpop.f32.mrf.mxu0  ;;  %v10872_v35 = vld [vmem:[%s13575_s5 + $0x1c8] sm:$0xff]   ;;  %v10873_v55 = vld [vmem:[%s13575_s5 + $0x1c0] sm:$0xff]  }
 0x483   : > { %9453 = vmatprep.mubr.msk.bf16.mxu1 %vm2909_vm4, %v9435_v25  ;;  %9477 = vmatprep.mubr.msk.bf16.mxu0 %vm2909_vm4, %v9459_v8 }
 0x484   : > { %6661 = vmatmul.mubr.bf16.gmra.mxu0 %v13036_v13  ;;  %6841 = vmatpush1.bf16.msra.mxu1 %v10832_v12  ;;  %v6254_v43 = vld [vmem:[#allocation7 + $0x28] sm:$0xff]  ;;  %v6656_v37 = vpop.f32.mrf.mxu0  ;;  %v7146_v12 = vld [vmem:[#allocation7 + $0x58] sm:$0xff] }
 0x485   : > { %v6287_v44 = vld [vmem:[#allocation7 + $0x30] sm:$0xff]  ;;  %v6124_v59 = vpop.permute.xlu1 %6123  ;;  %v13045_v46 = vcombine.high %v6285_v22, %v6254_v43  ;;  %6842 = vmatprep.subr.bf16.mxu1 %v13027_v5  ;;  %v13063_v10 = vcombine.low %v6285_v22, %v6254_v43  ;;  %v10871_v22 = vld [vmem:[%s13575_s5 + $0x1d0] sm:$0xff]   ;;  %v9607_v41 = vcombine.high %v13115_v4, %v7146_v12 }
 0x486   : > { %v9437_v54 = vcombine.high %v6254_v43, %v6287_v44  ;;  %v6178_v7 = vsel %vm2909_vm4, %v12959_v6, %v6124_v59  ;;  %6476 = vmatmul.mubr.bf16.gmra.mxu1 %v9434_v9  ;;  %v9436_v56 = vcombine.low %v6254_v43, %v6287_v44  ;;  %v13149_v50 = vpop.f32.mrf.mxu0 }
 0x487   : > { %v9405_v47 = vcombine.low %v6178_v7, %v6158_v34  ;;  %9478 = vmatprep.mubr.msk.bf16.mxu0 %vm2909_vm4, %v13045_v46 }
 0x488   : > { %9454 = vmatprep.mubr.msk.bf16.mxu1 %vm2909_vm4, %v9437_v54  ;;  %6843 = vmatpush1.bf16.msra.mxu1 %v10836_v28  ;;  %v6659_v21 = vpop.f32.mrf.mxu0 }
 0x489   : > { %6246 = vst.msk [vmem:[#allocation7 + $0x38] sm:$0xff] %vm12544_vm0, %v9405_v47  ;;  %v6128_v11 = vpop.permute.xlu1 %6127  ;;  %6844 = vmatprep.subr.bf16.mxu1 %v13027_v5  ;;  %v13072_v18 = vld [vmem:[#allocation7 + $0x40] sm:$0xff]  ;;  %v10891_v21 = vld [vmem:[%s13577_s7 + $0x80] sm:$0xff]  }
 0x48a   : > { %v6184_v6 = vsel %vm2909_vm4, %v12948_v61, %v6128_v11 }
 0x48b   : > { %v9407_v26 = vcombine.low %v6184_v6, %v6160_v45 }
 0x48c   : > { %6669 = vmatmul.mubr.bf16.gmra.mxu0 %v13063_v10  ;;  %6845 = vmatpush1.bf16.msra.mxu1 %v10840_v60 }
 0x48d   : > { %6248 = vst.msk [vmem:[#allocation7 + $0x48] sm:$0xff] %vm12544_vm0, %v9407_v26  ;;  %6846 = vmatprep.subr.bf16.mxu1 %v13027_v5 }
 0x48e   : > { %6484 = vmatmul.mubr.bf16.gmra.mxu1 %v9436_v56 }
 0x490   : > { %v6256_v61 = vld [vmem:[#allocation7 + $0x38] sm:$0xff]  ;;  %6847 = vmatpush1.bf16.msra.mxu1 %v10844_v27 }
 0x491   : > { %v13077_v39 = vcombine.high %v6287_v44, %v6256_v61  ;;  %v9439_v16 = vcombine.high %v6256_v61, %v13072_v18  ;;  %6848 = vmatprep.subr.bf16.mxu1 %v13027_v5  ;;  %v13081_v52 = vcombine.low %v6287_v44, %v6256_v61  ;;  %v9438_v42 = vcombine.low %v6256_v61, %v13072_v18 }
 0x493   : > { %9479 = vmatprep.mubr.msk.bf16.mxu0 %vm2909_vm4, %v13077_v39  ;;  %9455 = vmatprep.mubr.msk.bf16.mxu1 %vm2909_vm4, %v9439_v16 }
 0x494   : > { %6677 = vmatmul.mubr.bf16.gmra.mxu0 %v13081_v52  ;;  %6849 = vmatpush1.bf16.msra.mxu1 %v10848_v62  ;;  %v6918_v49 = vld [vmem:[#allocation7 + $0x48] sm:$0xff] }
 0x495   : > { %9572 = vmatprep.mubr.msk.bf16.mxu0 %vm2909_vm4, %v9435_v25  ;;  %6850 = vmatprep.subr.bf16.mxu1 %v13027_v5  ;;  %v9559_v17 = vcombine.high %v6918_v49, %v13115_v4  ;;  %v9558_v3 = vcombine.low %v6918_v49, %v13115_v4  ;;  %v9511_v24 = vcombine.high %v13072_v18, %v6918_v49 }
 0x496   : > { %6492 = vmatmul.mubr.bf16.gmra.mxu1 %v9438_v42  ;;  %v9510_v20 = vcombine.low %v13072_v18, %v6918_v49  ;;  %v9606_v25 = vcombine.low %v13115_v4, %v7146_v12  ;;  %v10885_v49 = vld [vmem:[%s13577_s7 + $0x98] sm:$0xff]   ;;  %v10894_v12 = vld [vmem:[%s13577_s7 + $0x10] sm:$0xff]  }
 0x497   : > { %9524 = vmatprep.mubr.msk.bf16.mxu1 %vm2909_vm4, %v9459_v8 }
 0x498   : > { %6851 = vmatpush1.bf16.msra.mxu1 %v10851_v32 }
 0x499   : > { %6852 = vmatprep.subr.bf16.mxu1 %v13027_v5 }
 0x49c   : > { %6853 = vmatpush1.bf16.msra.mxu1 %v10853_v33  ;;  %7098 = vmatmul.mubr.bf16.vlgmr.msra.gmra.mxu0 %v9434_v9 }
 0x49d   : > { %9573 = vmatprep.mubr.msk.bf16.mxu0 %vm2909_vm4, %v9437_v54  ;;  %6862 = vmatprep.subr.bf16.mxu1 %v13027_v5 }
 0x49e   : > { %8017 = vmatpush1.bf16.msra.mxu0 %v10885_v49 }
 0x49f   : > { %8018 = vmatprep.subr.bf16.mxu0 %v13027_v5 }
 0x4a0   : > { %6863 = vmatpush2.bf16.msra.mxu1 %v10854_v0 }
 0x4a1   : > { %6864 = vmatprep.subr.bf16.mxu1 %v13027_v5 }
 0x4a4   : > { %6865 = vmatpush2.bf16.msra.mxu1 %v10855_v30  ;;  %7106 = vmatmul.mubr.bf16.gmra.mxu0 %v9436_v56 }
 0x4a5   : > { %9574 = vmatprep.mubr.msk.bf16.mxu0 %vm2909_vm4, %v9439_v16  ;;  %6866 = vmatprep.subr.bf16.mxu1 %v13027_v5 }
 0x4a8   : > { %6867 = vmatpush2.bf16.msra.mxu1 %v10856_v40 }
 0x4a9   : > { %6868 = vmatprep.subr.bf16.mxu1 %v13027_v5 }
 0x4ac   : > { %6869 = vmatpush2.bf16.msra.mxu1 %v10857_v48  ;;  %7114 = vmatmul.mubr.bf16.gmra.mxu0 %v9438_v42  ;;  %v10884_v48 = vld [vmem:[%s13577_s7 + $0x38] sm:$0xff]  }
 0x4ad   : > { %9575 = vmatprep.mubr.msk.bf16.mxu0 %vm2909_vm4, %v9559_v17  ;;  %7292 = vmatprep.subr.bf16.mxu1 %v13027_v5  ;;  %v10886_v17 = vld [vmem:[%s13577_s7 + $0x30] sm:$0xff]  }
 0x4af   : > { %6871 = vmatmul.mubr.bf16.vlgmr.msra.gmra.mxu1 %v13036_v13 }
 0x4b0   : > { %9525 = vmatprep.mubr.msk.bf16.mxu1 %vm2909_vm4, %v13045_v46  ;;  %7293 = vmatpush1.bf16.msra.mxu1 %v10859_v29  ;;  %v10887_v29 = vld [vmem:[%s13577_s7 + $0x90] sm:$0xff]  }
 0x4b1   : > { %7294 = vmatprep.subr.bf16.mxu1 %v13027_v5  ;;  %8019 = vmatpush1.bf16.msra.mxu0 %v10887_v29 }
 0x4b2   : > { %8020 = vmatprep.subr.bf16.mxu0 %v13027_v5 }
 0x4b4   : > { %7122 = vmatmul.mubr.bf16.gmra.mxu0 %v9558_v3  ;;  %7295 = vmatpush1.bf16.msra.mxu1 %v10861_v31 }
 0x4b5   : > { %7296 = vmatprep.subr.bf16.mxu1 %v13027_v5 }
 0x4b7   : > { %6879 = vmatmul.mubr.bf16.gmra.mxu1 %v13063_v10 }
 0x4b8   : > { %9526 = vmatprep.mubr.msk.bf16.mxu1 %vm2909_vm4, %v13077_v39  ;;  %7297 = vmatpush1.bf16.msra.mxu1 %v10862_v19  ;;  %v10888_v19 = vld [vmem:[%s13577_s7 + $0x28] sm:$0xff]  }
 0x4b9   : > { %7298 = vmatprep.subr.bf16.mxu1 %v13027_v5 }
 0x4bc   : > { %7299 = vmatpush1.bf16.msra.mxu1 %v10863_v51  ;;  %v10889_v51 = vld [vmem:[%s13577_s7 + $0x88] sm:$0xff]  }
 0x4bd   : > { %7300 = vmatprep.subr.bf16.mxu1 %v13027_v5  ;;  %8021 = vmatpush1.bf16.msra.mxu0 %v10889_v51 }
 0x4be   : > { %8022 = vmatprep.subr.bf16.mxu0 %v13027_v5 }
 0x4bf   : > { %6887 = vmatmul.mubr.bf16.gmra.mxu1 %v13081_v52 }
 0x4c0   : > { %9527 = vmatprep.mubr.msk.bf16.mxu1 %vm2909_vm4, %v9511_v24  ;;  %7301 = vmatpush1.bf16.msra.mxu1 %v10865_v15 }
 0x4c1   : > { %7302 = vmatprep.subr.bf16.mxu1 %v13027_v5  ;;  %8023 = vmatpush1.bf16.msra.mxu0 %v10891_v21 }
 0x4c2   : > { %8024 = vmatprep.subr.bf16.mxu0 %v13027_v5 }
 0x4c4   : > { %7303 = vmatpush1.bf16.msra.mxu1 %v10866_v1  ;;  %v10890_v1 = vld [vmem:[%s13577_s7 + $0x20] sm:$0xff]  }
 0x4c5   : > { %7304 = vmatprep.subr.bf16.mxu1 %v13027_v5 }
 0x4c7   : > { %6895 = vmatmul.mubr.bf16.gmra.mxu1 %v9510_v20 }
 0x4c8   : > { %7305 = vmatpush1.bf16.msra.mxu1 %v10868_v57  ;;  %9620 = vmatprep.mubr.msk.bf16.mxu1 %vm2909_vm4, %v13045_v46 }
 0x4c9   : > { %7306 = vmatprep.subr.bf16.mxu1 %v13027_v5 }
 0x4cc   : > { %7307 = vmatpush1.bf16.msra.mxu1 %v10869_v58  ;;  %v10892_v58 = vld [vmem:[%s13577_s7 + $0x18] sm:$0xff]  }
 0x4cd   : > { %7316 = vmatprep.subr.bf16.mxu1 %v13027_v5 }
 0x4d0   : > { %7317 = vmatpush2.bf16.msra.mxu1 %v10870_v23  ;;  %v10893_v23 = vld [vmem:[%s13577_s7 + $0x78] sm:$0xff]  }
 0x4d1   : > { %7318 = vmatprep.subr.bf16.mxu1 %v13027_v5  ;;  %8025 = vmatpush1.bf16.msra.mxu0 %v10893_v23 }
 0x4d2   : > { %8026 = vmatprep.subr.bf16.mxu0 %v13027_v5 }
 0x4d4   : > { %7319 = vmatpush2.bf16.msra.mxu1 %v10871_v22 }
 0x4d5   : > { %7320 = vmatprep.subr.bf16.mxu1 %v13027_v5 }
 0x4d8   : > { %7321 = vmatpush2.bf16.msra.mxu1 %v10872_v35 }
 0x4d9   : > { %7322 = vmatprep.subr.bf16.mxu1 %v13027_v5 }
 0x4dc   : > { %7323 = vmatpush2.bf16.msra.mxu1 %v10873_v55 }
 0x4dd   : > { %8201 = vmatprep.subr.bf16.mxu1 %v13027_v5 }
 0x4df   : > { %7325 = vmatmul.mubr.bf16.vlgmr.msra.gmra.mxu1 %v13063_v10 }
 0x4e0   : > { %9621 = vmatprep.mubr.msk.bf16.mxu1 %vm2909_vm4, %v13077_v39  ;;  %8202 = vmatpush1.bf16.msra.mxu1 %v10884_v48 }
 0x4e1   : > { %8203 = vmatprep.subr.bf16.mxu1 %v13027_v5 }
 0x4e4   : > { %8204 = vmatpush1.bf16.msra.mxu1 %v10886_v17 }
 0x4e5   : > { %8205 = vmatprep.subr.bf16.mxu1 %v13027_v5 }
 0x4e7   : > { %7333 = vmatmul.mubr.bf16.gmra.mxu1 %v13081_v52 }
 0x4e8   : > { %9622 = vmatprep.mubr.msk.bf16.mxu1 %vm2909_vm4, %v9511_v24  ;;  %8206 = vmatpush1.bf16.msra.mxu1 %v10888_v19 }
 0x4e9   : > { %8207 = vmatprep.subr.bf16.mxu1 %v13027_v5 }
 0x4ec   : > { %8208 = vmatpush1.bf16.msra.mxu1 %v10890_v1 }
 0x4ed   : > { %8209 = vmatprep.subr.bf16.mxu1 %v13027_v5 }
 0x4ef   : > { %7341 = vmatmul.mubr.bf16.gmra.mxu1 %v9510_v20 }
 0x4f0   : > { %9623 = vmatprep.mubr.msk.bf16.mxu1 %vm2909_vm4, %v9607_v41  ;;  %8210 = vmatpush1.bf16.msra.mxu1 %v10892_v58  ;;  %v10895_v41 = vld [vmem:[%s13577_s7 + $0x70] sm:$0xff]  }
 0x4f1   : > { %8211 = vmatprep.subr.bf16.mxu1 %v13027_v5  ;;  %8027 = vmatpush1.bf16.msra.mxu0 %v10895_v41 }
 0x4f2   : > { %8028 = vmatprep.subr.bf16.mxu0 %v13027_v5 }
 0x4f4   : > { %8212 = vmatpush1.bf16.msra.mxu1 %v10894_v12 }
 0x4f5   : > { %8213 = vmatprep.subr.bf16.mxu1 %v13027_v5 }
 0x4f7   : > { %7349 = vmatmul.mubr.bf16.gmra.mxu1 %v9606_v25 }
 0x53e   : > { %v13192_v8 = vpop.f32.mrf.mxu1 }
 0x53f   : > { %v6655_v35 = vadd.f32 %v13056_v38, %v13192_v8 }
 0x540   : > { %v6471_v13 = vpop.f32.mrf.mxu1 }
 0x542   : > { %v13194_v53 = vpop.f32.mrf.mxu1 }
 0x543   : > { %v6658_v38 = vadd.f32 %v13149_v50, %v13194_v53 }
 0x544   : > { %v6662_v43 = vpop.f32.mrf.mxu0  ;;  %v6474_v9 = vpop.f32.mrf.mxu1 }
 0x546   : > { %v6664_v28 = vpop.f32.mrf.mxu0  ;;  %v6477_v44 = vpop.f32.mrf.mxu1 }
 0x547   : > { %v13196_v34 = vadd.f32 %v6662_v43, %v6477_v44  ;;  %v10896_v44 = vld [vmem:[%s13577_s7 + $0x8] sm:$0xff]  }
 0x548   : > { %v6665_v59 = vpop.f32.mrf.mxu0  ;;  %v6479_v36 = vpop.f32.mrf.mxu1  ;;  %8214 = vmatpush1.bf16.msra.mxu1 %v10896_v44 }
 0x549   : > { %8215 = vmatprep.subr.bf16.mxu1 %v13027_v5 }
 0x54a   : > { %v6667_v46 = vpop.f32.mrf.mxu0  ;;  %v6480_v54 = vpop.f32.mrf.mxu1 }
 0x54b   : > { %v13198_v7 = vadd.f32 %v6665_v59, %v6480_v54  ;;  %v10897_v59 = vld [vmem:[%s13577_s7 + $0x68] sm:$0xff]  }
 0x54c   : > { %v6670_v47 = vpop.f32.mrf.mxu0  ;;  %v6482_v60 = vpop.f32.mrf.mxu1  ;;  %8029 = vmatpush1.bf16.msra.mxu0 %v10897_v59  ;;  %v7535_v59 = vld [vmem:[#allocation8 + $0x4] sm:$0x1] }
 0x54d   : > { %v10898_v60 = vld [vmem:[%s13577_s7] sm:$0xff]   ;;  %8030 = vmatprep.subr.bf16.mxu0 %v13027_v5 }
 0x54e   : > { %v6672_v45 = vpop.f32.mrf.mxu0  ;;  %v6485_v11 = vpop.f32.mrf.mxu1  ;;  %8216 = vmatpush1.bf16.msra.mxu1 %v10898_v60 }
 0x54f   : > { %v13200_v6 = vadd.f32 %v6670_v47, %v6485_v11  ;;  %v10899_v45 = vld [vmem:[%s13577_s7 + $0x60] sm:$0xff]   ;;  %8225 = vmatprep.subr.bf16.mxu1 %v13027_v5 }
 0x550   : > { %v6673_v10 = vpop.f32.mrf.mxu0  ;;  %v6487_v37 = vpop.f32.mrf.mxu1  ;;  %8031 = vmatpush1.bf16.msra.mxu0 %v10899_v45 }
 0x551   : > { %8040 = vmatprep.subr.bf16.mxu0 %v13027_v5 }
 0x552   : > { %v6675_v26 = vpop.f32.mrf.mxu0  ;;  %v6488_v56 = vpop.f32.mrf.mxu1 }
 0x553   : > { %v13202_v27 = vadd.f32 %v6673_v10, %v6488_v56 }
 0x554   : > { %v6678_v18 = vpop.f32.mrf.mxu0  ;;  %v6490_v61 = vpop.f32.mrf.mxu1 }
 0x555   : > { %v10900_v61 = vld [vmem:[%s13577_s7 + $0x58] sm:$0xff]  }
 0x556   : > { %v6680_v62 = vpop.f32.mrf.mxu0  ;;  %v6493_v39 = vpop.f32.mrf.mxu1  ;;  %8226 = vmatpush2.bf16.msra.mxu1 %v10900_v61 }
 0x557   : > { %v13204_v16 = vadd.f32 %v6678_v18, %v6493_v39  ;;  %8227 = vmatprep.subr.bf16.mxu1 %v13027_v5 }
 0x558   : > { %v6681_v52 = vpop.f32.mrf.mxu0  ;;  %v6495_v42 = vpop.f32.mrf.mxu1 }
 0x55a   : > { %v6683_v32 = vpop.f32.mrf.mxu0  ;;  %v6496_v33 = vpop.f32.mrf.mxu1 }
 0x55b   : > { %v13206_v0 = vadd.f32 %v6681_v52, %v6496_v33 }
 0x55c   : > { %v7099_v30 = vpop.f32.mrf.mxu0  ;;  %v6498_v40 = vpop.f32.mrf.mxu1 }
 0x55e   : > { %v7101_v4 = vpop.f32.mrf.mxu0 }
 0x560   : > { %v7102_v31 = vpop.f32.mrf.mxu0 }
 0x562   : > { %v7104_v3 = vpop.f32.mrf.mxu0 }
 0x564   : > { %v7107_v15 = vpop.f32.mrf.mxu0 }
 0x566   : > { %v7109_v24 = vpop.f32.mrf.mxu0 }
 0x568   : > { %v7110_v57 = vpop.f32.mrf.mxu0 }
 0x56a   : > { %v7112_v20 = vpop.f32.mrf.mxu0 }
 0x56c   : > { %v7115_v22 = vpop.f32.mrf.mxu0 }
 0x56e   : > { %v7117_v55 = vpop.f32.mrf.mxu0 }
 0x56f   : > { %v6872_v25 = vpop.f32.mrf.mxu1 }
 0x570   : > { %v6903_v13 = vadd.f32 %v6872_v25, %v6655_v35  ;;  %v7118_v43 = vpop.f32.mrf.mxu0 }
 0x571   : > { %v6874_v9 = vpop.f32.mrf.mxu1 }
 0x572   : > { %v7120_v8 = vpop.f32.mrf.mxu0  ;;  %v7130_v28 = vadd.f32 %v7099_v30, %v6903_v13 }
 0x573   : > { %v6875_v36 = vpop.f32.mrf.mxu1  ;;  %v7532_v8 = vld [vmem:[#allocation8] sm:$0xf] }
 0x574   : > { %v6904_v46 = vadd.f32 %v6875_v36, %v6658_v38  ;;  %v7123_v54 = vpop.f32.mrf.mxu0 }
 0x575   : > { %v6877_v50 = vpop.f32.mrf.mxu1 }
 0x576   : > { %v7125_v53 = vpop.f32.mrf.mxu0  ;;  %v7131_v47 = vadd.f32 %v7102_v31, %v6904_v46 }
 0x577   : > { %v6880_v11 = vpop.f32.mrf.mxu1 }
 0x578   : > { %v6905_v10 = vadd.f32 %v6880_v11, %v13196_v34  ;;  %v7126_v37 = vpop.f32.mrf.mxu0 }
 0x579   : > { %v6882_v26 = vpop.f32.mrf.mxu1 }
 0x57a   : > { %v7128_v56 = vpop.f32.mrf.mxu0  ;;  %v7132_v18 = vadd.f32 %v7107_v15, %v6905_v10 }
 0x57b   : > { %v6883_v62 = vpop.f32.mrf.mxu1  ;;  %v7538_v56 = vld [vmem:[#allocation8 + $0x8] sm:$0xf] }
 0x57c   : > { %v6906_v39 = vadd.f32 %v6883_v62, %v13198_v7  ;;  %v7541_v62 = vld [vmem:[#allocation8 + $0xc] sm:$0x1] }
 0x57d   : > { %v6885_v52 = vpop.f32.mrf.mxu1 }
 0x57e   : > { %v7133_v42 = vadd.f32 %v7110_v57, %v6906_v39 }
 0x57f   : > { %v6888_v34 = vpop.f32.mrf.mxu1 }
 0x580   : > { %v6907_v32 = vadd.f32 %v6888_v34, %v13200_v6 }
 0x581   : > { %v6890_v33 = vpop.f32.mrf.mxu1 }
 0x582   : > { %v7134_v30 = vadd.f32 %v7115_v22, %v6907_v32 }
 0x583   : > { %v6891_v40 = vpop.f32.mrf.mxu1 }
 0x584   : > { %v6908_v48 = vadd.f32 %v6891_v40, %v13202_v27  ;;  %v13295_v27 = vld [vmem:[%s13576_s6] ss:$0 sm:$0xff] }
 0x585   : > { %v6893_v49 = vpop.f32.mrf.mxu1 }
 0x586   : > { %v13284_v4 = vadd.f32 %v7118_v43, %v6908_v48 }
 0x587   : > { %v6896_v17 = vpop.f32.mrf.mxu1 }
 0x588   : > { %v6909_v29 = vadd.f32 %v6896_v17, %v13204_v16 }
 0x589   : > { %v6898_v7 = vpop.f32.mrf.mxu1 }
 0x58a   : > { %v13287_v31 = vadd.f32 %v7123_v54, %v6909_v29 }
 0x58b   : > { %v6899_v3 = vpop.f32.mrf.mxu1 }
 0x58c   : > { %v6910_v19 = vadd.f32 %v6899_v3, %v13206_v0  ;;  %v7544_v3 = vld [vmem:[#allocation8 + $0x10] sm:$0xf] }
 0x58d   : > { %v6901_v51 = vpop.f32.mrf.mxu1 }
 0x58e   : > { %v13290_v15 = vadd.f32 %v7126_v37, %v6910_v19 }
 0x59f   : > { %v7326_v6 = vpop.f32.mrf.mxu1 }
 0x5a0   : > { %v7357_v24 = vadd.f32 %v7326_v6, %v7130_v28 }
 0x5a1   : > { %v7328_v1 = vpop.f32.mrf.mxu1 }
 0x5a2   : > { %v7372_v21 = vadd.f32 %v13295_v27, %v7357_v24 }
 0x5a3   : > { %v7329_v16 = vpop.f32.mrf.mxu1 }
 0x5a4   : > { %vm7380_vm14 = vcmp.ge.f32.partialorder %v7372_v21, 0.0  ;;  %v7388_v57 = vmul.f32 0.01, %v7372_v21  ;;  %v7358_v20 = vadd.f32 %v7329_v16, %v7131_v47 }
 0x5a5   : > { %v7331_v58 = vpop.f32.mrf.mxu1 }
 0x5a6   : > { %v7396_v23 = vsel %vm7380_vm14, %v7372_v21, %v7388_v57  ;;  %v7373_v0 = vadd.f32 %v13295_v27, %v7358_v20  ;;  %v7550_v58 = vld [vmem:[#allocation8 + $0x18] sm:$0xf] }
 0x5a7   : > { %v9814_v22 = vpack.c.bf16 %v7396_v23, %v7396_v23  ;;  %v7334_v35 = vpop.f32.mrf.mxu1 }
 0x5a8   : > { %vm7381_vm15 = vcmp.ge.f32.partialorder %v7373_v0, 0.0  ;;  %v7389_v55 = vmul.f32 0.01, %v7373_v0  ;;  %v7359_v12 = vadd.f32 %v7334_v35, %v7132_v18  ;;  %v10903_v35 = vld [vmem:[%s13577_s7 + $0x50] sm:$0xff]  }
 0x5a9   : > { %v7453_v41 = vshrl.u32 %v9814_v22, 16  ;;  %v7336_v25 = vpop.f32.mrf.mxu1  ;;  %v7456_v38 = vshll.u32 %v9814_v22, 16  ;;  %v10902_v22 = vld [vmem:[%s13577_s7 + $0xb8] sm:$0xff]   ;;  %8228 = vmatpush2.bf16.msra.mxu1 %v10903_v35 }
 0x5aa   : > { %v7397_v13 = vsel %vm7381_vm15, %v7373_v0, %v7389_v55  ;;  %v7374_v43 = vadd.f32 %v13295_v27, %v7359_v12  ;;  %8041 = vmatpush2.bf16.msra.mxu0 %v10902_v22  ;;  %8229 = vmatprep.subr.bf16.mxu1 %v13027_v5  ;;  %v10907_v22 = vld [vmem:[%s13577_s7 + $0x40] sm:$0xff]  }
 0x5ab   : > { %v7455_v9 = vrot.slane %v7453_v41, 7  ;;  %v9815_v28 = vpack.c.bf16 %v7397_v13, %v7397_v13  ;;  %v7337_v44 = vpop.f32.mrf.mxu1  ;;  %8042 = vmatprep.subr.bf16.mxu0 %v13027_v5 }
 0x5ac   : > { %vm7382_vm2 = vcmp.ge.f32.partialorder %v7374_v43, 0.0  ;;  %v7390_v36 = vmul.f32 0.01, %v7374_v43  ;;  %v7360_v46 = vadd.f32 %v7337_v44, %v7133_v42 }
 0x5ad   : > { %v7458_v54 = vor.u32 %v7456_v38, %v7455_v9  ;;  %v7459_v50 = vrot.slane %v7455_v9, 4  ;;  %v7461_v53 = vshrl.u32 %v9815_v28, 16  ;;  %v7339_v47 = vpop.f32.mrf.mxu1  ;;  %v7464_v60 = vshll.u32 %v9815_v28, 16  ;;  %v7553_v9 = vld [vmem:[#allocation8 + $0x1c] sm:$0x1] }
 0x5ae   : > { %v7398_v45 = vsel %vm7382_vm2, %v7374_v43, %v7390_v36  ;;  %v7375_v11 = vadd.f32 %v13295_v27, %v7360_v46 }
 0x5af   : > { %v7533_v10 = vsel %vm12830_vm9, %v7458_v54, %v7532_v8  ;;  %v7536_v37 = vsel %vm12836_vm10, %v7459_v50, %v7535_v59  ;;  %v7463_v26 = vrot.slane %v7461_v53, 7  ;;  %v9816_v18 = vpack.c.bf16 %v7398_v45, %v7398_v45  ;;  %v7342_v61 = vpop.f32.mrf.mxu1  ;;  %v7556_v50 = vld [vmem:[#allocation8 + $0x20] sm:$0xf] }
 0x5b0   : > { %7534 = vst [vmem:[#allocation8] sm:$0xf] %v7533_v10  ;;  %7537 = vst [vmem:[#allocation8 + $0x4] sm:$0x1] %v7536_v37  ;;  %vm7383_vm5 = vcmp.ge.f32.partialorder %v7375_v11, 0.0  ;;  %v7361_v52 = vadd.f32 %v7342_v61, %v7134_v30 }
 0x5b1   : > { %v7391_v39 = vmul.f32 0.01, %v7375_v11  ;;  %v7466_v42 = vor.u32 %v7464_v60, %v7463_v26  ;;  %v7467_v34 = vrot.slane %v7463_v26, 4  ;;  %v7469_v32 = vshrl.u32 %v9816_v18, 16  ;;  %v7344_v33 = vpop.f32.mrf.mxu1  ;;  %v7547_v30 = vld [vmem:[#allocation8 + $0x14] sm:$0x1] }
 0x5b2   : > { %v7472_v40 = vshll.u32 %v9816_v18, 16  ;;  %v7376_v49 = vadd.f32 %v13295_v27, %v7361_v52  ;;  %v7559_v61 = vld [vmem:[#allocation8 + $0x24] sm:$0x1] }
 0x5b3   : > { %v7399_v48 = vsel %vm7383_vm5, %v7375_v11, %v7391_v39  ;;  %v7539_v17 = vsel %vm12830_vm9, %v7466_v42, %v7538_v56  ;;  %v7542_v29 = vsel %vm12836_vm10, %v7467_v34, %v7541_v62  ;;  %v7471_v7 = vrot.slane %v7469_v32, 7  ;;  %v7345_v51 = vpop.f32.mrf.mxu1 }
 0x5b4   : > { %v9817_v19 = vpack.c.bf16 %v7399_v48, %v7399_v48  ;;  %7540 = vst [vmem:[#allocation8 + $0x8] sm:$0xf] %v7539_v17  ;;  %7543 = vst [vmem:[#allocation8 + $0xc] sm:$0x1] %v7542_v29  ;;  %vm7384_vm6 = vcmp.ge.f32.partialorder %v7376_v49, 0.0  ;;  %v7362_v24 = vadd.f32 %v7345_v51, %v13284_v4  ;;  %v10904_v48 = vld [vmem:[%s13577_s7 + $0xb0] sm:$0xff]  }
 0x5b5   : > { %v7392_v6 = vmul.f32 0.01, %v7376_v49  ;;  %v7474_v1 = vor.u32 %v7472_v40, %v7471_v7  ;;  %v7475_v21 = vrot.slane %v7471_v7, 4  ;;  %v7347_v57 = vpop.f32.mrf.mxu1  ;;  %v7562_v17 = vld [vmem:[#allocation8 + $0x28] sm:$0xf]  ;;  %8043 = vmatpush2.bf16.msra.mxu0 %v10904_v48 }
 0x5b6   : > { %v7477_v16 = vshrl.u32 %v9817_v19, 16  ;;  %v7480_v20 = vshll.u32 %v9817_v19, 16  ;;  %v7377_v0 = vadd.f32 %v13295_v27, %v7362_v24  ;;  %v7565_v29 = vld [vmem:[#allocation8 + $0x2c] sm:$0x1]  ;;  %8044 = vmatprep.subr.bf16.mxu0 %v13027_v5  ;;  %v10906_v57 = vld [vmem:[%s13577_s7 + $0xa8] sm:$0xff]  }
 0x5b7   : > { %v7400_v23 = vsel %vm7384_vm6, %v7376_v49, %v7392_v6  ;;  %v7545_v4 = vsel %vm12830_vm9, %v7474_v1, %v7544_v3  ;;  %v7548_v55 = vsel %vm12836_vm10, %v7475_v21, %v7547_v30  ;;  %v7350_v25 = vpop.f32.mrf.mxu1  ;;  %v13322_v13 = vld [vmem:[#allocation8] sm:$0xf]  ;;  %v13324_v43 = vld [vmem:[#allocation8 + $0x4] sm:$0x1] }
 0x5b8   : > { %v7479_v12 = vrot.slane %v7477_v16, 7  ;;  %v9818_v41 = vpack.c.bf16 %v7400_v23, %v7400_v23  ;;  %7546 = vst [vmem:[#allocation8 + $0x10] sm:$0xf] %v7545_v4  ;;  %7549 = vst [vmem:[#allocation8 + $0x14] sm:$0x1] %v7548_v55  ;;  %vm7385_vm7 = vcmp.ge.f32.partialorder %v7377_v0, 0.0  ;;  %v7363_v8 = vadd.f32 %v7350_v25, %v13287_v31 }
 0x5b9   : > { %v7393_v38 = vmul.f32 0.01, %v7377_v0  ;;  %v9633_v28 = vcombine.low %v13322_v13, %v13324_v43  ;;  %v7352_v54 = vpop.f32.mrf.mxu1  ;;  %v10905_v49 = vld [vmem:[%s13577_s7 + $0x48] sm:$0xff]   ;;  %8045 = vmatpush2.bf16.msra.mxu0 %v10906_v57 }
 0x5ba   : > { %v7482_v44 = vor.u32 %v7480_v20, %v7479_v12  ;;  %v7483_v59 = vrot.slane %v7479_v12, 4  ;;  %v7485_v36 = vshrl.u32 %v9818_v41, 16  ;;  %v7488_v46 = vshll.u32 %v9818_v41, 16  ;;  %8230 = vmatpush2.bf16.msra.mxu1 %v10905_v49  ;;  %8046 = vmatprep.subr.bf16.mxu0 %v13027_v5 }
 0x5bb   : > { %v7401_v53 = vsel %vm7385_vm7, %v7377_v0, %v7393_v38  ;;  %v7378_v47 = vadd.f32 %v13295_v27, %v7363_v8  ;;  %v7645_v60 = vshrl.u32 %v9633_v28, 16  ;;  %v7647_v31 = vshll.u32 %v9633_v28, 16  ;;  %v7353_v26 = vpop.f32.mrf.mxu1  ;;  %v13336_v56 = vld [vmem:[#allocation8 + $0x8] sm:$0xf]  ;;  %v13338_v18 = vld [vmem:[#allocation8 + $0xc] sm:$0x1]  ;;  %8231 = vmatprep.subr.bf16.mxu1 %v13027_v5 }
 0x5bc   : > { %v7551_v45 = vsel %vm12830_vm9, %v7482_v44, %v7550_v58  ;;  %v7554_v11 = vsel %vm12836_vm10, %v7483_v59, %v7553_v9  ;;  %v7487_v10 = vrot.slane %v7485_v36, 7  ;;  %v9819_v37 = vpack.c.bf16 %v7401_v53, %v7401_v53  ;;  %v10910_v44 = vld [vmem:[%s13577_s7 + $0xa0] sm:$0xff]   ;;  %v7568_v59 = vld [vmem:[#allocation8 + $0x30] sm:$0xf]  ;;  %v7571_v36 = vld [vmem:[#allocation8 + $0x34] sm:$0x1] }
 0x5bd   : > { %7552 = vst [vmem:[#allocation8 + $0x18] sm:$0xf] %v7551_v45  ;;  %7555 = vst [vmem:[#allocation8 + $0x1c] sm:$0x1] %v7554_v11  ;;  %vm7386_vm8 = vcmp.ge.f32.partialorder %v7378_v47, 0.0  ;;  %v7364_v39 = vadd.f32 %v7353_v26, %v13290_v15  ;;  %v7649_v52 = vrot.slane %v7647_v31, 1  ;;  %v7355_v40 = vpop.f32.mrf.mxu1  ;;  %v9634_v19 = vcombine.low %v13336_v56, %v13338_v18  ;;  %8047 = vmatpush2.bf16.msra.mxu0 %v10910_v44 }
 0x5be   : > { %v7394_v62 = vmul.f32 0.01, %v7378_v47  ;;  %v7490_v42 = vor.u32 %v7488_v46, %v7487_v10  ;;  %v7491_v34 = vrot.slane %v7487_v10, 4  ;;  %v7493_v32 = vshrl.u32 %v9819_v37, 16  ;;  %8232 = vmatpush2.bf16.msra.mxu1 %v10907_v22  ;;  %8420 = vmatprep.subr.bf16.mxu0 %v13027_v5 }
 0x5bf   : > { %v7496_v33 = vshll.u32 %v9819_v37, 16  ;;  %v7379_v3 = vadd.f32 %v13295_v27, %v7364_v39  ;;  %v7650_v15 = vor.u32 %v7649_v52, %v7645_v60  ;;  %v13354_v1 = vld [vmem:[#allocation8 + $0x10] sm:$0xf]  ;;  %v13356_v21 = vld [vmem:[#allocation8 + $0x14] sm:$0x1]  ;;  %v7654_v16 = vshll.u32 %v9634_v19, 16 }
 0x5c0   : > { %v7402_v7 = vsel %vm7386_vm8, %v7378_v47, %v7394_v62  ;;  %v7557_v51 = vsel %vm12830_vm9, %v7490_v42, %v7556_v50  ;;  %v7560_v30 = vsel %vm12836_vm10, %v7491_v34, %v7559_v61  ;;  %v7495_v6 = vrot.slane %v7493_v32, 7  ;;  %v7574_v52 = vld [vmem:[#allocation8 + $0x38] sm:$0xf]  ;;  %v7577_v42 = vld [vmem:[#allocation8 + $0x3c] sm:$0x1] }
 0x5c1   : > { %v9820_v24 = vpack.c.bf16 %v7402_v7, %v7402_v7  ;;  %7558 = vst [vmem:[#allocation8 + $0x20] sm:$0xf] %v7557_v51  ;;  %7561 = vst [vmem:[#allocation8 + $0x24] sm:$0x1] %v7560_v30  ;;  %vm7387_vm11 = vcmp.ge.f32.partialorder %v7379_v3, 0.0  ;;  %7700 = vrot.lane.b32.xlu0 %v7650_v15, %s10991_s20  ;;  %v7652_v0 = vshrl.u32 %v9634_v19, 16  ;;  %v9635_v12 = vcombine.low %v13354_v1, %v13356_v21 }
 0x5c2   : > { %v7395_v27 = vmul.f32 0.01, %v7379_v3  ;;  %v7498_v20 = vor.u32 %v7496_v33, %v7495_v6  ;;  %v7499_v58 = vrot.slane %v7495_v6, 4  ;;  %v7656_v55 = vrot.slane %v7654_v16, 1 }
 0x5c3   : > { %v7501_v23 = vshrl.u32 %v9820_v24, 16  ;;  %v7504_v35 = vshll.u32 %v9820_v24, 16  ;;  %v7661_v54 = vshll.u32 %v9635_v12, 16  ;;  %v7659_v31 = vshrl.u32 %v9635_v12, 16 }
 0x5c4   : > { %v7403_v4 = vsel %vm7387_vm11, %v7379_v3, %v7395_v27  ;;  %v7563_v41 = vsel %vm12830_vm9, %v7498_v20, %v7562_v17  ;;  %v7566_v25 = vsel %vm12836_vm10, %v7499_v58, %v7565_v29  ;;  %v13373_v8 = vld [vmem:[#allocation8 + $0x18] sm:$0xf]  ;;  %v13375_v28 = vld [vmem:[#allocation8 + $0x1c] sm:$0x1]  ;;  %v7657_v46 = vor.u32 %v7656_v55, %v7652_v0 }
 0x5c5   : > { %v7503_v9 = vrot.slane %v7501_v23, 7  ;;  %v9821_v38 = vpack.c.bf16 %v7403_v4, %v7403_v4  ;;  %7564 = vst [vmem:[#allocation8 + $0x28] sm:$0xf] %v7563_v41  ;;  %7567 = vst [vmem:[#allocation8 + $0x2c] sm:$0x1] %v7566_v25  ;;  %v9636_v50 = vcombine.low %v13373_v8, %v13375_v28  ;;  %v7663_v45 = vrot.slane %v7661_v54, 1 }
 0x5c6   : > { %7702 = vrot.lane.b32.xlu1 %v7657_v46, %s10991_s20 }
 0x5c7   : > { %v7506_v53 = vor.u32 %v7504_v35, %v7503_v9  ;;  %v7507_v47 = vrot.slane %v7503_v9, 4  ;;  %v7509_v60 = vshrl.u32 %v9821_v38, 16  ;;  %v7668_v11 = vshll.u32 %v9636_v50, 16 }
 0x5c8   : > { %v7512_v61 = vshll.u32 %v9821_v38, 16  ;;  %v13388_v62 = vld [vmem:[#allocation8 + $0x20] sm:$0xf]  ;;  %v13390_v39 = vld [vmem:[#allocation8 + $0x24] sm:$0x1]  ;;  %v7664_v34 = vor.u32 %v7663_v45, %v7659_v31  ;;  %v7666_v32 = vshrl.u32 %v9636_v50, 16 }
 0x5c9   : > { %v7569_v10 = vsel %vm12830_vm9, %v7506_v53, %v7568_v59  ;;  %v7572_v37 = vsel %vm12836_vm10, %v7507_v47, %v7571_v36  ;;  %v7511_v26 = vrot.slane %v7509_v60, 7  ;;  %v7670_v33 = vrot.slane %v7668_v11, 1  ;;  %v7596_v38 = vld [vmem:[#allocation8] sm:$0xe]  ;;  %v7597_v59 = vld [vmem:[#allocation8 + $0x8] sm:$0xe] }
 0x5ca   : > { %7570 = vst [vmem:[#allocation8 + $0x30] sm:$0xf] %v7569_v10  ;;  %7573 = vst [vmem:[#allocation8 + $0x34] sm:$0x1] %v7572_v37  ;;  %v9637_v40 = vcombine.low %v13388_v62, %v13390_v39  ;;  %7704 = vrot.lane.b32.xlu0 %v7664_v34, %s10991_s20  ;;  %v9641_v44 = vcombine.low %v7596_v38, %v13324_v43  ;;  %v9642_v53 = vcombine.low %v7597_v59, %v13338_v18  ;;  %v7598_v47 = vld [vmem:[#allocation8 + $0x10] sm:$0xe] }
 0x5cb   : > { %v7514_v48 = vor.u32 %v7512_v61, %v7511_v26  ;;  %v7515_v49 = vrot.slane %v7511_v26, 4  ;;  %v7671_v17 = vor.u32 %v7670_v33, %v7666_v32  ;;  %v7599_v60 = vld [vmem:[#allocation8 + $0x18] sm:$0xe]  ;;  %v9643_v11 = vcombine.low %v7598_v47, %v13356_v21  ;;  %v7831_v26 = vld [vmem:[#allocation9] sm:$0xff] }
 0x5cc   : > { %v7675_v29 = vshll.u32 %v9637_v40, 16  ;;  %v13400_v15 = vld [vmem:[#allocation8 + $0x28] sm:$0xf]  ;;  %v13402_v19 = vld [vmem:[#allocation8 + $0x2c] sm:$0x1]  ;;  %v7673_v5 = vshrl.u32 %v9637_v40, 16  ;;  %v9644_v10 = vcombine.low %v7599_v60, %v13375_v28 }
 0x5cd   : > { %v7575_v7 = vsel %vm12830_vm9, %v7514_v48, %v7574_v52  ;;  %v7578_v3 = vsel %vm12836_vm10, %v7515_v49, %v7577_v42  ;;  %7706 = vrot.lane.b32.xlu1 %v7671_v17, %s10991_s20  ;;  %v9638_v30 = vcombine.low %v13400_v15, %v13402_v19  ;;  %v7740_v36 = vrot.slane %v9641_v44, 1  ;;  %v7601_v48 = vld [vmem:[#allocation8 + $0x28] sm:$0xe]  ;;  %v10913_v38 = vld [vmem:[%s13577_s7 + $0xe8] sm:$0xff]  }
 0x5ce   : > { %7576 = vst [vmem:[#allocation8 + $0x38] sm:$0xf] %v7575_v7  ;;  %7579 = vst [vmem:[#allocation8 + $0x3c] sm:$0x1] %v7578_v3  ;;  %v7677_v51 = vrot.slane %v7675_v29, 1  ;;  %v7741_v31 = vrot.slane %v9642_v53, 1  ;;  %v9646_v29 = vcombine.low %v7601_v48, %v13402_v19 }
 0x5cf   : > { %v7682_v24 = vshll.u32 %v9638_v30, 16  ;;  %v7680_v63 = vshrl.u32 %v9638_v30, 16  ;;  %v7742_v18 = vrot.slane %v9643_v11, 1  ;;  %v7743_v42 = vrot.slane %v9644_v10, 1  ;;  %v10911_v30 = vld [vmem:[%s13577_s7 + $0xf8] sm:$0xff]  }
 0x5d0   : > { %v7678_v6 = vor.u32 %v7677_v51, %v7673_v5 }
 0x5d1   : > { %v13407_v2 = vld [vmem:[#allocation8 + $0x30] sm:$0xf]  ;;  %v13409_v27 = vld [vmem:[#allocation8 + $0x34] sm:$0x1]  ;;  %v7684_v16 = vrot.slane %v7682_v24, 1 }
 0x5d2   : > { %7708 = vrot.lane.b32.xlu0 %v7678_v6, %s10991_s20  ;;  %v9639_v57 = vcombine.low %v13407_v2, %v13409_v27  ;;  %v7745_v6 = vrot.slane %v9646_v29, 1 }
 0x5d3   : > { %v7685_v20 = vor.u32 %v7684_v16, %v7680_v63 }
 0x5d4   : > { %v7689_v58 = vshll.u32 %v9639_v57, 16  ;;  %v7687_v22 = vshrl.u32 %v9639_v57, 16 }
 0x5d5   : > { %v13414_v23 = vld [vmem:[#allocation8 + $0x38] sm:$0xf]  ;;  %v13416_v0 = vld [vmem:[#allocation8 + $0x3c] sm:$0x1]  ;;  %7710 = vrot.lane.b32.xlu1 %v7685_v20, %s10991_s20 }
 0x5d6   : > { %v7691_v35 = vrot.slane %v7689_v58, 1  ;;  %v9640_v4 = vcombine.low %v13414_v23, %v13416_v0  ;;  %v7603_v16 = vld [vmem:[#allocation8 + $0x38] sm:$0xe] }
 0x5d8   : > { %v7692_v55 = vor.u32 %v7691_v35, %v7687_v22  ;;  %v7696_v12 = vshll.u32 %v9640_v4, 16  ;;  %v7694_v41 = vshrl.u32 %v9640_v4, 16  ;;  %v10912_v22 = vld [vmem:[%s13577_s7 + $0xf0] sm:$0xff]   ;;  %v13462_v35 = vld [vmem:[#allocation5] sm:$0xff] }
 0x5da   : > { %7712 = vrot.lane.b32.xlu0 %v7692_v55, %s10991_s20  ;;  %v7698_v25 = vrot.slane %v7696_v12, 1  ;;  %v9648_v12 = vcombine.low %v7603_v16, %v13416_v0 }
 0x5dc   : > { %v7699_v9 = vor.u32 %v7698_v25, %v7694_v41  ;;  %v7747_v0 = vrot.slane %v9648_v12, 1 }
 0x5de   : > { %7714 = vrot.lane.b32.xlu1 %v7699_v9, %s10991_s20 }
 0x633   : > { %v7701_v46 = vpop.permute.xlu0 %7700 }
 0x634   : > { %v7750_v54 = vsel %vm2909_vm4, %v13322_v13, %v7701_v46  ;;  %v7600_v13 = vld [vmem:[#allocation8 + $0x20] sm:$0xe] }
 0x635   : > { %v9649_v50 = vcombine.low %v7750_v54, %v7740_v36 }
 0x637   : > { %7823 = vst.msk [vmem:[#allocation9 + $0x8] sm:$0xff] %vm12544_vm0, %v9649_v50  ;;  %v10914_v50 = vld [vmem:[%s13577_s7 + $0xe0] sm:$0xff]  }
 0x638   : > { %v7703_v45 = vpop.permute.xlu1 %7702 }
 0x639   : > { %v7753_v43 = vsel %vm2909_vm4, %v13336_v56, %v7703_v45  ;;  %v9645_v56 = vcombine.low %v7600_v13, %v13390_v39  ;;  %v10924_v13 = vld [vmem:[%s13577_s7 + $0xc0] sm:$0xff]  }
 0x63a   : > { %v9650_v37 = vcombine.low %v7753_v43, %v7741_v31 }
 0x63c   : > { %7824 = vst.msk [vmem:[#allocation9 + $0x10] sm:$0xff] %vm12544_vm0, %v9650_v37  ;;  %v7705_v61 = vpop.permute.xlu0 %7704 }
 0x63d   : > { %v7756_v52 = vsel %vm2909_vm4, %v13354_v1, %v7705_v61  ;;  %v7744_v1 = vrot.slane %v9645_v56, 1  ;;  %v10926_v61 = vld [vmem:[%s13577_s7 + $0x110] sm:$0xff]  }
 0x63e   : > { %v7832_v34 = vld [vmem:[#allocation9 + $0x8] sm:$0xff]  ;;  %v9651_v32 = vcombine.low %v7756_v52, %v7742_v18  ;;  %v10925_v18 = vld [vmem:[%s13577_s7 + $0x118] sm:$0xff]   ;;  %v10927_v52 = vld [vmem:[%s13577_s7 + $0x108] sm:$0xff]  }
 0x63f   : > { %v7707_v21 = vpop.permute.xlu1 %7706  ;;  %v9705_v33 = vcombine.low %v7831_v26, %v7832_v34  ;;  %v9706_v40 = vcombine.high %v7831_v26, %v7832_v34  ;;  %v10923_v26 = vld [vmem:[%s13577_s7 + $0xc8] sm:$0xff]  }
 0x640   : > { %v7759_v28 = vsel %vm2909_vm4, %v13373_v8, %v7707_v21  ;;  %7825 = vst.msk [vmem:[#allocation9 + $0x18] sm:$0xff] %vm12544_vm0, %v9651_v32  ;;  %v7602_v8 = vld [vmem:[#allocation8 + $0x30] sm:$0xe] }
 0x641   : > { %v9652_v49 = vcombine.low %v7759_v28, %v7743_v42  ;;  %9725 = vmatprep.mubr.msk.bf16.mxu1 %vm2909_vm4, %v9706_v40  ;;  %v9647_v19 = vcombine.low %v7602_v8, %v13409_v27  ;;  %v10928_v42 = vld [vmem:[%s13577_s7 + $0x100] sm:$0xff]  }
 0x642   : > { %8234 = vmatmul.mubr.bf16.vlgmr.msra.gmra.mxu1 %v9705_v33 }
 0x643   : > { %7826 = vst.msk [vmem:[#allocation9 + $0x20] sm:$0xff] %vm12544_vm0, %v9652_v49  ;;  %v7864_v7 = vld [vmem:[#allocation9 + $0x10] sm:$0xff] }
 0x644   : > { %v7709_v17 = vpop.permute.xlu0 %7708  ;;  %v9681_v5 = vcombine.low %v7832_v34, %v7864_v7  ;;  %v9682_v51 = vcombine.high %v7832_v34, %v7864_v7  ;;  %v8274_v34 = vld [vmem:[#allocation9 + $0x48] sm:$0xff] }
 0x645   : > { %v7762_v39 = vsel %vm2909_vm4, %v13388_v62, %v7709_v17 }
 0x646   : > { %v9653_v3 = vcombine.low %v7762_v39, %v7744_v1  ;;  %9701 = vmatprep.mubr.msk.bf16.mxu0 %vm2909_vm4, %v9682_v51 }
 0x647   : > { %v7711_v24 = vpop.permute.xlu1 %7710  ;;  %8049 = vmatmul.mubr.bf16.vlgmr.msra.gmra.mxu0 %v9681_v5  ;;  %v7834_v63 = vld [vmem:[#allocation9 + $0x18] sm:$0xff] }
 0x648   : > { %7827 = vst.msk [vmem:[#allocation9 + $0x28] sm:$0xff] %vm12544_vm0, %v9653_v3  ;;  %v7765_v62 = vsel %vm2909_vm4, %v13400_v15, %v7711_v24  ;;  %8421 = vmatpush1.bf16.msra.mxu0 %v10911_v30  ;;  %v9708_v20 = vcombine.high %v7864_v7, %v7834_v63  ;;  %v13457_v58 = vcombine.low %v7864_v7, %v7834_v63  ;;  %v7746_v15 = vrot.slane %v9647_v19, 1 }
 0x649   : > { %v9654_v57 = vcombine.low %v7765_v62, %v7745_v6  ;;  %8422 = vmatprep.subr.bf16.mxu0 %v13462_v35 }
 0x64a   : > { %v7866_v27 = vld [vmem:[#allocation9 + $0x20] sm:$0xff]  ;;  %9726 = vmatprep.mubr.msk.bf16.mxu1 %vm2909_vm4, %v9708_v20 }
 0x64b   : > { %7828 = vst.msk [vmem:[#allocation9 + $0x30] sm:$0xff] %vm12544_vm0, %v9654_v57  ;;  %v9684_v55 = vcombine.high %v7834_v63, %v7866_v27  ;;  %8242 = vmatmul.mubr.bf16.gmra.mxu1 %v13457_v58  ;;  %v9683_v25 = vcombine.low %v7834_v63, %v7866_v27 }
 0x64c   : > { %v7713_v4 = vpop.permute.xlu0 %7712  ;;  %8423 = vmatpush1.bf16.msra.mxu0 %v10912_v22 }
 0x64d   : > { %v7768_v41 = vsel %vm2909_vm4, %v13407_v2, %v7713_v4  ;;  %9702 = vmatprep.mubr.msk.bf16.mxu0 %vm2909_vm4, %v9684_v55  ;;  %8424 = vmatprep.subr.bf16.mxu0 %v13462_v35 }
 0x64e   : > { %v9655_v9 = vcombine.low %v7768_v41, %v7746_v15 }
 0x64f   : > { %v7836_v44 = vld [vmem:[#allocation9 + $0x28] sm:$0xff]  ;;  %8057 = vmatmul.mubr.bf16.gmra.mxu0 %v9683_v25 }
 0x650   : > { %7829 = vst.msk [vmem:[#allocation9 + $0x38] sm:$0xff] %vm12544_vm0, %v9655_v9  ;;  %v7715_v59 = vpop.permute.xlu1 %7714  ;;  %v9710_v36 = vcombine.high %v7866_v27, %v7836_v44  ;;  %v9709_v46 = vcombine.low %v7866_v27, %v7836_v44  ;;  %8425 = vmatpush1.bf16.msra.mxu0 %v10913_v38  ;;  %v13533_v9 = vld [vmem:[%s13578_s8] ss:$0 sm:$0xff] }
 0x651   : > { %v7771_v2 = vsel %vm2909_vm4, %v13414_v23, %v7715_v59  ;;  %8426 = vmatprep.subr.bf16.mxu0 %v13462_v35  ;;  %v10917_v23 = vld [vmem:[%s13577_s7 + $0xd8] sm:$0xff]  }
 0x652   : > { %v9656_v54 = vcombine.low %v7771_v2, %v7747_v0  ;;  %9727 = vmatprep.mubr.msk.bf16.mxu1 %vm2909_vm4, %v9710_v36  ;;  %v7868_v53 = vld [vmem:[#allocation9 + $0x30] sm:$0xff] }
 0x653   : > { %v9686_v47 = vcombine.high %v7836_v44, %v7868_v53  ;;  %8250 = vmatmul.mubr.bf16.gmra.mxu1 %v9709_v46  ;;  %v9685_v60 = vcombine.low %v7836_v44, %v7868_v53 }
 0x654   : > { %7830 = vst.msk [vmem:[#allocation9 + $0x40] sm:$0xff] %vm12544_vm0, %v9656_v54  ;;  %8427 = vmatpush1.bf16.msra.mxu0 %v10914_v50 }
 0x655   : > { %9703 = vmatprep.mubr.msk.bf16.mxu0 %vm2909_vm4, %v9686_v47  ;;  %8428 = vmatprep.subr.bf16.mxu0 %v13462_v35 }
 0x657   : > { %v7838_v31 = vld [vmem:[#allocation9 + $0x38] sm:$0xff]  ;;  %8065 = vmatmul.mubr.bf16.gmra.mxu0 %v9685_v60 }
 0x658   : > { %v9712_v45 = vcombine.high %v7868_v53, %v7838_v31  ;;  %v9711_v11 = vcombine.low %v7868_v53, %v7838_v31  ;;  %8429 = vmatpush1.bf16.msra.mxu0 %v10917_v23 }
 0x659   : > { %8430 = vmatprep.subr.bf16.mxu0 %v13462_v35 }
 0x65a   : > { %9728 = vmatprep.mubr.msk.bf16.mxu1 %vm2909_vm4, %v9712_v45 }
 0x65b   : > { %v7870_v43 = vld [vmem:[#allocation9 + $0x40] sm:$0xff]  ;;  %8258 = vmatmul.mubr.bf16.gmra.mxu1 %v9711_v11 }
 0x65c   : > { %v9688_v10 = vcombine.high %v7838_v31, %v7870_v43  ;;  %v9687_v37 = vcombine.low %v7838_v31, %v7870_v43  ;;  %8431 = vmatpush1.bf16.msra.mxu0 %v10920_v14  ;;  %v9760_v32 = vcombine.high %v7870_v43, %v8274_v34  ;;  %v9759_v21 = vcombine.low %v7870_v43, %v8274_v34 }
 0x65d   : > { %8432 = vmatprep.subr.bf16.mxu0 %v13462_v35 }
 0x65e   : > { %9704 = vmatprep.mubr.msk.bf16.mxu0 %vm2909_vm4, %v9688_v10  ;;  %v8508_v10 = vlaneseq }
 0x65f   : > { %8073 = vmatmul.mubr.bf16.gmra.mxu0 %v9687_v37 }
 0x660   : > { %8433 = vmatpush1.bf16.msra.mxu0 %v10923_v26  ;;  %9773 = vmatprep.mubr.msk.bf16.mxu0 %vm2909_vm4, %v9708_v20  ;;  %v8509_v34 = vand.u32 127, %v8508_v10 }
 0x661   : > { %8434 = vmatprep.subr.bf16.mxu0 %v13462_v35 }
 0x664   : > { %8435 = vmatpush1.bf16.msra.mxu0 %v10924_v13 }
 0x665   : > { %8444 = vmatprep.subr.bf16.mxu0 %v13462_v35 }
 0x668   : > { %8445 = vmatpush2.bf16.msra.mxu0 %v10925_v18 }
 0x669   : > { %8446 = vmatprep.subr.bf16.mxu0 %v13462_v35 }
 0x66c   : > { %8447 = vmatpush2.bf16.msra.mxu0 %v10926_v61 }
 0x66d   : > { %8448 = vmatprep.subr.bf16.mxu0 %v13462_v35 }
 0x670   : > { %8449 = vmatpush2.bf16.msra.mxu0 %v10927_v52 }
 0x671   : > { %8450 = vmatprep.subr.bf16.mxu0 %v13462_v35 }
 0x674   : > { %8451 = vmatpush2.bf16.msra.mxu0 %v10928_v42 }
 0x677   : > { %8453 = vmatmul.mubr.bf16.vlgmr.msra.gmra.mxu0 %v13457_v58 }
 0x678   : > { %9774 = vmatprep.mubr.msk.bf16.mxu0 %vm2909_vm4, %v9710_v36 }
 0x67f   : > { %8461 = vmatmul.mubr.bf16.gmra.mxu0 %v9709_v46 }
 0x680   : > { %9775 = vmatprep.mubr.msk.bf16.mxu0 %vm2909_vm4, %v9712_v45 }
 0x687   : > { %8469 = vmatmul.mubr.bf16.gmra.mxu0 %v9711_v11 }
 0x688   : > { %9776 = vmatprep.mubr.msk.bf16.mxu0 %vm2909_vm4, %v9760_v32  ;;  %vm8542_vm4 = vcmp.lt.s32.totalorder %v8509_v34, 10 }
 0x68f   : > { %8477 = vmatmul.mubr.bf16.gmra.mxu0 %v9759_v21 }
 0x702   : > { %v8235_v33 = vpop.f32.mrf.mxu1 }
 0x704   : > { %v8237_v40 = vpop.f32.mrf.mxu1 }
 0x706   : > { %v8238_v56 = vpop.f32.mrf.mxu1 }
 0x707   : > { %v8050_v28 = vpop.f32.mrf.mxu0 }
 0x708   : > { %v8240_v48 = vpop.f32.mrf.mxu1  ;;  %v8236_v41 = vadd.f32 %v8235_v33, %v8050_v28 }
 0x709   : > { %v8052_v49 = vpop.f32.mrf.mxu0 }
 0x70b   : > { %v8053_v1 = vpop.f32.mrf.mxu0  ;;  %v8243_v17 = vpop.f32.mrf.mxu1 }
 0x70c   : > { %v8239_v0 = vadd.f32 %v8238_v56, %v8053_v1 }
 0x70d   : > { %v8055_v29 = vpop.f32.mrf.mxu0  ;;  %v8245_v39 = vpop.f32.mrf.mxu1 }
 0x70f   : > { %v8058_v7 = vpop.f32.mrf.mxu0  ;;  %v8246_v8 = vpop.f32.mrf.mxu1 }
 0x710   : > { %v8244_v50 = vadd.f32 %v8243_v17, %v8058_v7 }
 0x711   : > { %v8060_v3 = vpop.f32.mrf.mxu0  ;;  %v8248_v5 = vpop.f32.mrf.mxu1 }
 0x713   : > { %v8061_v51 = vpop.f32.mrf.mxu0  ;;  %v8251_v30 = vpop.f32.mrf.mxu1 }
 0x714   : > { %v8247_v11 = vadd.f32 %v8246_v8, %v8061_v51 }
 0x715   : > { %v8063_v6 = vpop.f32.mrf.mxu0  ;;  %v8253_v24 = vpop.f32.mrf.mxu1 }
 0x717   : > { %v8066_v19 = vpop.f32.mrf.mxu0  ;;  %v8254_v62 = vpop.f32.mrf.mxu1 }
 0x718   : > { %v8252_v61 = vadd.f32 %v8251_v30, %v8066_v19 }
 0x719   : > { %v8068_v63 = vpop.f32.mrf.mxu0  ;;  %v8256_v16 = vpop.f32.mrf.mxu1 }
 0x71b   : > { %v8069_v57 = vpop.f32.mrf.mxu0  ;;  %v8259_v20 = vpop.f32.mrf.mxu1 }
 0x71c   : > { %v8255_v56 = vadd.f32 %v8254_v62, %v8069_v57 }
 0x71d   : > { %v8071_v58 = vpop.f32.mrf.mxu0  ;;  %v8261_v22 = vpop.f32.mrf.mxu1 }
 0x71f   : > { %v8074_v35 = vpop.f32.mrf.mxu0  ;;  %v13528_v27 = vpop.f32.mrf.mxu1 }
 0x720   : > { %v8260_v7 = vadd.f32 %v8259_v20, %v8074_v35 }
 0x721   : > { %v8076_v15 = vpop.f32.mrf.mxu0  ;;  %v8264_v4 = vpop.f32.mrf.mxu1 }
 0x723   : > { %v8077_v55 = vpop.f32.mrf.mxu0 }
 0x724   : > { %v8263_v62 = vadd.f32 %v13528_v27, %v8077_v55 }
 0x725   : > { %v8079_v12 = vpop.f32.mrf.mxu0 }
 0x737   : > { %v8454_v25 = vpop.f32.mrf.mxu0 }
 0x738   : > { %v8485_v38 = vadd.f32 %v8454_v25, %v8236_v41 }
 0x739   : > { %v8456_v44 = vpop.f32.mrf.mxu0 }
 0x73a   : > { %v8500_v59 = vadd.f32 %v13533_v9, %v8485_v38 }
 0x73b   : > { %v8457_v36 = vpop.f32.mrf.mxu0 }
 0x73c   : > { %v9778_v2 = vclamps-f32 %v8500_v59, 10.0  ;;  %v8486_v46 = vadd.f32 %v8457_v36, %v8239_v0 }
 0x73d   : > { %v8459_v54 = vpop.f32.mrf.mxu0 }
 0x73e   : > { %v8526_v53 = vmul.f32 1.442695, %v9778_v2  ;;  %v8501_v47 = vadd.f32 %v13533_v9, %v8486_v46 }
 0x73f   : > { %v8462_v60 = vpop.f32.mrf.mxu0 }
 0x740   : > { %10931 = vpow2.f32 %v8526_v53  ;;  %v9779_v23 = vclamps-f32 %v8501_v47, 10.0  ;;  %v8487_v31 = vadd.f32 %v8462_v60, %v8244_v50 }
 0x741   : > { %v8464_v45 = vpop.f32.mrf.mxu0 }
 0x742   : > { %v8528_v14 = vmul.f32 1.442695, %v9779_v23  ;;  %v8502_v43 = vadd.f32 %v13533_v9, %v8487_v31 }
 0x743   : > { %v8465_v37 = vpop.f32.mrf.mxu0 }
 0x744   : > { %10933 = vpow2.f32 %v8528_v14  ;;  %v9780_v26 = vclamps-f32 %v8502_v43, 10.0  ;;  %v8488_v13 = vadd.f32 %v8465_v37, %v8247_v11 }
 0x745   : > { %v8467_v18 = vpop.f32.mrf.mxu0 }
 0x746   : > { %v8530_v52 = vmul.f32 1.442695, %v9780_v26  ;;  %v8503_v42 = vadd.f32 %v13533_v9, %v8488_v13 }
 0x747   : > { %v8470_v32 = vpop.f32.mrf.mxu0 }
 0x748   : > { %10935 = vpow2.f32 %v8530_v52  ;;  %v9781_v21 = vclamps-f32 %v8503_v42, 10.0  ;;  %v8489_v33 = vadd.f32 %v8470_v32, %v8252_v61 }
 0x749   : > { %v8472_v40 = vpop.f32.mrf.mxu0 }
 0x74a   : > { %v8532_v28 = vmul.f32 1.442695, %v9781_v21  ;;  %v8504_v48 = vadd.f32 %v13533_v9, %v8489_v33 }
 0x74b   : > { %v8473_v49 = vpop.f32.mrf.mxu0 }
 0x74c   : > { %10937 = vpow2.f32 %v8532_v28  ;;  %v9782_v1 = vclamps-f32 %v8504_v48, 10.0  ;;  %v8490_v17 = vadd.f32 %v8473_v49, %v8255_v56 }
 0x74d   : > { %v10932_v29 = vpop.eup %10931  ;;  %v8475_v39 = vpop.f32.mrf.mxu0 }
 0x74e   : > { %v8543_v8 = vsel %vm8542_vm4, %v8500_v59, %v10932_v29  ;;  %v8534_v3 = vmul.f32 1.442695, %v9782_v1  ;;  %v8505_v5 = vadd.f32 %v13533_v9, %v8490_v17 }
 0x74f   : > { %8551 = vst [vmem:[%s13545_s11] sm:$0xff] %v8543_v8  ;;  %v8478_v51 = vpop.f32.mrf.mxu0 }
 0x750   : > { %10939 = vpow2.f32 %v8534_v3  ;;  %v9783_v30 = vclamps-f32 %v8505_v5, 10.0  ;;  %v8491_v6 = vadd.f32 %v8478_v51, %v8260_v7 }
 0x751   : > { %v10934_v24 = vpop.eup %10933  ;;  %v8480_v19 = vpop.f32.mrf.mxu0 }
 0x752   : > { %v8544_v63 = vsel %vm8542_vm4, %v8501_v47, %v10934_v24  ;;  %v8536_v16 = vmul.f32 1.442695, %v9783_v30  ;;  %v8506_v57 = vadd.f32 %v13533_v9, %v8491_v6 }
 0x753   : > { %8552 = vst [vmem:[%s13545_s11 + $0x8] sm:$0xff] %v8544_v63  ;;  %v8481_v20 = vpop.f32.mrf.mxu0 }
 0x754   : > { %10941 = vpow2.f32 %v8536_v16  ;;  %v9784_v58 = vclamps-f32 %v8506_v57, 10.0  ;;  %v8492_v22 = vadd.f32 %v8481_v20, %v8263_v62 }
 0x755   : > { %v10936_v35 = vpop.eup %10935  ;;  %v8483_v15 = vpop.f32.mrf.mxu0 }
 0x756   : > { %v8545_v4 = vsel %vm8542_vm4, %v8502_v43, %v10936_v35  ;;  %v8538_v12 = vmul.f32 1.442695, %v9784_v58  ;;  %v8507_v27 = vadd.f32 %v13533_v9, %v8492_v22 }
 0x757   : > { %8553 = vst [vmem:[%s13545_s11 + $0x10] sm:$0xff] %v8545_v4 }
 0x758   : > { %10943 = vpow2.f32 %v8538_v12  ;;  %v9785_v55 = vclamps-f32 %v8507_v27, 10.0 }
 0x759   : > { %v10938_v41 = vpop.eup %10937 }
 0x75a   : > { %v8546_v25 = vsel %vm8542_vm4, %v8503_v42, %v10938_v41  ;;  %v8540_v38 = vmul.f32 1.442695, %v9785_v55 }
 0x75b   : > { %8554 = vst [vmem:[%s13545_s11 + $0x18] sm:$0xff] %v8546_v25 }
 0x75c   : > { %10945 = vpow2.f32 %v8540_v38 }
 0x75d   : > { %v10940_v44 = vpop.eup %10939 }
 0x75e   : > { %v8547_v0 = vsel %vm8542_vm4, %v8504_v48, %v10940_v44 }
 0x75f   : > { %8555 = vst [vmem:[%s13545_s11 + $0x20] sm:$0xff] %v8547_v0 }
 0x761   : > { %v10942_v59 = vpop.eup %10941 }
 0x762   : > { %v8548_v36 = vsel %vm8542_vm4, %v8505_v5, %v10942_v59 }
 0x763   : > { %8556 = vst [vmem:[%s13545_s11 + $0x28] sm:$0xff] %v8548_v36 }
 0x765   : > { %v10944_v9 = vpop.eup %10943 }
 0x766   : > { %v8549_v2 = vsel %vm8542_vm4, %v8506_v57, %v10944_v9 }
 0x767   : > { %8557 = vst [vmem:[%s13545_s11 + $0x30] sm:$0xff] %v8549_v2 }
 0x769   : > { %v10946_v46 = vpop.eup %10945 }
 0x76a   : > { %v8550_v54 = vsel %vm8542_vm4, %v8507_v27, %v10946_v46 }
 0x76b   : > { %8558 = vst [vmem:[%s13545_s11 + $0x38] sm:$0xff] %v8550_v54 }
 0x76c PF: > { %s19_s30 = sadd.s32 1, %s10982_s30  }
 0x76d   : > { %p16_p4 = scmp.ge.s32.totalorder %s19_s30, 4  }
 0x76f   :  { %18 = sbr.rel (!%p16_p4) target bundleno = 1 (0x1), region = 126 }

</bundles_post_ra>
